<compile_context>
chip_gen: v5e
topology: v5e:2x2
jax: 0.10.0
libtpu: 0.0.40
codegen_flags: <defaults>
</compile_context>

<pallas_src>
import functools

import jax
import jax.numpy as jnp
from jax.experimental import pallas as pl
from jax.experimental.pallas import tpu as pltpu


def _softplus(z):
    # Matches torch.nn.Softplus(beta=1, threshold=20): identity above threshold.
    return jnp.where(z > 20.0, z, jnp.log1p(jnp.exp(jnp.minimum(z, 20.0))))


def _round_up(n, m):
    return ((n + m - 1) // m) * m


def _default_num_grid_steps():
    """Grid steps == TensorCores per JAX device (2 on v7x/v4, 1 on v5e/v6e)."""
    try:
        kind = jax.devices()[0].device_kind.lower()
        return 2 if ("7" in kind or "v4" in kind) else 1
    except Exception:
        return 1


def _ncsn_kernel(std_ref, x_ref, w1_ref, w1s_ref, b1_ref, w2_ref, b2_ref,
                 w3_ref, b3_ref, out_ref, *, compute_dtype):
    """Fused 3-layer MLP with softplus activations on one batch tile.

    The PyTorch concat([x, std]) is folded in as a rank-1 update:
        h1 = x @ W1[:D] + (std * W1[D] + b1)
    std lives in SMEM; matmul operands go to the MXU in `compute_dtype`
    (bf16 by default) with f32 accumulation; elementwise math stays f32.
    The output is lane-dense (W3/b3 zero-padded to 128 columns by the wrapper).
    """
    std = std_ref[0]                                           # f32 scalar from SMEM
    x = x_ref[...].astype(compute_dtype)                       # (TB, D)

    h1 = jnp.dot(x, w1_ref[...], preferred_element_type=jnp.float32)
    bias1 = std * w1s_ref[...] + b1_ref[...]                   # (1, H) computed once
    h1 = _softplus(h1 + bias1)                                 # (TB, H) f32

    h2 = jnp.dot(h1.astype(compute_dtype), w2_ref[...],
                 preferred_element_type=jnp.float32)
    h2 = _softplus(h2 + b2_ref[...])                           # (TB, H) f32

    y = jnp.dot(h2.astype(compute_dtype), w3_ref[...],
                preferred_element_type=jnp.float32) + b3_ref[...]
    out_ref[...] = y.astype(out_ref.dtype)                     # (TB, Dp) dense store


def init_params(key, input_dim, hidden_dim=128, dtype=jnp.float32):
    """Deterministic synthetic parameters (same shapes as the PyTorch module)."""
    ks = jax.random.split(key, 6)

    def lin(kw, kb, fan_in, fan_out):
        # PyTorch default nn.Linear init: U(-1/sqrt(fan_in), 1/sqrt(fan_in))
        bound = 1.0 / jnp.sqrt(jnp.asarray(fan_in, dtype))
        w = jax.random.uniform(kw, (fan_in, fan_out), dtype, -bound, bound)
        b = jax.random.uniform(kb, (1, fan_out), dtype, -bound, bound)
        return w, b

    w1, b1 = lin(ks[0], ks[1], input_dim + 1, hidden_dim)
    w2, b2 = lin(ks[2], ks[3], hidden_dim, hidden_dim)
    w3, b3 = lin(ks[4], ks[5], hidden_dim, input_dim)
    return dict(w1=w1, b1=b1, w2=w2, b2=b2, w3=w3, b3=b3)


@functools.partial(jax.jit, static_argnames=("num_grid_steps", "compute_dtype"))
def ncsn_forward(x, std, params, *, num_grid_steps=None,
                 compute_dtype=jnp.bfloat16):
    """x: (B, D) f32, std: scalar f32 -> (B, D) score (same semantics as torch)."""
    B, D = x.shape
    H = params["w1"].shape[1]

    # One grid step per TensorCore: one big tile on v5e/v6e, two on v7x.
    steps = num_grid_steps if num_grid_steps is not None else _default_num_grid_steps()
    steps = max(1, min(int(steps), B))
    tb = _round_up(-(-B // steps), 8)          # ceil(B/steps), 8-sublane aligned
    Bp = _round_up(B, tb)
    if Bp != B:
        x = jnp.pad(x, ((0, Bp - B), (0, 0)))
    grid = (Bp // tb,)

    # Lane-dense output width: pad W3/b3 out to a multiple of 128 columns so
    # every output store is an unmasked dense vst (biggest single lever here).
    Dp = _round_up(D, 128)

    # Split W1 into the part acting on x and the row acting on std; cast the
    # MXU operands once here (tiny tensors). Biases / rank-1 row stay f32.
    w1a = params["w1"][:D].astype(compute_dtype)                       # (D, H)
    w1s = params["w1"][D:D + 1].astype(jnp.float32)                    # (1, H)
    w2 = params["w2"].astype(compute_dtype)                            # (H, H)
    w3 = jnp.pad(params["w3"], ((0, 0), (0, Dp - D))).astype(compute_dtype)  # (H, Dp)
    b1 = params["b1"].astype(jnp.float32)                              # (1, H)
    b2 = params["b2"].astype(jnp.float32)                              # (1, H)
    b3 = jnp.pad(params["b3"], ((0, 0), (0, Dp - D))).astype(jnp.float32)    # (1, Dp)
    std_arr = jnp.reshape(std, (1,)).astype(jnp.float32)

    full = lambda i: (0, 0)                     # weights: same block every step
    kernel = functools.partial(_ncsn_kernel, compute_dtype=compute_dtype)

    out = pl.pallas_call(
        kernel,
        out_shape=jax.ShapeDtypeStruct((Bp, Dp), x.dtype),
        grid_spec=pltpu.PrefetchScalarGridSpec(
            num_scalar_prefetch=0,
            grid=grid,
            in_specs=[
                pl.BlockSpec(memory_space=pltpu.MemorySpace.SMEM),  # std, (1,) scalar
                pl.BlockSpec((tb, D), lambda i: (i, 0)),            # x tile
                pl.BlockSpec((D, H), full),                         # W1[:D]
                pl.BlockSpec((1, H), full),                         # W1[D] (std row)
                pl.BlockSpec((1, H), full),                         # b1
                pl.BlockSpec((H, H), full),                         # W2
                pl.BlockSpec((1, H), full),                         # b2
                pl.BlockSpec((H, Dp), full),                        # W3 (lane-padded)
                pl.BlockSpec((1, Dp), full),                        # b3 (lane-padded)
            ],
            out_specs=pl.BlockSpec((tb, Dp), lambda i: (i, 0)),
        ),
        compiler_params=pltpu.CompilerParams(
            dimension_semantics=("parallel",),
        ),
    )(std_arr, x, w1a, w1s, b1, w2, b2, w3, b3)
    return out[:B, :D]


def _reference_forward(x, std, params, compute_dtype):
    """Pure-JAX reference using the same bf16 MXU casting as the kernel."""
    D = x.shape[1]
    cdt = compute_dtype
    w1a = params["w1"][:D].astype(cdt)
    w1s = params["w1"][D:D + 1].astype(jnp.float32)
    h1 = jnp.dot(x.astype(cdt), w1a, preferred_element_type=jnp.float32)
    h1 = _softplus(h1 + (std.astype(jnp.float32) * w1s + params["b1"]))
    h2 = jnp.dot(h1.astype(cdt), params["w2"].astype(cdt),
                 preferred_element_type=jnp.float32)
    h2 = _softplus(h2 + params["b2"])
    y = jnp.dot(h2.astype(cdt), params["w3"].astype(cdt),
                preferred_element_type=jnp.float32) + params["b3"]
    return y


def _reference_forward_f32(x, std, params):
    """Pure-f32 PyTorch-style (concat) forward, for a loose semantic check."""
    B = x.shape[0]
    std_col = jnp.broadcast_to(jnp.reshape(std, (1, 1)).astype(x.dtype), (B, 1))
    h = jnp.concatenate([x, std_col], axis=1)
    h = _softplus(h @ params["w1"] + params["b1"])
    h = _softplus(h @ params["w2"] + params["b2"])
    return h @ params["w3"] + params["b3"]


if __name__ == "__main__":
    key = jax.random.PRNGKey(0)
    k_p, k_x, k_s = jax.random.split(key, 3)

    batch = 512          # grid = 1 tile (v5e/v6e) or 2 x 256-row tiles (v7x)
    input_dim = 16
    hidden_dim = 128

    params = init_params(k_p, input_dim, hidden_dim)
    x = jax.random.normal(k_x, (batch, input_dim), jnp.float32)
    std = jnp.abs(jax.random.normal(k_s, (), jnp.float32)) + 0.1  # scalar noise level

    out = ncsn_forward(x, std, params)
    jax.block_until_ready(out)
    assert out.shape == (batch, input_dim)

    # Tight check vs a JAX reference with identical bf16 MXU casting.
    ref_cast = _reference_forward(x, std, params, jnp.bfloat16)
    assert jnp.allclose(out, ref_cast, atol=2e-3, rtol=2e-3), "mismatch vs cast ref"

    # Loose semantic check vs the pure-f32 PyTorch-style concat forward.
    ref_f32 = _reference_forward_f32(x, std, params)
    assert jnp.allclose(out, ref_f32, atol=1e-1, rtol=1e-1), "mismatch vs f32 ref"

    print("KERNEL_OK")
</pallas_src>

<mosaic_0001>
module attributes {stable_mosaic.version = 11 : i64} {
  func.func @_ncsn_kernel(%arg0: i32, %arg1: memref<1xf32, #tpu.memory_space<smem>>, %arg2: memref<512x16xf32, #tpu.memory_space<vmem>>, %arg3: memref<16x128xbf16, #tpu.memory_space<vmem>>, %arg4: memref<1x128xf32, #tpu.memory_space<vmem>>, %arg5: memref<1x128xf32, #tpu.memory_space<vmem>>, %arg6: memref<128x128xbf16, #tpu.memory_space<vmem>>, %arg7: memref<1x128xf32, #tpu.memory_space<vmem>>, %arg8: memref<128x128xbf16, #tpu.memory_space<vmem>>, %arg9: memref<1x128xf32, #tpu.memory_space<vmem>>, %arg10: memref<512x128xf32, #tpu.memory_space<vmem>>) attributes {dimension_semantics = [#tpu.dimension_semantics<parallel>], iteration_bounds = array<i64: 1>, scalar_prefetch = 0 : i64, scratch_operands = 0 : i64, tpu.core_type = #tpu.core_type<tc>, window_params = [{transform_indices = @transform_0, window_bounds = array<i64: 1>}, {transform_indices = @transform_1, window_bounds = array<i64: 512, 16>}, {pipeline_mode = #tpu.pipeline_mode<synchronous>, transform_indices = @transform_2, window_bounds = array<i64: 16, 128>}, {pipeline_mode = #tpu.pipeline_mode<synchronous>, transform_indices = @transform_3, window_bounds = array<i64: 1, 128>}, {pipeline_mode = #tpu.pipeline_mode<synchronous>, transform_indices = @transform_4, window_bounds = array<i64: 1, 128>}, {pipeline_mode = #tpu.pipeline_mode<synchronous>, transform_indices = @transform_5, window_bounds = array<i64: 128, 128>}, {pipeline_mode = #tpu.pipeline_mode<synchronous>, transform_indices = @transform_6, window_bounds = array<i64: 1, 128>}, {pipeline_mode = #tpu.pipeline_mode<synchronous>, transform_indices = @transform_7, window_bounds = array<i64: 128, 128>}, {pipeline_mode = #tpu.pipeline_mode<synchronous>, transform_indices = @transform_8, window_bounds = array<i64: 1, 128>}, {transform_indices = @transform_9, window_bounds = array<i64: 512, 128>}]} {
    %c0 = arith.constant 0 : index
    %0 = memref.load %arg1[%c0] : memref<1xf32, #tpu.memory_space<smem>>
    %c0_0 = arith.constant 0 : index
    %c0_1 = arith.constant 0 : index
    %1 = vector.load %arg2[%c0_0, %c0_1] : memref<512x16xf32, #tpu.memory_space<vmem>>, vector<512x16xf32>
    %2 = arith.truncf %1 : vector<512x16xf32> to vector<512x16xbf16>
    %c0_2 = arith.constant 0 : index
    %c0_3 = arith.constant 0 : index
    %3 = vector.load %arg3[%c0_2, %c0_3] : memref<16x128xbf16, #tpu.memory_space<vmem>>, vector<16x128xbf16>
    %cst = arith.constant dense<0.000000e+00> : vector<512x128xf32>
    %4 = tpu.matmul %2, %3, %cst {dimension_numbers = #tpu.dot_dimension_numbers<[1], [0], [0], [1], [0, 0, 1, 1], [], []>} : vector<512x16xbf16>, vector<16x128xbf16>, vector<512x128xf32> -> vector<512x128xf32>
    %c0_4 = arith.constant 0 : index
    %c0_5 = arith.constant 0 : index
    %5 = vector.load %arg4[%c0_4, %c0_5] : memref<1x128xf32, #tpu.memory_space<vmem>>, vector<1x128xf32>
    %6 = vector.broadcast %0 : f32 to vector<1x128xf32>
    %7 = arith.mulf %6, %5 : vector<1x128xf32>
    %c0_6 = arith.constant 0 : index
    %c0_7 = arith.constant 0 : index
    %8 = vector.load %arg5[%c0_6, %c0_7] : memref<1x128xf32, #tpu.memory_space<vmem>>, vector<1x128xf32>
    %9 = arith.addf %7, %8 : vector<1x128xf32>
    %10 = vector.broadcast %9 : vector<1x128xf32> to vector<512x128xf32>
    %11 = arith.addf %4, %10 : vector<512x128xf32>
    %cst_8 = arith.constant 2.000000e+01 : f32
    %12 = vector.broadcast %cst_8 : f32 to vector<512x128xf32>
    %13 = arith.cmpf ogt, %11, %12 : vector<512x128xf32>
    %cst_9 = arith.constant 2.000000e+01 : f32
    %14 = vector.broadcast %cst_9 : f32 to vector<512x128xf32>
    %15 = arith.minimumf %11, %14 : vector<512x128xf32>
    %16 = math.exp %15 : vector<512x128xf32>
    %17 = math.log1p %16 : vector<512x128xf32>
    %18 = arith.select %13, %11, %17 : vector<512x128xi1>, vector<512x128xf32>
    %19 = arith.truncf %18 : vector<512x128xf32> to vector<512x128xbf16>
    %c0_10 = arith.constant 0 : index
    %c0_11 = arith.constant 0 : index
    %20 = vector.load %arg6[%c0_10, %c0_11] : memref<128x128xbf16, #tpu.memory_space<vmem>>, vector<128x128xbf16>
    %cst_12 = arith.constant dense<0.000000e+00> : vector<512x128xf32>
    %21 = tpu.matmul %19, %20, %cst_12 {dimension_numbers = #tpu.dot_dimension_numbers<[1], [0], [0], [1], [0, 0, 1, 1], [], []>} : vector<512x128xbf16>, vector<128x128xbf16>, vector<512x128xf32> -> vector<512x128xf32>
    %c0_13 = arith.constant 0 : index
    %c0_14 = arith.constant 0 : index
    %22 = vector.load %arg7[%c0_13, %c0_14] : memref<1x128xf32, #tpu.memory_space<vmem>>, vector<1x128xf32>
    %23 = vector.broadcast %22 : vector<1x128xf32> to vector<512x128xf32>
    %24 = arith.addf %21, %23 : vector<512x128xf32>
    %cst_15 = arith.constant 2.000000e+01 : f32
    %25 = vector.broadcast %cst_15 : f32 to vector<512x128xf32>
    %26 = arith.cmpf ogt, %24, %25 : vector<512x128xf32>
    %cst_16 = arith.constant 2.000000e+01 : f32
    %27 = vector.broadcast %cst_16 : f32 to vector<512x128xf32>
    %28 = arith.minimumf %24, %27 : vector<512x128xf32>
    %29 = math.exp %28 : vector<512x128xf32>
    %30 = math.log1p %29 : vector<512x128xf32>
    %31 = arith.select %26, %24, %30 : vector<512x128xi1>, vector<512x128xf32>
    %32 = arith.truncf %31 : vector<512x128xf32> to vector<512x128xbf16>
    %c0_17 = arith.constant 0 : index
    %c0_18 = arith.constant 0 : index
    %33 = vector.load %arg8[%c0_17, %c0_18] : memref<128x128xbf16, #tpu.memory_space<vmem>>, vector<128x128xbf16>
    %cst_19 = arith.constant dense<0.000000e+00> : vector<512x128xf32>
    %34 = tpu.matmul %32, %33, %cst_19 {dimension_numbers = #tpu.dot_dimension_numbers<[1], [0], [0], [1], [0, 0, 1, 1], [], []>} : vector<512x128xbf16>, vector<128x128xbf16>, vector<512x128xf32> -> vector<512x128xf32>
    %c0_20 = arith.constant 0 : index
    %c0_21 = arith.constant 0 : index
    %35 = vector.load %arg9[%c0_20, %c0_21] : memref<1x128xf32, #tpu.memory_space<vmem>>, vector<1x128xf32>
    %36 = vector.broadcast %35 : vector<1x128xf32> to vector<512x128xf32>
    %37 = arith.addf %34, %36 : vector<512x128xf32>
    %c0_22 = arith.constant 0 : index
    %c0_23 = arith.constant 0 : index
    %38 = vector.load %arg10[%c0_22, %c0_23] : memref<512x128xf32, #tpu.memory_space<vmem>>, vector<512x128xf32>
    tpu.vector_store %arg10[%c0_22, %c0_23], %37 {strides = array<i32>} : memref<512x128xf32, #tpu.memory_space<vmem>>, vector<512x128xf32>,
    return
  }
  func.func @transform_0(%arg0: i32) -> i32 {
    %c0_i32 = arith.constant 0 : i32
    %c0_i32_0 = arith.constant 0 : i32
    return %c0_i32 : i32
  }
  func.func @transform_1(%arg0: i32) -> (i32, i32) {
    %c0_i32 = arith.constant 0 : i32
    %c0_i32_0 = arith.constant 0 : i32
    return %arg0, %c0_i32 : i32, i32
  }
  func.func @transform_2(%arg0: i32) -> (i32, i32) {
    %c0_i32 = arith.constant 0 : i32
    %c0_i32_0 = arith.constant 0 : i32
    %c0_i32_1 = arith.constant 0 : i32
    return %c0_i32, %c0_i32_0 : i32, i32
  }
  func.func @transform_3(%arg0: i32) -> (i32, i32) {
    %c0_i32 = arith.constant 0 : i32
    %c0_i32_0 = arith.constant 0 : i32
    %c0_i32_1 = arith.constant 0 : i32
    return %c0_i32, %c0_i32_0 : i32, i32
  }
  func.func @transform_4(%arg0: i32) -> (i32, i32) {
    %c0_i32 = arith.constant 0 : i32
    %c0_i32_0 = arith.constant 0 : i32
    %c0_i32_1 = arith.constant 0 : i32
    return %c0_i32, %c0_i32_0 : i32, i32
  }
  func.func @transform_5(%arg0: i32) -> (i32, i32) {
    %c0_i32 = arith.constant 0 : i32
    %c0_i32_0 = arith.constant 0 : i32
    %c0_i32_1 = arith.constant 0 : i32
    return %c0_i32, %c0_i32_0 : i32, i32
  }
  func.func @transform_6(%arg0: i32) -> (i32, i32) {
    %c0_i32 = arith.constant 0 : i32
    %c0_i32_0 = arith.constant 0 : i32
    %c0_i32_1 = arith.constant 0 : i32
    return %c0_i32, %c0_i32_0 : i32, i32
  }
  func.func @transform_7(%arg0: i32) -> (i32, i32) {
    %c0_i32 = arith.constant 0 : i32
    %c0_i32_0 = arith.constant 0 : i32
    %c0_i32_1 = arith.constant 0 : i32
    return %c0_i32, %c0_i32_0 : i32, i32
  }
  func.func @transform_8(%arg0: i32) -> (i32, i32) {
    %c0_i32 = arith.constant 0 : i32
    %c0_i32_0 = arith.constant 0 : i32
    %c0_i32_1 = arith.constant 0 : i32
    return %c0_i32, %c0_i32_0 : i32, i32
  }
  func.func @transform_9(%arg0: i32) -> (i32, i32) {
    %c0_i32 = arith.constant 0 : i32
    %c0_i32_0 = arith.constant 0 : i32
    return %arg0, %c0_i32 : i32, i32
  }
}

</mosaic_0001>

<bundles_post_ra>
// kernel: ncsn_forward.1
= control target key start
LH: loop header
LB: loop body
LE: loop exit
PB: predicated region body
PF: predicated region fallthrough
CT: control target
= control target key end

     0   :  { %vm147_vm0 = vcmask 130048   ;;  %s5895_s2 = inlined_call_operand.vmem [shape: bf16[16,128], index: 2, kind: input, shape index: {}]   ;;  %s5896_s1 = inlined_call_operand.vmem [shape: f32[512,16], index: 1, kind: input, shape index: {}]   ;;  %s5897_s5 = inlined_call_operand.vmem [shape: bf16[128,128], index: 5, kind: input, shape index: {}]   ;;  %s5898_s0 = inlined_call_operand.<no memory space> [shape: f32[1], index: 0, kind: input, shape index: {}]   ;;  %s5899_s3 = inlined_call_operand.vmem [shape: f32[1,128], index: 3, kind: input, shape index: {}]   ;;  %s5900_s4 = inlined_call_operand.vmem [shape: f32[1,128], index: 4, kind: input, shape index: {}]   ;;  %s5901_s6 = inlined_call_operand.vmem [shape: f32[1,128], index: 6, kind: input, shape index: {}]   ;;  %s5902_s7 = inlined_call_operand.vmem [shape: bf16[128,128], index: 7, kind: input, shape index: {}]   ;;  %s5903_s8 = inlined_call_operand.vmem [shape: f32[1,128], index: 8, kind: input, shape index: {}]   ;;  %s5904_s9 = inlined_call_operand.vmem [shape: f32[512,128], index: 9, kind: output, shape index: {}]  }
   0x1   :  { %v2911_v0 = vld [vmem:[%s5895_s2] sm:$0xff]  ;;  %v36_v2 = vld [vmem:[%s5896_s1 + $0x8] sm:$0xff]  ;;  %v37_v4 = vld [vmem:[%s5896_s1 + $0x10] sm:$0xff]  ;;  %v134_v30 = vstv %s5898_s0 }
   0x2   :  { %v35_v1 = vld [vmem:[%s5896_s1] sm:$0xff]  ;;  %251 = vmatpush.bf16.msra.mxu0 %v2911_v0  ;;  %2928 = vmatpush.bf16.msra.mxu3 %v2911_v0  ;;  %v38_v5 = vld [vmem:[%s5896_s1 + $0x18] sm:$0xff]  ;;  %v40_v8 = vld [vmem:[%s5896_s1 + $0x28] sm:$0xff] }
   0x3   :  { %v99_v3 = vpack.c.bf16 %v36_v2, %v35_v1  ;;  %v100_v6 = vpack.c.bf16 %v38_v5, %v37_v4  ;;  %v39_v7 = vld [vmem:[%s5896_s1 + $0x20] sm:$0xff]  ;;  %v41_v10 = vld [vmem:[%s5896_s1 + $0x30] sm:$0xff]  ;;  %v42_v11 = vld [vmem:[%s5896_s1 + $0x38] sm:$0xff] }
   0x4   :  { %v101_v9 = vpack.c.bf16 %v40_v8, %v39_v7  ;;  %v102_v12 = vpack.c.bf16 %v42_v11, %v41_v10  ;;  %v43_v13 = vld [vmem:[%s5896_s1 + $0x40] sm:$0xff]  ;;  %v44_v14 = vld [vmem:[%s5896_s1 + $0x48] sm:$0xff]  ;;  %v45_v16 = vld [vmem:[%s5896_s1 + $0x50] sm:$0xff] }
   0x5   :  { %2815 = vmatmul.msk.bf16.vlgmr.msra.gmra.mxu0 %vm147_vm0, %v99_v3  ;;  %v103_v15 = vpack.c.bf16 %v44_v14, %v43_v13  ;;  %v46_v17 = vld [vmem:[%s5896_s1 + $0x58] sm:$0xff]  ;;  %v47_v19 = vld [vmem:[%s5896_s1 + $0x60] sm:$0xff]  ;;  %v48_v20 = vld [vmem:[%s5896_s1 + $0x68] sm:$0xff] }
   0x6   :  { %v104_v18 = vpack.c.bf16 %v46_v17, %v45_v16  ;;  %v105_v21 = vpack.c.bf16 %v48_v20, %v47_v19  ;;  %v2919_v22 = vld [vmem:[%s5897_s5 + $0x38] sm:$0xff]  ;;  %v2918_v23 = vld [vmem:[%s5897_s5 + $0x30] sm:$0xff]  ;;  %v2917_v26 = vld [vmem:[%s5897_s5 + $0x28] sm:$0xff] }
   0x7   :  { %1409 = vmatpush.bf16.msra.mxu1 %v2919_v22  ;;  %2929 = vmatpush.bf16.msrb.mxu3 %v2919_v22  ;;  %v49_v24 = vld [vmem:[%s5896_s1 + $0x70] sm:$0xff]  ;;  %v50_v25 = vld [vmem:[%s5896_s1 + $0x78] sm:$0xff]  ;;  %v2916_v28 = vld [vmem:[%s5897_s5 + $0x20] sm:$0xff] }
   0x8   :  { %v106_v27 = vpack.c.bf16 %v50_v25, %v49_v24  ;;  %v133_v29 = vld [vmem:[%s5899_s3] sm:$0x1]  ;;  %v2915_v31 = vld [vmem:[%s5897_s5 + $0x18] sm:$0xff]  ;;  %v2914_v34 = vld [vmem:[%s5897_s5 + $0x10] sm:$0xff] }
   0x9   :  { %v135_v32 = vmul.f32 %v134_v30, %v133_v29  ;;  %v136_v33 = vld [vmem:[%s5900_s4] sm:$0x1]  ;;  %v52_v37 = vld [vmem:[%s5896_s1 + $0x88] sm:$0xff]  ;;  %v53_v49 = vld [vmem:[%s5896_s1 + $0x90] sm:$0xff] }
   0xa   :  { %v51_v36 = vld [vmem:[%s5896_s1 + $0x80] sm:$0xff]  ;;  %v2913_v38 = vld [vmem:[%s5897_s5 + $0x8] sm:$0xff]  ;;  %v54_v50 = vld [vmem:[%s5896_s1 + $0x98] sm:$0xff] }
   0xb   :  { %1410 = vmatpush.bf16.msra.mxu1 %v2918_v23  ;;  %2930 = vmatpush.bf16.msrb.mxu3 %v2918_v23  ;;  %v137_v35 = vadd.f32 %v136_v33, %v135_v32  ;;  %v107_v40 = vpack.c.bf16 %v52_v37, %v51_v36  ;;  %v2912_v42 = vld [vmem:[%s5897_s5] sm:$0xff]  ;;  %v108_v54 = vpack.c.bf16 %v54_v50, %v53_v49  ;;  %v57_v37 = vld [vmem:[%s5896_s1 + $0xb0] sm:$0xff] }
   0xc   :  { %v55_v5 = vld [vmem:[%s5896_s1 + $0xa0] sm:$0xff] }
   0xd   :  { %v3610_v39 = vperm.slane %v137_v35, 0 }
   0xf   :  { %1411 = vmatpush.bf16.msra.mxu1 %v2917_v26  ;;  %2931 = vmatpush.bf16.msrb.mxu3 %v2917_v26 }
  0x13   :  { %1412 = vmatpush.bf16.msra.mxu1 %v2916_v28  ;;  %2932 = vmatpush.bf16.msrb.mxu3 %v2916_v28 }
  0x15   :  { %2816 = vmatmul.msk.bf16.gmra.mxu0 %vm147_vm0, %v100_v6  ;;  %v56_v6 = vld [vmem:[%s5896_s1 + $0xa8] sm:$0xff] }
  0x16   :  { %v109_v14 = vpack.c.bf16 %v56_v6, %v55_v5  ;;  %v59_v6 = vld [vmem:[%s5896_s1 + $0xc0] sm:$0xff] }
  0x17   :  { %1413 = vmatpush.bf16.msra.mxu1 %v2915_v31  ;;  %2933 = vmatpush.bf16.msrb.mxu3 %v2915_v31 }
  0x1b   :  { %1414 = vmatpush.bf16.msra.mxu1 %v2914_v34  ;;  %2934 = vmatpush.bf16.msrb.mxu3 %v2914_v34 }
  0x1f   :  { %1415 = vmatpush.bf16.msra.mxu1 %v2913_v38  ;;  %2935 = vmatpush.bf16.msrb.mxu3 %v2913_v38  ;;  %v58_v38 = vld [vmem:[%s5896_s1 + $0xb8] sm:$0xff] }
  0x23   :  { %1416 = vmatpush.bf16.msra.mxu1 %v2912_v42  ;;  %2936 = vmatpush.bf16.msrb.mxu3 %v2912_v42 }
  0x25   :  { %2817 = vmatmul.msk.bf16.gmra.mxu0 %vm147_vm0, %v101_v9 }
  0x35   :  { %2818 = vmatmul.msk.bf16.gmra.mxu0 %vm147_vm0, %v102_v12 }
  0x45   :  { %2819 = vmatmul.msk.bf16.gmra.mxu0 %vm147_vm0, %v103_v15 }
  0x55   :  { %2820 = vmatmul.msk.bf16.gmra.mxu0 %vm147_vm0, %v104_v18 }
  0x65   :  { %2821 = vmatmul.msk.bf16.gmra.mxu0 %vm147_vm0, %v105_v21 }
  0x75   :  { %2822 = vmatmul.msk.bf16.gmra.mxu0 %vm147_vm0, %v106_v27 }
  0x82   :  { %v253_v41 = vpop.f32.mrf.mxu0 }
  0x83   :  { %v254_v43 = vadd.f32 %v253_v41, %v3610_v39 }
  0x85   :  { %v477_v44 = vmin.f32 %v254_v43, 20.0  ;;  %2823 = vmatmul.msk.bf16.gmra.mxu0 %vm147_vm0, %v107_v40  ;;  %vm413_vm3 = vcmp.gt.f32.partialorder %v254_v43, 20.0 }
  0x87   :  { %v541_v45 = vmul.f32 1.442695, %v477_v44 }
  0x89   :  { %2947 = vpow2.f32 %v541_v45 }
  0x8a   :  { %v255_v46 = vpop.f32.mrf.mxu0 }
  0x8b   :  { %v256_v47 = vadd.f32 %v255_v46, %v3610_v39 }
  0x8d   :  { %v478_v48 = vmin.f32 %v256_v47, 20.0  ;;  %vm414_vm4 = vcmp.gt.f32.partialorder %v256_v47, 20.0 }
  0x8f   :  { %v2948_v51 = vpop.eup %2947  ;;  %v543_v52 = vmul.f32 1.442695, %v478_v48 }
  0x90   :  { %v669_v53 = vadd.f32 1.0, %v2948_v51  ;;  %v672_v60 = vmul.f32 -0.5, %v2948_v51  ;;  %v675_v3 = vand.u32 2147483647, %v2948_v51 }
  0x91   :  { %2949 = vpow2.f32 %v543_v52 }
  0x92   :  { %v258_v55 = vpop.f32.mrf.mxu0  ;;  %2951 = vlog2.f32 %v669_v53  ;;  %v673_v2 = vadd.f32 1.0, %v672_v60  ;;  %vm676_vm1 = vcmp.lt.f32.partialorder %v675_v3, 0.0004427343 }
  0x93   :  { %v3625_v56 = vadd.f32 %v258_v55, %v3610_v39 }
  0x94   :  { %v674_v12 = vmul.f32 %v2948_v51, %v673_v2 }
  0x95   :  { %v479_v57 = vmin.f32 %v3625_v56, 20.0  ;;  %2824 = vmatmul.msk.bf16.gmra.mxu0 %vm147_vm0, %v108_v54  ;;  %vm415_vm7 = vcmp.gt.f32.partialorder %v3625_v56, 20.0 }
  0x97   :  { %v2950_v58 = vpop.eup %2949  ;;  %v545_v59 = vmul.f32 1.442695, %v479_v57 }
  0x98   :  { %v678_v61 = vadd.f32 1.0, %v2950_v58  ;;  %v681_v62 = vmul.f32 -0.5, %v2950_v58  ;;  %v2952_v63 = vpop.eup %2951  ;;  %v684_v9 = vand.u32 2147483647, %v2950_v58 }
  0x99   :  { %2953 = vpow2.f32 %v545_v59  ;;  %v671_v7 = vmul.f32 0.6931472, %v2952_v63 }
  0x9a   :  { %v260_v0 = vpop.f32.mrf.mxu0  ;;  %2955 = vlog2.f32 %v678_v61  ;;  %v682_v8 = vadd.f32 1.0, %v681_v62  ;;  %vm685_vm2 = vcmp.lt.f32.partialorder %v684_v9, 0.0004427343 }
  0x9b   :  { %v3630_v1 = vadd.f32 %v260_v0, %v3610_v39  ;;  %v677_v16 = vsel %vm676_vm1, %v674_v12, %v671_v7  ;;  %v60_v7 = vld [vmem:[%s5896_s1 + $0xc8] sm:$0xff] }
  0x9c   :  { %v683_v18 = vmul.f32 %v2950_v58, %v682_v8  ;;  %v1245_v22 = vsel %vm413_vm3, %v254_v43, %v677_v16 }
  0x9d   :  { %v480_v4 = vmin.f32 %v3630_v1, 20.0  ;;  %vm416_vm8 = vcmp.gt.f32.partialorder %v3630_v1, 20.0 }
  0x9f   :  { %v2954_v10 = vpop.eup %2953  ;;  %v547_v11 = vmul.f32 1.442695, %v480_v4 }
  0xa0   :  { %v2956_v13 = vpop.eup %2955  ;;  %v687_v15 = vadd.f32 1.0, %v2954_v10  ;;  %v690_v28 = vmul.f32 -0.5, %v2954_v10  ;;  %v693_v35 = vand.u32 2147483647, %v2954_v10 }
  0xa1   :  { %2957 = vpow2.f32 %v547_v11  ;;  %v680_v17 = vmul.f32 0.6931472, %v2956_v13 }
  0xa2   :  { %v263_v19 = vpop.f32.mrf.mxu0  ;;  %2959 = vlog2.f32 %v687_v15  ;;  %v691_v34 = vadd.f32 1.0, %v690_v28  ;;  %vm694_vm5 = vcmp.lt.f32.partialorder %v693_v35, 0.0004427343  ;;  %v111_v15 = vpack.c.bf16 %v60_v7, %v59_v6  ;;  %v63_v7 = vld [vmem:[%s5896_s1 + $0xe0] sm:$0xff] }
  0xa3   :  { %v3640_v20 = vadd.f32 %v263_v19, %v3610_v39  ;;  %v686_v21 = vsel %vm685_vm2, %v683_v18, %v680_v17 }
  0xa4   :  { %v1246_v23 = vsel %vm414_vm4, %v256_v47, %v686_v21  ;;  %v692_v45 = vmul.f32 %v2954_v10, %v691_v34  ;;  %v110_v47 = vpack.c.bf16 %v58_v38, %v57_v37  ;;  %v61_v38 = vld [vmem:[%s5896_s1 + $0xd0] sm:$0xff] }
  0xa5   :  { %v481_v24 = vmin.f32 %v3640_v20, 20.0  ;;  %2825 = vmatmul.msk.bf16.gmra.mxu0 %vm147_vm0, %v109_v14  ;;  %v1309_v25 = vpack.c.bf16 %v1246_v23, %v1245_v22  ;;  %vm417_vm11 = vcmp.gt.f32.partialorder %v3640_v20, 20.0 }
  0xa7   :  { %v2958_v26 = vpop.eup %2957  ;;  %v549_v27 = vmul.f32 1.442695, %v481_v24  ;;  %1417 = vmatmul.bf16.vlgmr.msra.gmra.mxu1 %v1309_v25 }
  0xa8   :  { %v696_v29 = vadd.f32 1.0, %v2958_v26  ;;  %v699_v30 = vmul.f32 -0.5, %v2958_v26  ;;  %v2960_v31 = vpop.eup %2959  ;;  %v702_v42 = vand.u32 2147483647, %v2958_v26 }
  0xa9   :  { %2961 = vpow2.f32 %v549_v27  ;;  %v689_v40 = vmul.f32 0.6931472, %v2960_v31 }
  0xaa   :  { %v265_v32 = vpop.f32.mrf.mxu0  ;;  %2963 = vlog2.f32 %v696_v29  ;;  %v700_v41 = vadd.f32 1.0, %v699_v30  ;;  %vm703_vm6 = vcmp.lt.f32.partialorder %v702_v42, 0.0004427343 }
  0xab   :  { %v3645_v33 = vadd.f32 %v265_v32, %v3610_v39  ;;  %v695_v49 = vsel %vm694_vm5, %v692_v45, %v689_v40  ;;  %v62_v40 = vld [vmem:[%s5896_s1 + $0xd8] sm:$0xff] }
  0xac   :  { %v701_v51 = vmul.f32 %v2958_v26, %v700_v41  ;;  %v1247_v55 = vsel %vm415_vm7, %v3625_v56, %v695_v49 }
  0xad   :  { %v482_v36 = vmin.f32 %v3645_v33, 20.0  ;;  %vm418_vm12 = vcmp.gt.f32.partialorder %v3645_v33, 20.0 }
  0xaf   :  { %v2962_v43 = vpop.eup %2961  ;;  %v551_v44 = vmul.f32 1.442695, %v482_v36 }
  0xb0   :  { %v2964_v46 = vpop.eup %2963  ;;  %v705_v48 = vadd.f32 1.0, %v2962_v43  ;;  %v708_v62 = vmul.f32 -0.5, %v2962_v43  ;;  %v711_v4 = vand.u32 2147483647, %v2962_v43 }
  0xb1   :  { %2965 = vpow2.f32 %v551_v44  ;;  %v698_v50 = vmul.f32 0.6931472, %v2964_v46 }
  0xb2   :  { %v268_v52 = vpop.f32.mrf.mxu0  ;;  %2967 = vlog2.f32 %v705_v48  ;;  %vm712_vm9 = vcmp.lt.f32.partialorder %v711_v4, 0.0004427343  ;;  %v112_v48 = vpack.c.bf16 %v62_v40, %v61_v38  ;;  %v65_v40 = vld [vmem:[%s5896_s1 + $0xf0] sm:$0xff] }
  0xb3   :  { %v3655_v53 = vadd.f32 %v268_v52, %v3610_v39  ;;  %v704_v54 = vsel %vm703_vm6, %v701_v51, %v698_v50 }
  0xb4   :  { %v1248_v57 = vsel %vm416_vm8, %v3630_v1, %v704_v54  ;;  %v709_v1 = vadd.f32 1.0, %v708_v62 }
  0xb5   :  { %v483_v58 = vmin.f32 %v3655_v53, 20.0  ;;  %2826 = vmatmul.msk.bf16.gmra.mxu0 %vm147_vm0, %v110_v47  ;;  %v1310_v59 = vpack.c.bf16 %v1248_v57, %v1247_v55  ;;  %vm419_vm15 = vcmp.gt.f32.partialorder %v3655_v53, 20.0 }
  0xb6   :  { %v710_v13 = vmul.f32 %v2962_v43, %v709_v1 }
  0xb7   :  { %v2966_v60 = vpop.eup %2965  ;;  %v553_v61 = vmul.f32 1.442695, %v483_v58  ;;  %1422 = vmatmul.bf16.gmra.mxu1 %v1310_v59 }
  0xb8   :  { %v714_v63 = vadd.f32 1.0, %v2966_v60  ;;  %v717_v0 = vmul.f32 -0.5, %v2966_v60  ;;  %v2968_v2 = vpop.eup %2967  ;;  %v720_v10 = vand.u32 2147483647, %v2966_v60 }
  0xb9   :  { %2969 = vpow2.f32 %v553_v61  ;;  %v707_v8 = vmul.f32 0.6931472, %v2968_v2 }
  0xba   :  { %v270_v3 = vpop.f32.mrf.mxu0  ;;  %2971 = vlog2.f32 %v714_v63  ;;  %v718_v9 = vadd.f32 1.0, %v717_v0  ;;  %vm721_vm10 = vcmp.lt.f32.partialorder %v720_v10, 0.0004427343 }
  0xbb   :  { %v3664_v56 = vadd.f32 %v270_v3, %v3610_v39  ;;  %v713_v17 = vsel %vm712_vm9, %v710_v13, %v707_v8  ;;  %v64_v8 = vld [vmem:[%s5896_s1 + $0xe8] sm:$0xff] }
  0xbc   :  { %v719_v19 = vmul.f32 %v2966_v60, %v718_v9  ;;  %v1249_v24 = vsel %vm417_vm11, %v3640_v20, %v713_v17 }
  0xbd   :  { %v484_v5 = vmin.f32 %v3664_v56, 20.0  ;;  %vm420_vm1 = vcmp.gt.f32.partialorder %v3664_v56, 20.0 }
  0xbf   :  { %v2970_v11 = vpop.eup %2969  ;;  %v555_v12 = vmul.f32 1.442695, %v484_v5 }
  0xc0   :  { %v2972_v14 = vpop.eup %2971  ;;  %v723_v16 = vadd.f32 1.0, %v2970_v11  ;;  %v726_v30 = vmul.f32 -0.5, %v2970_v11  ;;  %v729_v36 = vand.u32 2147483647, %v2970_v11 }
  0xc1   :  { %2973 = vpow2.f32 %v555_v12  ;;  %v716_v18 = vmul.f32 0.6931472, %v2972_v14 }
  0xc2   :  { %v273_v21 = vpop.f32.mrf.mxu0  ;;  %2975 = vlog2.f32 %v723_v16  ;;  %vm730_vm13 = vcmp.lt.f32.partialorder %v729_v36, 0.0004427343  ;;  %v113_v16 = vpack.c.bf16 %v64_v8, %v63_v7  ;;  %v67_v8 = vld [vmem:[%s5896_s1 + $0x100] sm:$0xff] }
  0xc3   :  { %v3674_v22 = vadd.f32 %v273_v21, %v3610_v39  ;;  %v722_v23 = vsel %vm721_vm10, %v719_v19, %v716_v18 }
  0xc4   :  { %v1250_v25 = vsel %vm418_vm12, %v3645_v33, %v722_v23  ;;  %v727_v33 = vadd.f32 1.0, %v726_v30 }
  0xc5   :  { %v485_v26 = vmin.f32 %v3674_v22, 20.0  ;;  %2827 = vmatmul.msk.bf16.gmra.mxu0 %vm147_vm0, %v111_v15  ;;  %v1311_v27 = vpack.c.bf16 %v1250_v25, %v1249_v24  ;;  %vm421_vm4 = vcmp.gt.f32.partialorder %v3674_v22, 20.0 }
  0xc6   :  { %v728_v46 = vmul.f32 %v2970_v11, %v727_v33 }
  0xc7   :  { %v2974_v28 = vpop.eup %2973  ;;  %v557_v29 = vmul.f32 1.442695, %v485_v26  ;;  %1427 = vmatmul.bf16.gmra.mxu1 %v1311_v27 }
  0xc8   :  { %v732_v31 = vadd.f32 1.0, %v2974_v28  ;;  %v735_v32 = vmul.f32 -0.5, %v2974_v28  ;;  %v2976_v34 = vpop.eup %2975  ;;  %v738_v43 = vand.u32 2147483647, %v2974_v28 }
  0xc9   :  { %2977 = vpow2.f32 %v557_v29  ;;  %v725_v41 = vmul.f32 0.6931472, %v2976_v34 }
  0xca   :  { %v275_v35 = vpop.f32.mrf.mxu0  ;;  %2979 = vlog2.f32 %v732_v31  ;;  %v736_v42 = vadd.f32 1.0, %v735_v32  ;;  %vm739_vm14 = vcmp.lt.f32.partialorder %v738_v43, 0.0004427343 }
  0xcb   :  { %v3683_v20 = vadd.f32 %v275_v35, %v3610_v39  ;;  %v731_v50 = vsel %vm730_vm13, %v728_v46, %v725_v41  ;;  %v66_v41 = vld [vmem:[%s5896_s1 + $0xf8] sm:$0xff] }
  0xcc   :  { %v737_v52 = vmul.f32 %v2974_v28, %v736_v42  ;;  %v1251_v58 = vsel %vm419_vm15, %v3655_v53, %v731_v50 }
  0xcd   :  { %v486_v37 = vmin.f32 %v3683_v20, 20.0  ;;  %vm422_vm5 = vcmp.gt.f32.partialorder %v3683_v20, 20.0 }
  0xcf   :  { %v2978_v44 = vpop.eup %2977  ;;  %v559_v45 = vmul.f32 1.442695, %v486_v37 }
  0xd0   :  { %v2980_v47 = vpop.eup %2979  ;;  %v741_v49 = vadd.f32 1.0, %v2978_v44  ;;  %v744_v0 = vmul.f32 -0.5, %v2978_v44  ;;  %v747_v5 = vand.u32 2147483647, %v2978_v44 }
  0xd1   :  { %2981 = vpow2.f32 %v559_v45  ;;  %v734_v51 = vmul.f32 0.6931472, %v2980_v47 }
  0xd2   :  { %v278_v54 = vpop.f32.mrf.mxu0  ;;  %2983 = vlog2.f32 %v741_v49  ;;  %vm748_vm2 = vcmp.lt.f32.partialorder %v747_v5, 0.0004427343  ;;  %v114_v49 = vpack.c.bf16 %v66_v41, %v65_v40  ;;  %v3770_v41 = vld [vmem:[%s5902_s7 + $0x30] sm:$0xff] }
  0xd3   :  { %v3693_v55 = vadd.f32 %v278_v54, %v3610_v39  ;;  %v740_v57 = vsel %vm739_vm14, %v737_v52, %v734_v51 }
  0xd4   :  { %v1252_v59 = vsel %vm420_vm1, %v3664_v56, %v740_v57  ;;  %v745_v56 = vadd.f32 1.0, %v744_v0 }
  0xd5   :  { %v487_v60 = vmin.f32 %v3693_v55, 20.0  ;;  %2828 = vmatmul.msk.bf16.gmra.mxu0 %vm147_vm0, %v112_v48  ;;  %v1312_v61 = vpack.c.bf16 %v1252_v59, %v1251_v58  ;;  %vm423_vm8 = vcmp.gt.f32.partialorder %v3693_v55, 20.0 }
  0xd6   :  { %v746_v14 = vmul.f32 %v2978_v44, %v745_v56 }
  0xd7   :  { %v2982_v62 = vpop.eup %2981  ;;  %v561_v63 = vmul.f32 1.442695, %v487_v60  ;;  %1432 = vmatmul.bf16.gmra.mxu1 %v1312_v61 }
  0xd8   :  { %v750_v2 = vadd.f32 1.0, %v2982_v62  ;;  %v753_v3 = vmul.f32 -0.5, %v2982_v62  ;;  %v2984_v1 = vpop.eup %2983  ;;  %v756_v11 = vand.u32 2147483647, %v2982_v62 }
  0xd9   :  { %2985 = vpow2.f32 %v561_v63  ;;  %v743_v9 = vmul.f32 0.6931472, %v2984_v1 }
  0xda   :  { %v280_v4 = vpop.f32.mrf.mxu0  ;;  %2987 = vlog2.f32 %v750_v2  ;;  %v754_v10 = vadd.f32 1.0, %v753_v3  ;;  %vm757_vm3 = vcmp.lt.f32.partialorder %v756_v11, 0.0004427343 }
  0xdb   :  { %v3702_v53 = vadd.f32 %v280_v4, %v3610_v39  ;;  %v749_v18 = vsel %vm748_vm2, %v746_v14, %v743_v9  ;;  %v68_v9 = vld [vmem:[%s5896_s1 + $0x108] sm:$0xff] }
  0xdc   :  { %v755_v21 = vmul.f32 %v2982_v62, %v754_v10  ;;  %v1253_v26 = vsel %vm421_vm4, %v3674_v22, %v749_v18 }
  0xdd   :  { %v488_v6 = vmin.f32 %v3702_v53, 20.0  ;;  %vm424_vm9 = vcmp.gt.f32.partialorder %v3702_v53, 20.0 }
  0xdf   :  { %v2986_v12 = vpop.eup %2985  ;;  %v563_v13 = vmul.f32 1.442695, %v488_v6 }
  0xe0   :  { %v2988_v15 = vpop.eup %2987  ;;  %v759_v17 = vadd.f32 1.0, %v2986_v12  ;;  %v762_v32 = vmul.f32 -0.5, %v2986_v12  ;;  %v765_v37 = vand.u32 2147483647, %v2986_v12 }
  0xe1   :  { %2989 = vpow2.f32 %v563_v13  ;;  %v752_v19 = vmul.f32 0.6931472, %v2988_v15 }
  0xe2   :  { %v283_v23 = vpop.f32.mrf.mxu0  ;;  %2991 = vlog2.f32 %v759_v17  ;;  %vm766_vm6 = vcmp.lt.f32.partialorder %v765_v37, 0.0004427343  ;;  %v115_v17 = vpack.c.bf16 %v68_v9, %v67_v8 }
  0xe3   :  { %v3712_v24 = vadd.f32 %v283_v23, %v3610_v39  ;;  %v758_v25 = vsel %vm757_vm3, %v755_v21, %v752_v19 }
  0xe4   :  { %v1254_v27 = vsel %vm422_vm5, %v3683_v20, %v758_v25  ;;  %v763_v20 = vadd.f32 1.0, %v762_v32 }
  0xe5   :  { %v489_v28 = vmin.f32 %v3712_v24, 20.0  ;;  %2829 = vmatmul.msk.bf16.gmra.mxu0 %vm147_vm0, %v113_v16  ;;  %v1313_v29 = vpack.c.bf16 %v1254_v27, %v1253_v26  ;;  %vm425_vm12 = vcmp.gt.f32.partialorder %v3712_v24, 20.0 }
  0xe6   :  { %v764_v47 = vmul.f32 %v2986_v12, %v763_v20 }
  0xe7   :  { %v2990_v30 = vpop.eup %2989  ;;  %v565_v31 = vmul.f32 1.442695, %v489_v28  ;;  %1437 = vmatmul.bf16.gmra.mxu1 %v1313_v29 }
  0xe8   :  { %v768_v34 = vadd.f32 1.0, %v2990_v30  ;;  %v771_v35 = vmul.f32 -0.5, %v2990_v30  ;;  %v2992_v33 = vpop.eup %2991  ;;  %v774_v44 = vand.u32 2147483647, %v2990_v30 }
  0xe9   :  { %2993 = vpow2.f32 %v565_v31  ;;  %v761_v42 = vmul.f32 0.6931472, %v2992_v33 }
  0xea   :  { %v285_v36 = vpop.f32.mrf.mxu0  ;;  %2995 = vlog2.f32 %v768_v34  ;;  %v772_v43 = vadd.f32 1.0, %v771_v35  ;;  %vm775_vm7 = vcmp.lt.f32.partialorder %v774_v44, 0.0004427343  ;;  %v70_v44 = vld [vmem:[%s5896_s1 + $0x118] sm:$0xff] }
  0xeb   :  { %v3721_v22 = vadd.f32 %v285_v36, %v3610_v39  ;;  %v767_v51 = vsel %vm766_vm6, %v764_v47, %v761_v42  ;;  %v3761_v36 = vld [vmem:[%s5902_s7 + $0x38] sm:$0xff] }
  0xec   :  { %v773_v54 = vmul.f32 %v2990_v30, %v772_v43  ;;  %v1255_v60 = vsel %vm423_vm8, %v3693_v55, %v767_v51  ;;  %2574 = vmatpush.bf16.msra.mxu2 %v3761_v36  ;;  %v69_v43 = vld [vmem:[%s5896_s1 + $0x110] sm:$0xff] }
  0xed   :  { %v490_v38 = vmin.f32 %v3721_v22, 20.0  ;;  %vm426_vm13 = vcmp.gt.f32.partialorder %v3721_v22, 20.0 }
  0xef   :  { %v2994_v45 = vpop.eup %2993  ;;  %v567_v46 = vmul.f32 1.442695, %v490_v38 }
  0xf0   :  { %v2996_v48 = vpop.eup %2995  ;;  %v777_v50 = vadd.f32 1.0, %v2994_v45  ;;  %v780_v3 = vmul.f32 -0.5, %v2994_v45  ;;  %v783_v6 = vand.u32 2147483647, %v2994_v45  ;;  %2575 = vmatpush.bf16.msra.mxu2 %v3770_v41 }
  0xf1   :  { %2997 = vpow2.f32 %v567_v46  ;;  %v770_v52 = vmul.f32 0.6931472, %v2996_v48 }
  0xf2   :  { %v288_v57 = vpop.f32.mrf.mxu0  ;;  %2999 = vlog2.f32 %v777_v50  ;;  %vm784_vm10 = vcmp.lt.f32.partialorder %v783_v6, 0.0004427343 }
  0xf3   :  { %v3731_v58 = vadd.f32 %v288_v57, %v3610_v39  ;;  %v776_v59 = vsel %vm775_vm7, %v773_v54, %v770_v52  ;;  %v116_v52 = vpack.c.bf16 %v70_v44, %v69_v43  ;;  %v3783_v57 = vld [vmem:[%s5902_s7 + $0x28] sm:$0xff]  ;;  %v3850_v43 = vld [vmem:[%s5902_s7] sm:$0xff] }
  0xf4   :  { %v1256_v61 = vsel %vm424_vm9, %v3702_v53, %v776_v59  ;;  %v781_v53 = vadd.f32 1.0, %v780_v3  ;;  %2576 = vmatpush.bf16.msra.mxu2 %v3783_v57 }
  0xf5   :  { %v491_v62 = vmin.f32 %v3731_v58, 20.0  ;;  %2830 = vmatmul.msk.bf16.gmra.mxu0 %vm147_vm0, %v114_v49  ;;  %v1314_v63 = vpack.c.bf16 %v1256_v61, %v1255_v60  ;;  %vm427_vm1 = vcmp.gt.f32.partialorder %v3731_v58, 20.0 }
  0xf6   :  { %v782_v15 = vmul.f32 %v2994_v45, %v781_v53 }
  0xf7   :  { %v2998_v0 = vpop.eup %2997  ;;  %v569_v2 = vmul.f32 1.442695, %v491_v62  ;;  %1442 = vmatmul.bf16.gmra.mxu1 %v1314_v63 }
  0xf8   :  { %v786_v1 = vadd.f32 1.0, %v2998_v0  ;;  %v789_v4 = vmul.f32 -0.5, %v2998_v0  ;;  %v3000_v56 = vpop.eup %2999  ;;  %v792_v12 = vand.u32 2147483647, %v2998_v0 }
  0xf9   :  { %3001 = vpow2.f32 %v569_v2  ;;  %v779_v10 = vmul.f32 0.6931472, %v3000_v56 }
  0xfa   :  { %v290_v5 = vpop.f32.mrf.mxu0  ;;  %3003 = vlog2.f32 %v786_v1  ;;  %v790_v11 = vadd.f32 1.0, %v789_v4  ;;  %vm793_vm11 = vcmp.lt.f32.partialorder %v792_v12, 0.0004427343  ;;  %v3796_v1 = vld [vmem:[%s5902_s7 + $0x20] sm:$0xff] }
  0xfb   :  { %v3740_v55 = vadd.f32 %v290_v5, %v3610_v39  ;;  %v785_v19 = vsel %vm784_vm10, %v782_v15, %v779_v10  ;;  %2577 = vmatpush.bf16.msra.mxu2 %v3796_v1  ;;  %v71_v15 = vld [vmem:[%s5896_s1 + $0x120] sm:$0xff] }
  0xfc   :  { %v791_v23 = vmul.f32 %v2998_v0, %v790_v11  ;;  %v1257_v28 = vsel %vm425_vm12, %v3712_v24, %v785_v19 }
  0xfd   :  { %v492_v7 = vmin.f32 %v3740_v55, 20.0  ;;  %vm428_vm2 = vcmp.gt.f32.partialorder %v3740_v55, 20.0 }
  0xff   :  { %v3002_v13 = vpop.eup %3001  ;;  %v571_v14 = vmul.f32 1.442695, %v492_v7 }
 0x100   :  { %v3004_v16 = vpop.eup %3003  ;;  %v795_v18 = vadd.f32 1.0, %v3002_v13  ;;  %v798_v35 = vmul.f32 -0.5, %v3002_v13  ;;  %v801_v40 = vand.u32 2147483647, %v3002_v13 }
 0x101   :  { %3005 = vpow2.f32 %v571_v14  ;;  %v788_v21 = vmul.f32 0.6931472, %v3004_v16  ;;  %v72_v16 = vld [vmem:[%s5896_s1 + $0x128] sm:$0xff] }
 0x102   :  { %v293_v25 = vpop.f32.mrf.mxu0  ;;  %3007 = vlog2.f32 %v795_v18  ;;  %v799_v38 = vadd.f32 1.0, %v798_v35  ;;  %vm802_vm14 = vcmp.lt.f32.partialorder %v801_v40, 0.0004427343 }
 0x103   :  { %v3750_v26 = vadd.f32 %v293_v25, %v3610_v39  ;;  %v794_v27 = vsel %vm793_vm11, %v791_v23, %v788_v21 }
 0x104   :  { %v1258_v29 = vsel %vm426_vm13, %v3721_v22, %v794_v27  ;;  %v800_v50 = vmul.f32 %v3002_v13, %v799_v38  ;;  %v3813_v13 = vld [vmem:[%s5902_s7 + $0x10] sm:$0xff] }
 0x105   :  { %v493_v30 = vmin.f32 %v3750_v26, 20.0  ;;  %2831 = vmatmul.msk.bf16.gmra.mxu0 %vm147_vm0, %v115_v17  ;;  %v1315_v31 = vpack.c.bf16 %v1258_v29, %v1257_v28  ;;  %v117_v28 = vpack.c.bf16 %v72_v16, %v71_v15  ;;  %vm429_vm4 = vcmp.gt.f32.partialorder %v3750_v26, 20.0 }
 0x107   :  { %v3006_v32 = vpop.eup %3005  ;;  %v573_v34 = vmul.f32 1.442695, %v493_v30  ;;  %1447 = vmatmul.bf16.gmra.mxu1 %v1315_v31  ;;  %v3830_v31 = vld [vmem:[%s5902_s7 + $0x8] sm:$0xff] }
 0x108   :  { %v804_v33 = vadd.f32 1.0, %v3006_v32  ;;  %v807_v24 = vmul.f32 -0.5, %v3006_v32  ;;  %v3008_v20 = vpop.eup %3007  ;;  %v810_v47 = vand.u32 2147483647, %v3006_v32 }
 0x109   :  { %3009 = vpow2.f32 %v573_v34  ;;  %v797_v45 = vmul.f32 0.6931472, %v3008_v20 }
 0x10a   :  { %v295_v22 = vpop.f32.mrf.mxu0  ;;  %3011 = vlog2.f32 %v804_v33  ;;  %v808_v46 = vadd.f32 1.0, %v807_v24  ;;  %vm811_vm15 = vcmp.lt.f32.partialorder %v810_v47, 0.0004427343 }
 0x10b   :  { %v3765_v37 = vadd.f32 %v295_v22, %v3610_v39  ;;  %v803_v59 = vsel %vm802_vm14, %v800_v50, %v797_v45 }
 0x10c   :  { %v809_v61 = vmul.f32 %v3006_v32, %v808_v46  ;;  %v1259_v2 = vsel %vm427_vm1, %v3731_v58, %v803_v59  ;;  %v3835_v32 = vld [vmem:[%s5901_s6] ss:$0 sm:$0xff] }
 0x10d   :  { %v494_v42 = vmin.f32 %v3765_v37, 20.0  ;;  %vm430_vm6 = vcmp.gt.f32.partialorder %v3765_v37, 20.0 }
 0x10f   :  { %v3010_v48 = vpop.eup %3009  ;;  %v575_v49 = vmul.f32 1.442695, %v494_v42 }
 0x110   :  { %v3012_v51 = vpop.eup %3011  ;;  %v813_v54 = vadd.f32 1.0, %v3010_v48  ;;  %v816_v6 = vmul.f32 -0.5, %v3010_v48  ;;  %v819_v12 = vand.u32 2147483647, %v3010_v48 }
 0x111   :  { %3013 = vpow2.f32 %v575_v49  ;;  %v806_v60 = vmul.f32 0.6931472, %v3012_v51 }
 0x112   :  { %v298_v62 = vpop.f32.mrf.mxu0  ;;  %3015 = vlog2.f32 %v813_v54  ;;  %v817_v11 = vadd.f32 1.0, %v816_v6  ;;  %vm3823_vm3 = vcmp.lt.f32.partialorder %v819_v12, 0.0004427343 }
 0x113   :  { %v3787_v63 = vadd.f32 %v298_v62, %v3610_v39  ;;  %v812_v0 = vsel %vm811_vm15, %v809_v61, %v806_v60 }
 0x114   :  { %v1260_v3 = vsel %vm428_vm2, %v3740_v55, %v812_v0  ;;  %v3804_v55 = vld [vmem:[%s5902_s7 + $0x18] sm:$0xff]  ;;  %v818_v25 = vmul.f32 %v3010_v48, %v817_v11 }
 0x115   :  { %v495_v4 = vmin.f32 %v3787_v63, 20.0  ;;  %2832 = vmatmul.msk.bf16.gmra.mxu0 %vm147_vm0, %v116_v52  ;;  %v1316_v56 = vpack.c.bf16 %v1260_v3, %v1259_v2  ;;  %2578 = vmatpush.bf16.msra.mxu2 %v3804_v55  ;;  %vm431_vm8 = vcmp.gt.f32.partialorder %v3787_v63, 20.0 }
 0x117   :  { %v3014_v5 = vpop.eup %3013  ;;  %v577_v53 = vmul.f32 1.442695, %v495_v4  ;;  %1452 = vmatmul.bf16.gmra.mxu1 %v1316_v56  ;;  %v73_v4 = vld [vmem:[%s5896_s1 + $0x130] sm:$0xff]  ;;  %v74_v56 = vld [vmem:[%s5896_s1 + $0x138] sm:$0xff] }
 0x118   :  { %v822_v58 = vadd.f32 1.0, %v3014_v5  ;;  %v825_v7 = vmul.f32 -0.5, %v3014_v5  ;;  %v3016_v8 = vpop.eup %3015  ;;  %v828_v19 = vand.u32 2147483647, %v3014_v5  ;;  %v118_v12 = vpack.c.bf16 %v74_v56, %v73_v4 }
 0x119   :  { %3017 = vpow2.f32 %v577_v53  ;;  %v815_v17 = vmul.f32 0.6931472, %v3016_v8  ;;  %2579 = vmatpush.bf16.msra.mxu2 %v3813_v13 }
 0x11a   :  { %v300_v9 = vpop.f32.mrf.mxu0  ;;  %3019 = vlog2.f32 %v822_v58  ;;  %v826_v18 = vadd.f32 1.0, %v825_v7  ;;  %vm829_vm5 = vcmp.lt.f32.partialorder %v828_v19, 0.0004427343 }
 0x11b   :  { %v3808_v10 = vadd.f32 %v300_v9, %v3610_v39  ;;  %v821_v34 = vsel %vm3823_vm3, %v818_v25, %v815_v17 }
 0x11c   :  { %v827_v33 = vmul.f32 %v3014_v5, %v826_v18  ;;  %v1261_v40 = vsel %vm429_vm4, %v3750_v26, %v821_v34 }
 0x11d   :  { %v496_v14 = vmin.f32 %v3808_v10, 20.0  ;;  %2580 = vmatpush.bf16.msra.mxu2 %v3830_v31  ;;  %vm432_vm10 = vcmp.gt.f32.partialorder %v3808_v10, 20.0 }
 0x11f   :  { %v3018_v21 = vpop.eup %3017  ;;  %v579_v23 = vmul.f32 1.442695, %v496_v14 }
 0x120   :  { %v3020_v27 = vpop.eup %3019  ;;  %v831_v30 = vadd.f32 1.0, %v3018_v21  ;;  %v834_v47 = vmul.f32 -0.5, %v3018_v21  ;;  %v837_v61 = vand.u32 2147483647, %v3018_v21 }
 0x121   :  { %3021 = vpow2.f32 %v579_v23  ;;  %v824_v35 = vmul.f32 0.6931472, %v3020_v27  ;;  %2581 = vmatpush.bf16.msra.mxu2 %v3850_v43 }
 0x122   :  { %v303_v24 = vpop.f32.mrf.mxu0  ;;  %3023 = vlog2.f32 %v831_v30  ;;  %v835_v59 = vadd.f32 1.0, %v834_v47  ;;  %vm3875_vm7 = vcmp.lt.f32.partialorder %v837_v61, 0.0004427343 }
 0x123   :  { %v3842_v20 = vadd.f32 %v303_v24, %v3610_v39  ;;  %v830_v22 = vsel %vm829_vm5, %v827_v33, %v824_v35  ;;  %v3900_v24 = vld [vmem:[%s5896_s1 + $0x140] sm:$0xff] }
 0x124   :  { %v1418_v38 = vpop.f32.mrf.mxu1  ;;  %v1262_v42 = vsel %vm430_vm6, %v3765_v37, %v830_v22  ;;  %v836_v53 = vmul.f32 %v3018_v21, %v835_v59 }
 0x125   :  { %v497_v44 = vmin.f32 %v3842_v20, 20.0  ;;  %v3854_v45 = vadd.f32 %v3835_v32, %v1418_v38  ;;  %2833 = vmatmul.msk.bf16.gmra.mxu0 %vm147_vm0, %v117_v28  ;;  %v1317_v46 = vpack.c.bf16 %v1262_v42, %v1261_v40  ;;  %vm433_vm11 = vcmp.gt.f32.partialorder %v3842_v20, 20.0 }
 0x127   :  { %v3022_v48 = vpop.eup %3021  ;;  %v581_v26 = vmul.f32 1.442695, %v497_v44  ;;  %v1642_v37 = vmin.f32 %v3854_v45, 20.0  ;;  %1457 = vmatmul.bf16.gmra.mxu1 %v1317_v46  ;;  %vm1578_vm13 = vcmp.gt.f32.partialorder %v3854_v45, 20.0 }
 0x128   :  { %v840_v49 = vadd.f32 1.0, %v3022_v48  ;;  %v3024_v50 = vpop.eup %3023  ;;  %v843_v52 = vmul.f32 -0.5, %v3022_v48  ;;  %v846_v6 = vand.u32 2147483647, %v3022_v48 }
 0x129   :  { %3025 = vpow2.f32 %v581_v26  ;;  %v1706_v51 = vmul.f32 1.442695, %v1642_v37  ;;  %v833_v0 = vmul.f32 0.6931472, %v3024_v50 }
 0x12a   :  { %v305_v54 = vpop.f32.mrf.mxu0  ;;  %3027 = vlog2.f32 %v840_v49  ;;  %v844_v5 = vadd.f32 1.0, %v843_v52  ;;  %vm847_vm9 = vcmp.lt.f32.partialorder %v846_v6, 0.0004427343 }
 0x12b   :  { %3029 = vpow2.f32 %v1706_v51  ;;  %v3860_v60 = vadd.f32 %v305_v54, %v3610_v39  ;;  %v839_v14 = vsel %vm3875_vm7, %v836_v53, %v833_v0 }
 0x12c   :  { %v1420_v62 = vpop.f32.mrf.mxu1  ;;  %v845_v19 = vmul.f32 %v3022_v48, %v844_v5  ;;  %v1263_v29 = vsel %vm431_vm8, %v3787_v63, %v839_v14  ;;  %v3905_v63 = vld [vmem:[%s5896_s1 + $0x148] sm:$0xff] }
 0x12d   :  { %v498_v2 = vmin.f32 %v3860_v60, 20.0  ;;  %v3864_v3 = vadd.f32 %v3835_v32, %v1420_v62  ;;  %v119_v26 = vpack.c.bf16 %v3905_v63, %v3900_v24  ;;  %vm434_vm12 = vcmp.gt.f32.partialorder %v3860_v60, 20.0 }
 0x12f   :  { %v3872_v58 = vpop.eup %3025  ;;  %v583_v7 = vmul.f32 1.442695, %v498_v2  ;;  %v1643_v8 = vmin.f32 %v3864_v3, 20.0  ;;  %vm1579_vm3 = vcmp.gt.f32.partialorder %v3864_v3, 20.0 }
 0x130   :  { %v3028_v11 = vpop.eup %3027  ;;  %v849_v15 = vadd.f32 1.0, %v3872_v58  ;;  %v855_v51 = vand.u32 2147483647, %v3872_v58 }
 0x131   :  { %v3882_v16 = vpop.eup %3029  ;;  %3031 = vpow2.f32 %v583_v7  ;;  %v1708_v17 = vmul.f32 1.442695, %v1643_v8  ;;  %v842_v18 = vmul.f32 0.6931472, %v3028_v11 }
 0x132   :  { %v308_v21 = vpop.f32.mrf.mxu0  ;;  %3033 = vlog2.f32 %v849_v15  ;;  %v1834_v23 = vadd.f32 1.0, %v3882_v16  ;;  %v1837_v42 = vmul.f32 -0.5, %v3882_v16  ;;  %v1840_v62 = vand.u32 2147483647, %v3882_v16 }
 0x133   :  { %3035 = vpow2.f32 %v1708_v17  ;;  %v3887_v25 = vadd.f32 %v308_v21, %v3610_v39  ;;  %v848_v27 = vsel %vm847_vm9, %v845_v19, %v842_v18  ;;  %vm3925_vm14 = vcmp.lt.f32.partialorder %v855_v51, 0.0004427343 }
 0x134   :  { %v1423_v28 = vpop.f32.mrf.mxu1  ;;  %v1264_v30 = vsel %vm432_vm10, %v3808_v10, %v848_v27  ;;  %3037 = vlog2.f32 %v1834_v23  ;;  %v852_v10 = vmul.f32 -0.5, %v3872_v58  ;;  %v1838_v61 = vadd.f32 1.0, %v1837_v42 }
 0x135   :  { %v499_v34 = vmin.f32 %v3887_v25, 20.0  ;;  %v3894_v35 = vadd.f32 %v3835_v32, %v1423_v28  ;;  %2834 = vmatmul.msk.bf16.gmra.mxu0 %vm147_vm0, %v118_v12  ;;  %v1318_v33 = vpack.c.bf16 %v1264_v30, %v1263_v29  ;;  %vm3933_vm15 = vcmp.lt.f32.partialorder %v1840_v62, 0.0004427343 }
 0x136   :  { %v853_v50 = vadd.f32 1.0, %v852_v10  ;;  %v1839_v15 = vmul.f32 %v3882_v16, %v1838_v61  ;;  %vm435_vm4 = vcmp.gt.f32.partialorder %v3887_v25, 20.0 }
 0x137   :  { %v3032_v22 = vpop.eup %3031  ;;  %v585_v38 = vmul.f32 1.442695, %v499_v34  ;;  %v1644_v40 = vmin.f32 %v3894_v35, 20.0  ;;  %1462 = vmatmul.bf16.gmra.mxu1 %v1318_v33  ;;  %vm1580_vm9 = vcmp.gt.f32.partialorder %v3894_v35, 20.0 }
 0x138   :  { %v3034_v44 = vpop.eup %3033  ;;  %v858_v46 = vadd.f32 1.0, %v3032_v22  ;;  %v861_v37 = vmul.f32 -0.5, %v3032_v22  ;;  %v854_v6 = vmul.f32 %v3872_v58, %v853_v50  ;;  %v864_v8 = vand.u32 2147483647, %v3032_v22 }
 0x139   :  { %v3036_v47 = vpop.eup %3035  ;;  %3039 = vpow2.f32 %v585_v38  ;;  %v1710_v48 = vmul.f32 1.442695, %v1644_v40  ;;  %v851_v2 = vmul.f32 0.6931472, %v3034_v44 }
 0x13a   :  { %v310_v49 = vpop.f32.mrf.mxu0  ;;  %3041 = vlog2.f32 %v858_v46  ;;  %v1843_v52 = vadd.f32 1.0, %v3036_v47  ;;  %v3038_v54 = vpop.eup %3037  ;;  %v1846_v4 = vmul.f32 -0.5, %v3036_v47  ;;  %v862_v53 = vadd.f32 1.0, %v861_v37 }
 0x13b   :  { %3043 = vpow2.f32 %v1710_v48  ;;  %v3914_v59 = vadd.f32 %v310_v49, %v3610_v39  ;;  %v1836_v9 = vmul.f32 0.6931472, %v3038_v54  ;;  %v857_v58 = vsel %vm3925_vm14, %v854_v6, %v851_v2  ;;  %v3974_v54 = vld [vmem:[%s5896_s1 + $0x158] sm:$0xff] }
 0x13c   :  { %v1425_v0 = vpop.f32.mrf.mxu1  ;;  %3045 = vlog2.f32 %v1843_v52  ;;  %v1847_v19 = vadd.f32 1.0, %v1846_v4  ;;  %v1849_v21 = vand.u32 2147483647, %v3036_v47  ;;  %v863_v30 = vmul.f32 %v3032_v22, %v862_v53 }
 0x13d   :  { %v500_v56 = vmin.f32 %v3914_v59, 20.0  ;;  %v3920_v5 = vadd.f32 %v3835_v32, %v1425_v0  ;;  %vm865_vm1 = vcmp.lt.f32.partialorder %v864_v8, 0.0004427343  ;;  %v1842_v33 = vsel %vm3933_vm15, %v1839_v15, %v1836_v9 }
 0x13e   :  { %v1265_v22 = vsel %vm433_vm11, %v3842_v20, %v857_v58  ;;  %v1848_v44 = vmul.f32 %v3036_v47, %v1847_v19  ;;  %vm1850_vm2 = vcmp.lt.f32.partialorder %v1849_v21, 0.0004427343  ;;  %v2410_v20 = vsel %vm1578_vm13, %v3854_v45, %v1842_v33 }
 0x13f   :  { %v3929_v11 = vpop.eup %3039  ;;  %v587_v12 = vmul.f32 1.442695, %v500_v56  ;;  %v1645_v14 = vmin.f32 %v3920_v5, 20.0  ;;  %vm436_vm5 = vcmp.gt.f32.partialorder %v3914_v59, 20.0  ;;  %vm1581_vm10 = vcmp.gt.f32.partialorder %v3920_v5, 20.0 }
 0x140   :  { %v3042_v18 = vpop.eup %3041  ;;  %v867_v23 = vadd.f32 1.0, %v3929_v11  ;;  %v873_v7 = vand.u32 2147483647, %v3929_v11 }
 0x141   :  { %v3940_v27 = vpop.eup %3043  ;;  %3047 = vpow2.f32 %v587_v12  ;;  %v1712_v28 = vmul.f32 1.442695, %v1645_v14  ;;  %v860_v29 = vmul.f32 0.6931472, %v3042_v18 }
 0x142   :  { %v3046_v34 = vpop.eup %3045  ;;  %v313_v16 = vpop.f32.mrf.mxu0  ;;  %3049 = vlog2.f32 %v867_v23  ;;  %v1852_v24 = vadd.f32 1.0, %v3940_v27  ;;  %v1855_v45 = vmul.f32 -0.5, %v3940_v27  ;;  %v1858_v14 = vand.u32 2147483647, %v3940_v27 }
 0x143   :  { %3051 = vpow2.f32 %v1712_v28  ;;  %v3946_v63 = vadd.f32 %v313_v16, %v3610_v39  ;;  %v866_v10 = vsel %vm865_vm1, %v863_v30, %v860_v29  ;;  %v1845_v38 = vmul.f32 0.6931472, %v3046_v34 }
 0x144   :  { %v1428_v40 = vpop.f32.mrf.mxu1  ;;  %v1266_v42 = vsel %vm434_vm12, %v3860_v60, %v866_v10  ;;  %3053 = vlog2.f32 %v1852_v24  ;;  %v870_v60 = vmul.f32 -0.5, %v3929_v11  ;;  %v1856_v12 = vadd.f32 1.0, %v1855_v45 }
 0x145   :  { %v501_v46 = vmin.f32 %v3946_v63, 20.0  ;;  %v3956_v48 = vadd.f32 %v3835_v32, %v1428_v40  ;;  %2835 = vmatmul.msk.bf16.gmra.mxu0 %vm147_vm0, %v119_v26  ;;  %v1319_v37 = vpack.c.bf16 %v1266_v42, %v1265_v22  ;;  %v1851_v49 = vsel %vm1850_vm2, %v1848_v44, %v1845_v38  ;;  %v3969_v26 = vld [vmem:[%s5896_s1 + $0x150] sm:$0xff] }
 0x146   :  { %v2411_v52 = vsel %vm1579_vm3, %v3864_v3, %v1851_v49  ;;  %v120_v53 = vpack.c.bf16 %v3974_v54, %v3969_v26  ;;  %v871_v6 = vadd.f32 1.0, %v870_v60  ;;  %vm3998_vm6 = vcmp.lt.f32.partialorder %v873_v7, 0.0004427343  ;;  %v86_v54 = vld [vmem:[%s5896_s1 + $0x198] sm:$0xff] }
 0x147   :  { %v3048_v47 = vpop.eup %3047  ;;  %v589_v50 = vmul.f32 1.442695, %v501_v46  ;;  %v1646_v51 = vmin.f32 %v3956_v48, 20.0  ;;  %1467 = vmatmul.bf16.gmra.mxu1 %v1319_v37  ;;  %v2474_v62 = vpack.c.bf16 %v2411_v52, %v2410_v20  ;;  %v1857_v10 = vmul.f32 %v3940_v27, %v1856_v12 }
 0x148   :  { %v3050_v61 = vpop.eup %3049  ;;  %v876_v0 = vadd.f32 1.0, %v3048_v47  ;;  %v879_v3 = vmul.f32 -0.5, %v3048_v47  ;;  %v882_v18 = vand.u32 2147483647, %v3048_v47  ;;  %v872_v28 = vmul.f32 %v3929_v11, %v871_v6 }
 0x149   :  { %v3977_v2 = vpop.eup %3051  ;;  %3055 = vpow2.f32 %v589_v50  ;;  %v1714_v4 = vmul.f32 1.442695, %v1646_v51  ;;  %2582 = vmatmul.bf16.vlgmr.msra.gmra.mxu2 %v2474_v62  ;;  %v869_v17 = vmul.f32 0.6931472, %v3050_v61  ;;  %vm4009_vm8 = vcmp.lt.f32.partialorder %v1858_v14, 0.0004427343 }
 0x14a   :  { %v315_v56 = vpop.f32.mrf.mxu0  ;;  %3057 = vlog2.f32 %v876_v0  ;;  %v3054_v8 = vpop.eup %3053  ;;  %v1861_v58 = vadd.f32 1.0, %v3977_v2  ;;  %v880_v23 = vadd.f32 1.0, %v879_v3  ;;  %v1864_v30 = vmul.f32 -0.5, %v3977_v2 }
 0x14b   :  { %3059 = vpow2.f32 %v1714_v4  ;;  %v3983_v9 = vadd.f32 %v315_v56, %v3610_v39  ;;  %v1854_v29 = vmul.f32 0.6931472, %v3054_v8  ;;  %v875_v40 = vsel %vm3998_vm6, %v872_v28, %v869_v17 }
 0x14c   :  { %v1430_v15 = vpop.f32.mrf.mxu1  ;;  %3061 = vlog2.f32 %v1861_v58  ;;  %vm4005_vm7 = vcmp.lt.f32.partialorder %v882_v18, 0.0004427343  ;;  %v881_v27 = vmul.f32 %v3048_v47, %v880_v23  ;;  %v1865_v60 = vadd.f32 1.0, %v1864_v30  ;;  %v85_v47 = vld [vmem:[%s5896_s1 + $0x190] sm:$0xff] }
 0x14d   :  { %v502_v19 = vmin.f32 %v3983_v9, 20.0  ;;  %v3990_v21 = vadd.f32 %v3835_v32, %v1430_v15  ;;  %v1860_v20 = vsel %vm4009_vm8, %v1857_v10, %v1854_v29  ;;  %v1867_v50 = vand.u32 2147483647, %v3977_v2 }
 0x14e   :  { %v1267_v62 = vsel %vm435_vm4, %v3887_v25, %v875_v40  ;;  %v1866_v25 = vmul.f32 %v3977_v2, %v1865_v60  ;;  %v2412_v8 = vsel %vm1580_vm9, %v3894_v35, %v1860_v20  ;;  %vm437_vm12 = vcmp.gt.f32.partialorder %v3946_v63, 20.0 }
 0x14f   :  { %v3995_v34 = vpop.eup %3055  ;;  %v591_v16 = vmul.f32 1.442695, %v502_v19  ;;  %v1647_v33 = vmin.f32 %v3990_v21, 20.0  ;;  %vm1868_vm11 = vcmp.lt.f32.partialorder %v1867_v50, 0.0004427343  ;;  %vm438_vm13 = vcmp.gt.f32.partialorder %v3983_v9, 20.0 }
 0x150   :  { %v3058_v38 = vpop.eup %3057  ;;  %v885_v42 = vadd.f32 1.0, %v3995_v34  ;;  %v888_v4 = vmul.f32 -0.5, %v3995_v34  ;;  %v891_v24 = vand.u32 2147483647, %v3995_v34  ;;  %vm1582_vm15 = vcmp.gt.f32.partialorder %v3956_v48, 20.0 }
 0x151   :  { %v4014_v44 = vpop.eup %3059  ;;  %3063 = vpow2.f32 %v591_v16  ;;  %v1716_v46 = vmul.f32 1.442695, %v1647_v33  ;;  %v878_v37 = vmul.f32 0.6931472, %v3058_v38  ;;  %v79_v33 = vld [vmem:[%s5896_s1 + $0x160] sm:$0xff]  ;;  %vm1583_vm3 = vcmp.gt.f32.partialorder %v3990_v21, 20.0 }
 0x152   :  { %v318_v49 = vpop.f32.mrf.mxu0  ;;  %3065 = vlog2.f32 %v885_v42  ;;  %v1870_v26 = vadd.f32 1.0, %v4014_v44  ;;  %v3062_v45 = vpop.eup %3061  ;;  %v889_v58 = vadd.f32 1.0, %v888_v4  ;;  %v1873_v19 = vmul.f32 -0.5, %v4014_v44 }
 0x153   :  { %3067 = vpow2.f32 %v1716_v46  ;;  %v4020_v51 = vadd.f32 %v318_v49, %v3610_v39  ;;  %v884_v52 = vsel %vm4005_vm7, %v881_v27, %v878_v37  ;;  %v1863_v7 = vmul.f32 0.6931472, %v3062_v45 }
 0x154   :  { %v1433_v61 = vpop.f32.mrf.mxu1  ;;  %v1268_v0 = vsel %vm436_vm5, %v3914_v59, %v884_v52  ;;  %v124_v59 = vpack.c.bf16 %v86_v54, %v85_v47  ;;  %3069 = vlog2.f32 %v1870_v26  ;;  %v1874_v38 = vadd.f32 1.0, %v1873_v19 }
 0x155   :  { %v503_v3 = vmin.f32 %v4020_v51, 20.0  ;;  %v4041_v56 = vadd.f32 %v3835_v32, %v1433_v61  ;;  %2836 = vmatmul.msk.bf16.gmra.mxu0 %vm147_vm0, %v120_v53  ;;  %v1320_v6 = vpack.c.bf16 %v1268_v0, %v1267_v62  ;;  %v1869_v18 = vsel %vm1868_vm11, %v1866_v25, %v1863_v7 }
 0x156   :  { %2840 = vmatmul.msk.bf16.vlgmr.msra.gmra.mxu3 %vm147_vm0, %v124_v59  ;;  %v2413_v2 = vsel %vm1581_vm10, %v3920_v5, %v1869_v18  ;;  %v890_v46 = vmul.f32 %v3995_v34, %v889_v58  ;;  %v1876_v49 = vand.u32 2147483647, %v4014_v44  ;;  %vm4080_vm14 = vcmp.lt.f32.partialorder %v891_v24, 0.0004427343 }
 0x157   :  { %v3064_v12 = vpop.eup %3063  ;;  %v593_v14 = vmul.f32 1.442695, %v503_v3  ;;  %v1648_v15 = vmin.f32 %v4041_v56, 20.0  ;;  %1472 = vmatmul.bf16.gmra.mxu1 %v1320_v6  ;;  %2937 = vmatpush.bf16.msra.mxu3 %v3761_v36  ;;  %v2475_v29 = vpack.c.bf16 %v2413_v2, %v2412_v8  ;;  %v80_v36 = vld [vmem:[%s5896_s1 + $0x168] sm:$0xff]  ;;  %v1875_v45 = vmul.f32 %v4014_v44, %v1874_v38 }
 0x158   :  { %v3066_v17 = vpop.eup %3065  ;;  %v894_v53 = vadd.f32 1.0, %v3064_v12  ;;  %v897_v28 = vmul.f32 -0.5, %v3064_v12  ;;  %v900_v27 = vand.u32 2147483647, %v3064_v12  ;;  %v121_v26 = vpack.c.bf16 %v80_v36, %v79_v33 }
 0x159   :  { %v4050_v23 = vpop.eup %3067  ;;  %3071 = vpow2.f32 %v593_v14  ;;  %v1718_v35 = vmul.f32 1.442695, %v1648_v15  ;;  %2587 = vmatmul.bf16.gmra.mxu2 %v2475_v29  ;;  %v887_v10 = vmul.f32 0.6931472, %v3066_v17  ;;  %vm4092_vm2 = vcmp.lt.f32.partialorder %v1876_v49, 0.0004427343 }
 0x15a   :  { %v320_v30 = vpop.f32.mrf.mxu0  ;;  %3073 = vlog2.f32 %v894_v53  ;;  %v1879_v40 = vadd.f32 1.0, %v4050_v23  ;;  %v3070_v11 = vpop.eup %3069  ;;  %v898_v37 = vadd.f32 1.0, %v897_v28  ;;  %v1882_v20 = vmul.f32 -0.5, %v4050_v23 }
 0x15b   :  { %3075 = vpow2.f32 %v1718_v35  ;;  %v4058_v16 = vadd.f32 %v320_v30, %v3610_v39  ;;  %2938 = vmatpush.bf16.msra.mxu3 %v3770_v41  ;;  %v893_v41 = vsel %vm4080_vm14, %v890_v46, %v887_v10  ;;  %v1872_v54 = vmul.f32 0.6931472, %v3070_v11  ;;  %v4139_v46 = vld [vmem:[%s5896_s1 + $0x178] sm:$0xff] }
 0x15c   :  { %v1435_v5 = vpop.f32.mrf.mxu1  ;;  %3077 = vlog2.f32 %v1879_v40  ;;  %v899_v3 = vmul.f32 %v3064_v12, %v898_v37  ;;  %vm901_vm1 = vcmp.lt.f32.partialorder %v900_v27, 0.0004427343  ;;  %v1883_v25 = vadd.f32 1.0, %v1882_v20  ;;  %v88_v12 = vld [vmem:[%s5896_s1 + $0x1a8] sm:$0xff] }
 0x15d   :  { %v504_v22 = vmin.f32 %v4058_v16, 20.0  ;;  %v4071_v42 = vadd.f32 %v3835_v32, %v1435_v5  ;;  %v1885_v14 = vand.u32 2147483647, %v4050_v23  ;;  %v1269_v18 = vsel %vm437_vm12, %v3946_v63, %v893_v41 }
 0x15e   :  { %v1878_v53 = vsel %vm4092_vm2, %v1875_v45, %v1872_v54  ;;  %v1884_v63 = vmul.f32 %v4050_v23, %v1883_v25  ;;  %vm439_vm5 = vcmp.gt.f32.partialorder %v4020_v51, 20.0  ;;  %vm440_vm6 = vcmp.gt.f32.partialorder %v4058_v16, 20.0 }
 0x15f   :  { %v4077_v60 = vpop.eup %3071  ;;  %v595_v50 = vmul.f32 1.442695, %v504_v22  ;;  %v1649_v52 = vmin.f32 %v4071_v42, 20.0  ;;  %2939 = vmatpush.bf16.msra.mxu3 %v3783_v57  ;;  %v87_v57 = vld [vmem:[%s5896_s1 + $0x1a0] sm:$0xff]  ;;  %vm1886_vm4 = vcmp.lt.f32.partialorder %v1885_v14, 0.0004427343  ;;  %v2414_v40 = vsel %vm1582_vm15, %v3956_v48, %v1878_v53 }
 0x160   :  { %v3074_v34 = vpop.eup %3073  ;;  %v903_v61 = vadd.f32 1.0, %v4077_v60  ;;  %v906_v29 = vmul.f32 -0.5, %v4077_v60  ;;  %v4134_v22 = vld [vmem:[%s5896_s1 + $0x170] sm:$0xff]  ;;  %vm1584_vm10 = vcmp.gt.f32.partialorder %v4041_v56, 20.0  ;;  %vm1585_vm11 = vcmp.gt.f32.partialorder %v4071_v42, 20.0 }
 0x161   :  { %v4089_v62 = vpop.eup %3075  ;;  %3079 = vpow2.f32 %v595_v50  ;;  %v1720_v0 = vmul.f32 1.442695, %v1649_v52  ;;  %v896_v4 = vmul.f32 0.6931472, %v3074_v34  ;;  %v909_v50 = vand.u32 2147483647, %v4077_v60 }
 0x162   :  { %v323_v6 = vpop.f32.mrf.mxu0  ;;  %v1888_v8 = vadd.f32 1.0, %v4089_v62  ;;  %3081 = vlog2.f32 %v903_v61  ;;  %v3078_v15 = vpop.eup %3077  ;;  %v1891_v38 = vmul.f32 -0.5, %v4089_v62  ;;  %v907_v20 = vadd.f32 1.0, %v906_v29 }
 0x163   :  { %v4098_v44 = vadd.f32 %v323_v6, %v3610_v39  ;;  %v902_v59 = vsel %vm901_vm1, %v899_v3, %v896_v4  ;;  %3083 = vpow2.f32 %v1720_v0  ;;  %2940 = vmatpush.bf16.msra.mxu3 %v3796_v1  ;;  %v1881_v28 = vmul.f32 0.6931472, %v3078_v15 }
 0x164   :  { %v1438_v17 = vpop.f32.mrf.mxu1  ;;  %v1270_v58 = vsel %vm438_vm13, %v3983_v9, %v902_v59  ;;  %3085 = vlog2.f32 %v1888_v8  ;;  %v125_v9 = vpack.c.bf16 %v88_v12, %v87_v57  ;;  %v1892_v34 = vadd.f32 1.0, %v1891_v38 }
 0x165   :  { %v505_v19 = vmin.f32 %v4098_v44, 20.0  ;;  %v4117_v35 = vadd.f32 %v3835_v32, %v1438_v17  ;;  %2837 = vmatmul.msk.bf16.gmra.mxu0 %vm147_vm0, %v121_v26  ;;  %v1321_v2 = vpack.c.bf16 %v1270_v58, %v1269_v18  ;;  %v1887_v5 = vsel %vm1886_vm4, %v1884_v63, %v1881_v28 }
 0x166   :  { %2841 = vmatmul.msk.bf16.gmra.mxu3 %vm147_vm0, %v125_v9  ;;  %v2415_v11 = vsel %vm1583_vm3, %v3990_v21, %v1887_v5  ;;  %v1894_v45 = vand.u32 2147483647, %v4089_v62  ;;  %v908_v0 = vmul.f32 %v4077_v60, %v907_v20  ;;  %vm4164_vm7 = vcmp.lt.f32.partialorder %v909_v50, 0.0004427343 }
 0x167   :  { %v3080_v30 = vpop.eup %3079  ;;  %v597_v33 = vmul.f32 1.442695, %v505_v19  ;;  %v1650_v24 = vmin.f32 %v4117_v35, 20.0  ;;  %1477 = vmatmul.bf16.gmra.mxu1 %v1321_v2  ;;  %2941 = vmatpush.bf16.msra.mxu3 %v3804_v55  ;;  %v2476_v27 = vpack.c.bf16 %v2415_v11, %v2414_v40  ;;  %v122_v55 = vpack.c.bf16 %v4139_v46, %v4134_v22 }
 0x168   :  { %v912_v36 = vadd.f32 1.0, %v3080_v30  ;;  %v915_v10 = vmul.f32 -0.5, %v3080_v30  ;;  %v3082_v1 = vpop.eup %3081  ;;  %v918_v4 = vand.u32 2147483647, %v3080_v30  ;;  %v1893_v60 = vmul.f32 %v4089_v62, %v1892_v34 }
 0x169   :  { %3087 = vpow2.f32 %v597_v33  ;;  %v1722_v23 = vmul.f32 1.442695, %v1650_v24  ;;  %v4142_v37 = vpop.eup %3083  ;;  %2592 = vmatmul.bf16.gmra.mxu2 %v2476_v27  ;;  %v905_v26 = vmul.f32 0.6931472, %v3082_v1  ;;  %vm4174_vm8 = vcmp.lt.f32.partialorder %v1894_v45, 0.0004427343 }
 0x16a   :  { %v325_v49 = vpop.f32.mrf.mxu0  ;;  %3089 = vlog2.f32 %v912_v36  ;;  %v3086_v48 = vpop.eup %3085  ;;  %v916_v47 = vadd.f32 1.0, %v915_v10  ;;  %v1897_v61 = vadd.f32 1.0, %v4142_v37  ;;  %v1900_v6 = vmul.f32 -0.5, %v4142_v37  ;;  %v89_v33 = vld [vmem:[%s5896_s1 + $0x1b0] sm:$0xff]  ;;  %v90_v24 = vld [vmem:[%s5896_s1 + $0x1b8] sm:$0xff]  ;;  %v84_v45 = vld [vmem:[%s5896_s1 + $0x188] sm:$0xff] }
 0x16b   :  { %3091 = vpow2.f32 %v1722_v23  ;;  %v4147_v21 = vadd.f32 %v325_v49, %v3610_v39  ;;  %2942 = vmatpush.bf16.msra.mxu3 %v3813_v13  ;;  %v1890_v3 = vmul.f32 0.6931472, %v3086_v48  ;;  %v911_v13 = vsel %vm4164_vm7, %v908_v0, %v905_v26 }
 0x16c   :  { %v1440_v52 = vpop.f32.mrf.mxu1  ;;  %3093 = vlog2.f32 %v1897_v61  ;;  %v917_v57 = vmul.f32 %v3080_v30, %v916_v47  ;;  %vm919_vm9 = vcmp.lt.f32.partialorder %v918_v4, 0.0004427343  ;;  %v1901_v2 = vadd.f32 1.0, %v1900_v6 }
 0x16d   :  { %v506_v41 = vmin.f32 %v4147_v21, 20.0  ;;  %v4154_v54 = vadd.f32 %v3835_v32, %v1440_v52  ;;  %v1896_v19 = vsel %vm4174_vm8, %v1893_v60, %v1890_v3  ;;  %v1903_v63 = vand.u32 2147483647, %v4142_v37 }
 0x16e   :  { %v1271_v9 = vsel %vm439_vm5, %v4020_v51, %v911_v13  ;;  %v1902_v1 = vmul.f32 %v4142_v37, %v1901_v2  ;;  %v2416_v23 = vsel %vm1584_vm10, %v4041_v56, %v1896_v19  ;;  %v126_v46 = vpack.c.bf16 %v90_v24, %v89_v33 }
 0x16f   :  { %v4161_v7 = vpop.eup %3087  ;;  %v599_v25 = vmul.f32 1.442695, %v506_v41  ;;  %v1651_v8 = vmin.f32 %v4154_v54, 20.0  ;;  %2943 = vmatpush.bf16.msra.mxu3 %v3830_v31  ;;  %vm1904_vm12 = vcmp.lt.f32.partialorder %v1903_v63, 0.0004427343  ;;  %vm441_vm13 = vcmp.gt.f32.partialorder %v4098_v44, 20.0 }
 0x170   :  { %v3090_v14 = vpop.eup %3089  ;;  %v921_v12 = vadd.f32 1.0, %v4161_v7  ;;  %v924_v10 = vmul.f32 -0.5, %v4161_v7  ;;  %v927_v34 = vand.u32 2147483647, %v4161_v7  ;;  %vm442_vm14 = vcmp.gt.f32.partialorder %v4147_v21, 20.0 }
 0x171   :  { %v4172_v15 = vpop.eup %3091  ;;  %3095 = vpow2.f32 %v599_v25  ;;  %v1724_v17 = vmul.f32 1.442695, %v1651_v8  ;;  %v914_v18 = vmul.f32 0.6931472, %v3090_v14  ;;  %vm1586_vm1 = vcmp.gt.f32.partialorder %v4117_v35, 20.0 }
 0x172   :  { %v328_v53 = vpop.f32.mrf.mxu0  ;;  %3097 = vlog2.f32 %v921_v12  ;;  %v1906_v30 = vadd.f32 1.0, %v4172_v15  ;;  %v3094_v5 = vpop.eup %3093  ;;  %v925_v37 = vadd.f32 1.0, %v924_v10  ;;  %v1909_v26 = vmul.f32 -0.5, %v4172_v15 }
 0x173   :  { %3099 = vpow2.f32 %v1724_v17  ;;  %v4182_v62 = vadd.f32 %v328_v53, %v3610_v39  ;;  %v920_v28 = vsel %vm919_vm9, %v917_v57, %v914_v18  ;;  %2944 = vmatpush.bf16.msra.mxu3 %v3850_v43  ;;  %v1899_v38 = vmul.f32 0.6931472, %v3094_v5 }
 0x174   :  { %v1443_v29 = vpop.f32.mrf.mxu1  ;;  %v1272_v31 = vsel %vm440_vm6, %v4058_v16, %v920_v28  ;;  %3101 = vlog2.f32 %v1906_v30  ;;  %v926_v25 = vmul.f32 %v4161_v7, %v925_v37  ;;  %v1910_v14 = vadd.f32 1.0, %v1909_v26 }
 0x175   :  { %v507_v36 = vmin.f32 %v4182_v62, 20.0  ;;  %v4201_v51 = vadd.f32 %v3835_v32, %v1443_v29  ;;  %2838 = vmatmul.msk.bf16.gmra.mxu0 %vm147_vm0, %v122_v55  ;;  %v1322_v16 = vpack.c.bf16 %v1272_v31, %v1271_v9  ;;  %v1905_v49 = vsel %vm1904_vm12, %v1902_v1, %v1899_v38 }
 0x176   :  { %v2417_v56 = vsel %vm1585_vm11, %v4071_v42, %v1905_v49  ;;  %2842 = vmatmul.msk.bf16.gmra.mxu3 %vm147_vm0, %v126_v46  ;;  %v83_v42 = vld [vmem:[%s5896_s1 + $0x180] sm:$0xff]  ;;  %vm4239_vm15 = vcmp.lt.f32.partialorder %v927_v34, 0.0004427343  ;;  %v1912_v19 = vand.u32 2147483647, %v4172_v15  ;;  %v1911_v30 = vmul.f32 %v4172_v15, %v1910_v14 }
 0x177   :  { %v3096_v40 = vpop.eup %3095  ;;  %v601_v11 = vmul.f32 1.442695, %v507_v36  ;;  %v1652_v22 = vmin.f32 %v4201_v51, 20.0  ;;  %1482 = vmatmul.bf16.gmra.mxu1 %v1322_v16  ;;  %v2477_v52 = vpack.c.bf16 %v2417_v56, %v2416_v23  ;;  %v123_v17 = vpack.c.bf16 %v84_v45, %v83_v42 }
 0x178   :  { %v3098_v27 = vpop.eup %3097  ;;  %v930_v20 = vadd.f32 1.0, %v3096_v40  ;;  %v933_v48 = vmul.f32 -0.5, %v3096_v40  ;;  %v936_v59 = vand.u32 2147483647, %v3096_v40  ;;  %vm4262_vm3 = vcmp.lt.f32.partialorder %v1912_v19, 0.0004427343 }
 0x179   :  { %v4210_v43 = vpop.eup %3099  ;;  %3103 = vpow2.f32 %v601_v11  ;;  %v1726_v50 = vmul.f32 1.442695, %v1652_v22  ;;  %2597 = vmatmul.bf16.gmra.mxu2 %v2477_v52  ;;  %v923_v61 = vmul.f32 0.6931472, %v3098_v27  ;;  %v92_v11 = vld [vmem:[%s5896_s1 + $0x1c8] sm:$0xff]  ;;  %vm1587_vm5 = vcmp.gt.f32.partialorder %v4154_v54, 20.0 }
 0x17a   :  { %v330_v55 = vpop.f32.mrf.mxu0  ;;  %3105 = vlog2.f32 %v930_v20  ;;  %v934_v0 = vadd.f32 1.0, %v933_v48  ;;  %v1915_v4 = vadd.f32 1.0, %v4210_v43  ;;  %v3102_v8 = vpop.eup %3101  ;;  %v1918_v13 = vmul.f32 -0.5, %v4210_v43  ;;  %v94_v20 = vld [vmem:[%s5896_s1 + $0x1d8] sm:$0xff] }
 0x17b   :  { %3107 = vpow2.f32 %v1726_v50  ;;  %v4219_v47 = vadd.f32 %v330_v55, %v3610_v39  ;;  %v929_v7 = vsel %vm4239_vm15, %v926_v25, %v923_v61  ;;  %v1908_v9 = vmul.f32 0.6931472, %v3102_v8 }
 0x17c   :  { %v1445_v41 = vpop.f32.mrf.mxu1  ;;  %3109 = vlog2.f32 %v1915_v4  ;;  %v935_v53 = vmul.f32 %v3096_v40, %v934_v0  ;;  %vm937_vm2 = vcmp.lt.f32.partialorder %v936_v59, 0.0004427343  ;;  %v1919_v33 = vadd.f32 1.0, %v1918_v13  ;;  %v91_v40 = vld [vmem:[%s5896_s1 + $0x1c0] sm:$0xff] }
 0x17d   :  { %v508_v3 = vmin.f32 %v4219_v47, 20.0  ;;  %v4232_v6 = vadd.f32 %v3835_v32, %v1445_v41  ;;  %v1921_v24 = vand.u32 2147483647, %v4210_v43  ;;  %v1273_v1 = vsel %vm441_vm13, %v4098_v44, %v929_v7  ;;  %v4307_v13 = vld [vmem:[%s5901_s6] ss:$0 sm:$0xff] }
 0x17e   :  { %v1914_v46 = vsel %vm4262_vm3, %v1911_v30, %v1908_v9  ;;  %v1920_v49 = vmul.f32 %v4210_v43, %v1919_v33  ;;  %v127_v37 = vpack.c.bf16 %v92_v11, %v91_v40  ;;  %vm443_vm6 = vcmp.gt.f32.partialorder %v4182_v62, 20.0 }
 0x17f   :  { %v4236_v57 = vpop.eup %3103  ;;  %v603_v60 = vmul.f32 1.442695, %v508_v3  ;;  %v1653_v12 = vmin.f32 %v4232_v6, 20.0  ;;  %vm4280_vm4 = vcmp.lt.f32.partialorder %v1921_v24, 0.0004427343  ;;  %v2418_v43 = vsel %vm1586_vm1, %v4117_v35, %v1914_v46 }
 0x180   :  { %v3106_v58 = vpop.eup %3105  ;;  %v939_v2 = vadd.f32 1.0, %v4236_v57  ;;  %v942_v48 = vmul.f32 -0.5, %v4236_v57  ;;  %v945_v25 = vand.u32 2147483647, %v4236_v57  ;;  %vm444_vm7 = vcmp.gt.f32.partialorder %v4219_v47, 20.0 }
 0x181   :  { %v4248_v28 = vpop.eup %3107  ;;  %3111 = vpow2.f32 %v603_v60  ;;  %v1728_v63 = vmul.f32 1.442695, %v1653_v12  ;;  %v932_v29 = vmul.f32 0.6931472, %v3106_v58  ;;  %vm1588_vm9 = vcmp.gt.f32.partialorder %v4201_v51, 20.0 }
 0x182   :  { %v333_v31 = vpop.f32.mrf.mxu0  ;;  %3113 = vlog2.f32 %v939_v2  ;;  %v1924_v16 = vadd.f32 1.0, %v4248_v28  ;;  %v3110_v10 = vpop.eup %3109  ;;  %v943_v4 = vadd.f32 1.0, %v942_v48  ;;  %v1927_v3 = vmul.f32 -0.5, %v4248_v28 }
 0x183   :  { %v4253_v5 = vadd.f32 %v333_v31, %v3610_v39  ;;  %v938_v36 = vsel %vm937_vm2, %v935_v53, %v932_v29  ;;  %3115 = vpow2.f32 %v1728_v63  ;;  %v1917_v27 = vmul.f32 0.6931472, %v3110_v10 }
 0x184   :  { %v1448_v38 = vpop.f32.mrf.mxu1  ;;  %v1274_v15 = vsel %vm442_vm14, %v4147_v21, %v938_v36  ;;  %3117 = vlog2.f32 %v1924_v16  ;;  %v944_v18 = vmul.f32 %v4236_v57, %v943_v4  ;;  %v1928_v7 = vadd.f32 1.0, %v1927_v3 }
 0x185   :  { %v509_v22 = vmin.f32 %v4253_v5, 20.0  ;;  %v4274_v44 = vadd.f32 %v3835_v32, %v1448_v38  ;;  %2839 = vmatmul.msk.bf16.gmra.mxu0 %vm147_vm0, %v123_v17  ;;  %v1323_v21 = vpack.c.bf16 %v1274_v15, %v1273_v1  ;;  %v1923_v52 = vsel %vm4280_vm4, %v1920_v49, %v1917_v27  ;;  %v93_v49 = vld [vmem:[%s5896_s1 + $0x1d0] sm:$0xff] }
 0x186   :  { %v2419_v41 = vsel %vm1587_vm5, %v4154_v54, %v1923_v52  ;;  %2843 = vmatmul.msk.bf16.gmra.mxu3 %vm147_vm0, %v127_v37  ;;  %vm4318_vm8 = vcmp.lt.f32.partialorder %v945_v25, 0.0004427343  ;;  %v1930_v30 = vand.u32 2147483647, %v4248_v28  ;;  %v1929_v1 = vmul.f32 %v4248_v28, %v1928_v7 }
 0x187   :  { %v3112_v50 = vpop.eup %3111  ;;  %v605_v56 = vmul.f32 1.442695, %v509_v22  ;;  %v1654_v32 = vmin.f32 %v4274_v44, 20.0  ;;  %1487 = vmatmul.bf16.gmra.mxu1 %v1323_v21  ;;  %v2478_v61 = vpack.c.bf16 %v2419_v41, %v2418_v43  ;;  %vm1589_vm12 = vcmp.gt.f32.partialorder %v4232_v6, 20.0 }
 0x188   :  { %v948_v55 = vadd.f32 1.0, %v3112_v50  ;;  %v3114_v26 = vpop.eup %3113  ;;  %v951_v42 = vmul.f32 -0.5, %v3112_v50  ;;  %v954_v58 = vand.u32 2147483647, %v3112_v50  ;;  %vm4340_vm11 = vcmp.lt.f32.partialorder %v1930_v30, 0.0004427343 }
 0x189   :  { %3119 = vpow2.f32 %v605_v56  ;;  %v1730_v34 = vmul.f32 1.442695, %v1654_v32  ;;  %v4294_v45 = vpop.eup %3115  ;;  %2602 = vmatmul.bf16.gmra.mxu2 %v2478_v61  ;;  %v941_v8 = vmul.f32 0.6931472, %v3114_v26  ;;  %vm445_vm14 = vcmp.gt.f32.partialorder %v4253_v5, 20.0 }
 0x18a   :  { %v335_v0 = vpop.f32.mrf.mxu0  ;;  %3121 = vlog2.f32 %v948_v55  ;;  %v3118_v59 = vpop.eup %3117  ;;  %v952_v12 = vadd.f32 1.0, %v951_v42  ;;  %v1933_v17 = vadd.f32 1.0, %v4294_v45  ;;  %v1936_v53 = vmul.f32 -0.5, %v4294_v45 }
 0x18b   :  { %3123 = vpow2.f32 %v1730_v34  ;;  %v4298_v35 = vadd.f32 %v335_v0, %v3610_v39  ;;  %v947_v57 = vsel %vm4318_vm8, %v944_v18, %v941_v8  ;;  %v1926_v31 = vmul.f32 0.6931472, %v3118_v59 }
 0x18c   :  { %v1450_v54 = vpop.f32.mrf.mxu1  ;;  %3125 = vlog2.f32 %v1933_v17  ;;  %v953_v10 = vmul.f32 %v3112_v50, %v952_v12  ;;  %vm955_vm10 = vcmp.lt.f32.partialorder %v954_v58, 0.0004427343  ;;  %v1937_v15 = vadd.f32 1.0, %v1936_v53 }
 0x18d   :  { %v510_v14 = vmin.f32 %v4298_v35, 20.0  ;;  %v4310_v60 = vadd.f32 %v4307_v13, %v1450_v54  ;;  %v1939_v11 = vand.u32 2147483647, %v4294_v45  ;;  %v1275_v21 = vsel %vm443_vm6, %v4182_v62, %v947_v57 }
 0x18e   :  { %v1932_v56 = vsel %vm4340_vm11, %v1929_v1, %v1926_v31  ;;  %v1938_v37 = vmul.f32 %v4294_v45, %v1937_v15  ;;  %v128_v34 = vpack.c.bf16 %v94_v20, %v93_v49  ;;  %vm446_vm15 = vcmp.gt.f32.partialorder %v4298_v35, 20.0 }
 0x18f   :  { %v4315_v19 = vpop.eup %3119  ;;  %v607_v2 = vmul.f32 1.442695, %v510_v14  ;;  %v1655_v63 = vmin.f32 %v4310_v60, 20.0  ;;  %vm1940_vm13 = vcmp.lt.f32.partialorder %v1939_v11, 0.0004427343  ;;  %v2420_v61 = vsel %vm1588_vm9, %v4201_v51, %v1932_v56 }
 0x190   :  { %v3122_v9 = vpop.eup %3121  ;;  %v957_v33 = vadd.f32 1.0, %v4315_v19  ;;  %v960_v52 = vmul.f32 -0.5, %v4315_v19  ;;  %v963_v12 = vand.u32 2147483647, %v4315_v19  ;;  %vm1590_vm3 = vcmp.gt.f32.partialorder %v4274_v44, 20.0 }
 0x191   :  { %v4327_v24 = vpop.eup %3123  ;;  %3127 = vpow2.f32 %v607_v2  ;;  %v1732_v36 = vmul.f32 1.442695, %v1655_v63  ;;  %v950_v16 = vmul.f32 0.6931472, %v3122_v9  ;;  %vm1591_vm4 = vcmp.gt.f32.partialorder %v4310_v60, 20.0 }
 0x192   :  { %v338_v38 = vpop.f32.mrf.mxu0  ;;  %3129 = vlog2.f32 %v957_v33  ;;  %v1942_v27 = vadd.f32 1.0, %v4327_v24  ;;  %v3126_v48 = vpop.eup %3125  ;;  %v961_v59 = vadd.f32 1.0, %v960_v52  ;;  %v1945_v14 = vmul.f32 -0.5, %v4327_v24  ;;  %v95_v52 = vld [vmem:[%s5896_s1 + $0x1e0] sm:$0xff] }
 0x193   :  { %3131 = vpow2.f32 %v1732_v36  ;;  %v4331_v23 = vadd.f32 %v338_v38, %v3610_v39  ;;  %v956_v40 = vsel %vm955_vm10, %v953_v10, %v950_v16  ;;  %v1935_v32 = vmul.f32 0.6931472, %v3126_v48 }
 0x194   :  { %v1453_v22 = vpop.f32.mrf.mxu1  ;;  %v1276_v46 = vsel %vm444_vm7, %v4219_v47, %v956_v40  ;;  %3133 = vlog2.f32 %v1942_v27  ;;  %v962_v29 = vmul.f32 %v4315_v19, %v961_v59  ;;  %v1946_v9 = vadd.f32 1.0, %v1945_v14 }
 0x195   :  { %v511_v62 = vmin.f32 %v4331_v23, 20.0  ;;  %v4353_v50 = vadd.f32 %v4307_v13, %v1453_v22  ;;  %v1324_v47 = vpack.c.bf16 %v1276_v46, %v1275_v21  ;;  %v1941_v42 = vsel %vm1940_vm13, %v1938_v37, %v1935_v32 }
 0x196   :  { %v2421_v3 = vsel %vm1589_vm12, %v4232_v6, %v1941_v42  ;;  %2844 = vmatmul.msk.bf16.gmra.mxu3 %vm147_vm0, %v128_v34  ;;  %vm4387_vm1 = vcmp.lt.f32.partialorder %v963_v12, 0.0004427343  ;;  %v1948_v38 = vand.u32 2147483647, %v4327_v24  ;;  %v1947_v28 = vmul.f32 %v4327_v24, %v1946_v9 }
 0x197   :  { %v3128_v43 = vpop.eup %3127  ;;  %v609_v55 = vmul.f32 1.442695, %v511_v62  ;;  %v1656_v26 = vmin.f32 %v4353_v50, 20.0  ;;  %1492 = vmatmul.bf16.gmra.mxu1 %v1324_v47  ;;  %v2479_v54 = vpack.c.bf16 %v2421_v3, %v2420_v61  ;;  %vm447_vm7 = vcmp.gt.f32.partialorder %v4331_v23, 20.0 }
 0x198   :  { %v3130_v41 = vpop.eup %3129  ;;  %v966_v0 = vadd.f32 1.0, %v3128_v43  ;;  %v969_v25 = vmul.f32 -0.5, %v3128_v43  ;;  %v972_v58 = vand.u32 2147483647, %v3128_v43  ;;  %vm4417_vm5 = vcmp.lt.f32.partialorder %v1948_v38, 0.0004427343 }
 0x199   :  { %v4364_v4 = vpop.eup %3131  ;;  %3135 = vpow2.f32 %v609_v55  ;;  %v1734_v45 = vmul.f32 1.442695, %v1656_v26  ;;  %2607 = vmatmul.bf16.gmra.mxu2 %v2479_v54  ;;  %v959_v18 = vmul.f32 0.6931472, %v3130_v41  ;;  %vm1592_vm12 = vcmp.gt.f32.partialorder %v4353_v50, 20.0 }
 0x19a   :  { %v340_v8 = vpop.f32.mrf.mxu0  ;;  %3137 = vlog2.f32 %v966_v0  ;;  %v1951_v6 = vadd.f32 1.0, %v4364_v4  ;;  %v970_v2 = vadd.f32 1.0, %v969_v25  ;;  %v3134_v63 = vpop.eup %3133  ;;  %v1954_v57 = vmul.f32 -0.5, %v4364_v4 }
 0x19b   :  { %3139 = vpow2.f32 %v1734_v45  ;;  %v4372_v51 = vadd.f32 %v340_v8, %v3610_v39  ;;  %v965_v10 = vsel %vm4387_vm1, %v962_v29, %v959_v18  ;;  %vm4393_vm2 = vcmp.lt.f32.partialorder %v972_v58, 0.0004427343 }
 0x19c   :  { %v1455_v17 = vpop.f32.mrf.mxu1  ;;  %3141 = vlog2.f32 %v1951_v6  ;;  %v971_v22 = vmul.f32 %v3128_v43, %v970_v2  ;;  %v1944_v46 = vmul.f32 0.6931472, %v3134_v63  ;;  %v1955_v27 = vadd.f32 1.0, %v1954_v57  ;;  %v96_v43 = vld [vmem:[%s5896_s1 + $0x1e8] sm:$0xff] }
 0x19d   :  { %v512_v7 = vmin.f32 %v4372_v51, 20.0  ;;  %v4379_v53 = vadd.f32 %v4307_v13, %v1455_v17  ;;  %v1957_v62 = vand.u32 2147483647, %v4364_v4  ;;  %v1277_v32 = vsel %vm445_vm14, %v4253_v5, %v965_v10 }
 0x19e   :  { %v1956_v41 = vmul.f32 %v4364_v4, %v1955_v27  ;;  %v129_v3 = vpack.c.bf16 %v96_v43, %v95_v52  ;;  %vm448_vm8 = vcmp.gt.f32.partialorder %v4372_v51, 20.0 }
 0x19f   :  { %v4383_v31 = vpop.eup %3135  ;;  %v611_v30 = vmul.f32 1.442695, %v512_v7  ;;  %v1657_v33 = vmin.f32 %v4379_v53, 20.0  ;;  %vm1958_vm6 = vcmp.lt.f32.partialorder %v1957_v62, 0.0004427343  ;;  %vm1593_vm13 = vcmp.gt.f32.partialorder %v4379_v53, 20.0 }
 0x1a0   :  { %v3138_v16 = vpop.eup %3137  ;;  %v975_v1 = vadd.f32 1.0, %v4383_v31  ;;  %v978_v42 = vmul.f32 -0.5, %v4383_v31 }
 0x1a1   :  { %v4401_v15 = vpop.eup %3139  ;;  %3143 = vpow2.f32 %v611_v30  ;;  %v1736_v40 = vmul.f32 1.442695, %v1657_v33  ;;  %v968_v11 = vmul.f32 0.6931472, %v3138_v16 }
 0x1a2   :  { %v343_v21 = vpop.f32.mrf.mxu0  ;;  %v1960_v49 = vadd.f32 1.0, %v4401_v15  ;;  %3145 = vlog2.f32 %v975_v1  ;;  %v3142_v47 = vpop.eup %3141  ;;  %v1963_v59 = vmul.f32 -0.5, %v4401_v15  ;;  %v979_v7 = vadd.f32 1.0, %v978_v42  ;;  %v98_v42 = vld [vmem:[%s5896_s1 + $0x1f8] sm:$0xff] }
 0x1a3   :  { %v4406_v20 = vadd.f32 %v343_v21, %v3610_v39  ;;  %v974_v48 = vsel %vm4393_vm2, %v971_v22, %v968_v11  ;;  %3147 = vpow2.f32 %v1736_v40  ;;  %v1953_v34 = vmul.f32 0.6931472, %v3142_v47 }
 0x1a4   :  { %v1458_v56 = vpop.f32.mrf.mxu1  ;;  %v1278_v24 = vsel %vm446_vm15, %v4298_v35, %v974_v48  ;;  %3149 = vlog2.f32 %v1960_v49  ;;  %v1950_v35 = vsel %vm4417_vm5, %v1947_v28, %v1944_v46  ;;  %v1964_v57 = vadd.f32 1.0, %v1963_v59 }
 0x1a5   :  { %v513_v55 = vmin.f32 %v4406_v20, 20.0  ;;  %v4429_v5 = vadd.f32 %v4307_v13, %v1458_v56  ;;  %v1325_v26 = vpack.c.bf16 %v1278_v24, %v1277_v32  ;;  %v1959_v25 = vsel %vm1958_vm6, %v1956_v41, %v1953_v34  ;;  %v97_v41 = vld [vmem:[%s5896_s1 + $0x1f0] sm:$0xff] }
 0x1a6   :  { %v2422_v4 = vsel %vm1590_vm3, %v4274_v44, %v1950_v35  ;;  %v2423_v17 = vsel %vm1591_vm4, %v4310_v60, %v1959_v25  ;;  %2845 = vmatmul.msk.bf16.gmra.mxu3 %vm147_vm0, %v129_v3  ;;  %v981_v44 = vand.u32 2147483647, %v4383_v31  ;;  %v1966_v36 = vand.u32 2147483647, %v4401_v15 }
 0x1a7   :  { %v3144_v61 = vpop.eup %3143  ;;  %v613_v0 = vmul.f32 1.442695, %v513_v55  ;;  %v1658_v45 = vmin.f32 %v4429_v5, 20.0  ;;  %1497 = vmatmul.bf16.gmra.mxu1 %v1325_v26  ;;  %v2480_v58 = vpack.c.bf16 %v2423_v17, %v2422_v4  ;;  %v980_v10 = vmul.f32 %v4383_v31, %v979_v7 }
 0x1a8   :  { %v984_v54 = vadd.f32 1.0, %v3144_v61  ;;  %v987_v8 = vmul.f32 -0.5, %v3144_v61  ;;  %v3146_v14 = vpop.eup %3145  ;;  %v990_v19 = vand.u32 2147483647, %v3144_v61  ;;  %vm4463_vm9 = vcmp.lt.f32.partialorder %v981_v44, 0.0004427343 }
 0x1a9   :  { %3151 = vpow2.f32 %v613_v0  ;;  %v1738_v12 = vmul.f32 1.442695, %v1658_v45  ;;  %v4444_v18 = vpop.eup %3147  ;;  %2612 = vmatmul.bf16.gmra.mxu2 %v2480_v58  ;;  %v977_v29 = vmul.f32 0.6931472, %v3146_v14  ;;  %v1965_v31 = vmul.f32 %v4401_v15, %v1964_v57 }
 0x1aa   :  { %v345_v6 = vpop.f32.mrf.mxu0  ;;  %3153 = vlog2.f32 %v984_v54  ;;  %v3150_v2 = vpop.eup %3149  ;;  %v988_v9 = vadd.f32 1.0, %v987_v8  ;;  %v1969_v16 = vadd.f32 1.0, %v4444_v18  ;;  %v1972_v1 = vmul.f32 -0.5, %v4444_v18 }
 0x1ab   :  { %3155 = vpow2.f32 %v1738_v12  ;;  %v4448_v63 = vadd.f32 %v345_v6, %v3610_v39  ;;  %v1962_v38 = vmul.f32 0.6931472, %v3150_v2  ;;  %v983_v28 = vsel %vm4463_vm9, %v980_v10, %v977_v29 }
 0x1ac   :  { %v1460_v60 = vpop.f32.mrf.mxu1  ;;  %3157 = vlog2.f32 %v1969_v16  ;;  %v989_v27 = vmul.f32 %v3144_v61, %v988_v9  ;;  %vm4473_vm10 = vcmp.lt.f32.partialorder %v1966_v36, 0.0004427343  ;;  %vm991_vm11 = vcmp.lt.f32.partialorder %v990_v19, 0.0004427343 }
 0x1ad   :  { %v514_v30 = vmin.f32 %v4448_v63, 20.0  ;;  %v4454_v33 = vadd.f32 %v4307_v13, %v1460_v60  ;;  %v1968_v24 = vsel %vm4473_vm10, %v1965_v31, %v1962_v38  ;;  %v1973_v37 = vadd.f32 1.0, %v1972_v1 }
 0x1ae   :  { %v1975_v43 = vand.u32 2147483647, %v4444_v18  ;;  %v1279_v26 = vsel %vm447_vm7, %v4331_v23, %v983_v28  ;;  %v2424_v54 = vsel %vm1592_vm12, %v4353_v50, %v1968_v24  ;;  %v130_v12 = vpack.c.bf16 %v98_v42, %v97_v41 }
 0x1af   :  { %v4460_v40 = vpop.eup %3151  ;;  %v615_v11 = vmul.f32 1.442695, %v514_v30  ;;  %v1659_v22 = vmin.f32 %v4454_v33, 20.0  ;;  %v1974_v25 = vmul.f32 %v4444_v18, %v1973_v37  ;;  %vm450_vm1 = vcmp.gt.f32.partialorder %v4448_v63, 20.0 }
 0x1b0   :  { %v3154_v46 = vpop.eup %3153  ;;  %v993_v49 = vadd.f32 1.0, %v4460_v40  ;;  %vm1976_vm14 = vcmp.lt.f32.partialorder %v1975_v43, 0.0004427343  ;;  %v999_v29 = vand.u32 2147483647, %v4460_v40  ;;  %vm1594_vm4 = vcmp.gt.f32.partialorder %v4429_v5, 20.0 }
 0x1b1   :  { %v4471_v48 = vpop.eup %3155  ;;  %3159 = vpow2.f32 %v615_v11  ;;  %v1740_v62 = vmul.f32 1.442695, %v1659_v22  ;;  %v986_v47 = vmul.f32 0.6931472, %v3154_v46  ;;  %vm1595_vm5 = vcmp.gt.f32.partialorder %v4454_v33, 20.0 }
 0x1b2   :  { %v348_v32 = vpop.f32.mrf.mxu0  ;;  %3161 = vlog2.f32 %v993_v49  ;;  %v1978_v34 = vadd.f32 1.0, %v4471_v48  ;;  %v3158_v61 = vpop.eup %3157  ;;  %v1981_v9 = vmul.f32 -0.5, %v4471_v48  ;;  %vm4524_vm15 = vcmp.lt.f32.partialorder %v999_v29, 0.0004427343 }
 0x1b3   :  { %3163 = vpow2.f32 %v1740_v62  ;;  %v4480_v15 = vadd.f32 %v348_v32, %v3610_v39  ;;  %v992_v52 = vsel %vm991_vm11, %v989_v27, %v986_v47  ;;  %v1971_v3 = vmul.f32 0.6931472, %v3158_v61 }
 0x1b4   :  { %v1463_v55 = vpop.f32.mrf.mxu1  ;;  %v1280_v35 = vsel %vm448_vm8, %v4372_v51, %v992_v52  ;;  %v996_v51 = vmul.f32 -0.5, %v4460_v40  ;;  %3165 = vlog2.f32 %v1978_v34  ;;  %v1982_v21 = vadd.f32 1.0, %v1981_v9 }
 0x1b5   :  { %v515_v0 = vmin.f32 %v4480_v15, 20.0  ;;  %v4499_v23 = vadd.f32 %v4307_v13, %v1463_v55  ;;  %v1326_v45 = vpack.c.bf16 %v1280_v35, %v1279_v26  ;;  %v1977_v17 = vsel %vm1976_vm14, %v1974_v25, %v1971_v3 }
 0x1b6   :  { %v2425_v50 = vsel %vm1593_vm13, %v4379_v53, %v1977_v17  ;;  %v997_v18 = vadd.f32 1.0, %v996_v51  ;;  %2846 = vmatmul.msk.bf16.gmra.mxu3 %vm147_vm0, %v130_v12  ;;  %vm449_vm0 = vcmp.gt.f32.partialorder %v4406_v20, 20.0  ;;  %v1984_v56 = vand.u32 2147483647, %v4471_v48 }
 0x1b7   :  { %v3160_v8 = vpop.eup %3159  ;;  %v617_v59 = vmul.f32 1.442695, %v515_v0  ;;  %v1660_v14 = vmin.f32 %v4499_v23, 20.0  ;;  %1502 = vmatmul.bf16.gmra.mxu1 %v1326_v45  ;;  %v2481_v44 = vpack.c.bf16 %v2425_v50, %v2424_v54  ;;  %v1983_v35 = vmul.f32 %v4471_v48, %v1982_v21 }
 0x1b8   :  { %v3162_v4 = vpop.eup %3161  ;;  %v1002_v58 = vadd.f32 1.0, %v3160_v8  ;;  %v1005_v6 = vmul.f32 -0.5, %v3160_v8  ;;  %v1008_v10 = vand.u32 2147483647, %v3160_v8  ;;  %v998_v1 = vmul.f32 %v4460_v40, %v997_v18 }
 0x1b9   :  { %v4506_v7 = vpop.eup %3163  ;;  %3167 = vpow2.f32 %v617_v59  ;;  %v1742_v2 = vmul.f32 1.442695, %v1660_v14  ;;  %v995_v30 = vmul.f32 0.6931472, %v3162_v4  ;;  %2617 = vmatmul.bf16.gmra.mxu2 %v2481_v44  ;;  %vm4557_vm3 = vcmp.lt.f32.partialorder %v1984_v56, 0.0004427343 }
 0x1ba   :  { %v350_v60 = vpop.f32.mrf.mxu0  ;;  %3169 = vlog2.f32 %v1002_v58  ;;  %v1006_v16 = vadd.f32 1.0, %v1005_v6  ;;  %v1987_v53 = vadd.f32 1.0, %v4506_v7  ;;  %v3166_v11 = vpop.eup %3165  ;;  %v1990_v46 = vmul.f32 -0.5, %v4506_v7 }
 0x1bb   :  { %3171 = vpow2.f32 %v1742_v2  ;;  %v4515_v57 = vadd.f32 %v350_v60, %v3610_v39  ;;  %v1001_v49 = vsel %vm4524_vm15, %v998_v1, %v995_v30  ;;  %vm4535_vm2 = vcmp.lt.f32.partialorder %v1008_v10, 0.0004427343 }
 0x1bc   :  { %v1465_v36 = vpop.f32.mrf.mxu1  ;;  %3173 = vlog2.f32 %v1987_v53  ;;  %v1007_v62 = vmul.f32 %v3160_v8, %v1006_v16  ;;  %v1980_v43 = vmul.f32 0.6931472, %v3166_v11  ;;  %v1281_v26 = vsel %vm449_vm0, %v4406_v20, %v1001_v49 }
 0x1bd   :  { %v516_v19 = vmin.f32 %v4515_v57, 20.0  ;;  %v4521_v38 = vadd.f32 %v4307_v13, %v1465_v36  ;;  %v1991_v34 = vadd.f32 1.0, %v1990_v46  ;;  %v1993_v41 = vand.u32 2147483647, %v4506_v7  ;;  %v4581_v36 = vld [vmem:[%s5903_s8] ss:$0 sm:$0xff] }
 0x1be   :  { %v1986_v59 = vsel %vm4557_vm3, %v1983_v35, %v1980_v43  ;;  %vm451_vm7 = vcmp.gt.f32.partialorder %v4480_v15, 20.0  ;;  %vm452_vm8 = vcmp.gt.f32.partialorder %v4515_v57, 20.0  ;;  %vm1596_vm12 = vcmp.gt.f32.partialorder %v4499_v23, 20.0 }
 0x1bf   :  { %v4529_v28 = vpop.eup %3167  ;;  %v619_v27 = vmul.f32 1.442695, %v516_v19  ;;  %v1661_v31 = vmin.f32 %v4521_v38, 20.0  ;;  %v1992_v14 = vmul.f32 %v4506_v7, %v1991_v34  ;;  %vm1994_vm6 = vcmp.lt.f32.partialorder %v1993_v41, 0.0004427343 }
 0x1c0   :  { %v3170_v40 = vpop.eup %3169  ;;  %v1011_v32 = vadd.f32 1.0, %v4529_v28  ;;  %v1014_v3 = vmul.f32 -0.5, %v4529_v28  ;;  %v2426_v6 = vsel %vm1594_vm4, %v4429_v5, %v1986_v59  ;;  %v1017_v10 = vand.u32 2147483647, %v4529_v28 }
 0x1c1   :  { %v4541_v24 = vpop.eup %3171  ;;  %3175 = vpow2.f32 %v619_v27  ;;  %v1744_v37 = vmul.f32 1.442695, %v1661_v31  ;;  %v1004_v52 = vmul.f32 0.6931472, %v3170_v40  ;;  %vm1597_vm14 = vcmp.gt.f32.partialorder %v4521_v38, 20.0 }
 0x1c2   :  { %v353_v55 = vpop.f32.mrf.mxu0  ;;  %3177 = vlog2.f32 %v1011_v32  ;;  %v1996_v0 = vadd.f32 1.0, %v4541_v24  ;;  %v3174_v45 = vpop.eup %3173  ;;  %v1015_v2 = vadd.f32 1.0, %v1014_v3  ;;  %v1999_v5 = vmul.f32 -0.5, %v4541_v24 }
 0x1c3   :  { %v4549_v42 = vadd.f32 %v353_v55, %v3610_v39  ;;  %v1010_v61 = vsel %vm4535_vm2, %v1007_v62, %v1004_v52  ;;  %3179 = vpow2.f32 %v1744_v37  ;;  %vm4601_vm9 = vcmp.lt.f32.partialorder %v1017_v10, 0.0004427343 }
 0x1c4   :  { %v1468_v51 = vpop.f32.mrf.mxu1  ;;  %v1282_v20 = vsel %vm450_vm1, %v4448_v63, %v1010_v61  ;;  %v1989_v63 = vmul.f32 0.6931472, %v3174_v45  ;;  %3181 = vlog2.f32 %v1996_v0  ;;  %v1016_v19 = vmul.f32 %v4529_v28, %v1015_v2 }
 0x1c5   :  { %v517_v25 = vmin.f32 %v4549_v42, 20.0  ;;  %v4564_v54 = vadd.f32 %v4307_v13, %v1468_v51  ;;  %v1327_v8 = vpack.c.bf16 %v1282_v20, %v1281_v26  ;;  %v2000_v40 = vadd.f32 1.0, %v1999_v5 }
 0x1c6   :  { %v1995_v58 = vsel %vm1994_vm6, %v1992_v14, %v1989_v63  ;;  %v2002_v55 = vand.u32 2147483647, %v4541_v24  ;;  %vm453_vm0 = vcmp.gt.f32.partialorder %v4549_v42, 20.0 }
 0x1c7   :  { %v3176_v12 = vpop.eup %3175  ;;  %v621_v4 = vmul.f32 1.442695, %v517_v25  ;;  %v1662_v17 = vmin.f32 %v4564_v54, 20.0  ;;  %1507 = vmatmul.bf16.gmra.mxu1 %v1327_v8  ;;  %v2427_v60 = vsel %vm1595_vm5, %v4454_v33, %v1995_v58  ;;  %v2001_v45 = vmul.f32 %v4541_v24, %v2000_v40 }
 0x1c8   :  { %v1020_v50 = vadd.f32 1.0, %v3176_v12  ;;  %v3178_v18 = vpop.eup %3177  ;;  %v1023_v7 = vmul.f32 -0.5, %v3176_v12  ;;  %v2482_v9 = vpack.c.bf16 %v2427_v60, %v2426_v6  ;;  %v1026_v49 = vand.u32 2147483647, %v3176_v12 }
 0x1c9   :  { %3183 = vpow2.f32 %v621_v4  ;;  %v1746_v44 = vmul.f32 1.442695, %v1662_v17  ;;  %v4576_v29 = vpop.eup %3179  ;;  %v1013_v53 = vmul.f32 0.6931472, %v3178_v18  ;;  %vm4625_vm11 = vcmp.lt.f32.partialorder %v2002_v55, 0.0004427343 }
 0x1ca   :  { %v355_v30 = vpop.f32.mrf.mxu0  ;;  %3185 = vlog2.f32 %v1020_v50  ;;  %2622 = vmatmul.bf16.gmra.mxu2 %v2482_v9  ;;  %v3182_v1 = vpop.eup %3181  ;;  %v1024_v46 = vadd.f32 1.0, %v1023_v7  ;;  %v2005_v27 = vadd.f32 1.0, %v4576_v29  ;;  %v2008_v62 = vmul.f32 -0.5, %v4576_v29 }
 0x1cb   :  { %3187 = vpow2.f32 %v1746_v44  ;;  %v4585_v16 = vadd.f32 %v355_v30, %v3610_v39  ;;  %v1019_v52 = vsel %vm4601_vm9, %v1016_v19, %v1013_v53  ;;  %v1998_v43 = vmul.f32 0.6931472, %v3182_v1 }
 0x1cc   :  { %v1470_v33 = vpop.f32.mrf.mxu1  ;;  %v2583_v21 = vpop.f32.mrf.mxu2  ;;  %3189 = vlog2.f32 %v2005_v27  ;;  %v1025_v61 = vmul.f32 %v3176_v12, %v1024_v46  ;;  %vm1027_vm10 = vcmp.lt.f32.partialorder %v1026_v49, 0.0004427343  ;;  %v2009_v51 = vadd.f32 1.0, %v2008_v62 }
 0x1cd   :  { %v518_v11 = vmin.f32 %v4585_v16, 20.0  ;;  %v4593_v22 = vadd.f32 %v4307_v13, %v1470_v33  ;;  %v2584_v31 = vadd.f32 %v4581_v36, %v2583_v21  ;;  %v2011_v3 = vand.u32 2147483647, %v4576_v29 }
 0x1ce   :  { %v1283_v8 = vsel %vm451_vm7, %v4480_v15, %v1019_v52  ;;  %v2004_v15 = vsel %vm4625_vm11, %v2001_v45, %v1998_v43  ;;  %v2010_v2 = vmul.f32 %v4576_v29, %v2009_v51  ;;  %vm1598_vm2 = vcmp.gt.f32.partialorder %v4564_v54, 20.0 }
 0x1cf   :  { %v4598_v47 = vpop.eup %3183  ;;  %v623_v56 = vmul.f32 1.442695, %v518_v11  ;;  %v1663_v28 = vmin.f32 %v4593_v22, 20.0  ;;  %2743 = vst [vmem:[%s5904_s9] sm:$0xff] %v2584_v31  ;;  %vm2012_vm13 = vcmp.lt.f32.partialorder %v2011_v3, 0.0004427343  ;;  %v2428_v5 = vsel %vm1596_vm12, %v4499_v23, %v2004_v15 }
 0x1d0   :  { %v3186_v37 = vpop.eup %3185  ;;  %v1029_v26 = vadd.f32 1.0, %v4598_v47  ;;  %v1032_v50 = vmul.f32 -0.5, %v4598_v47  ;;  %v1035_v11 = vand.u32 2147483647, %v4598_v47  ;;  %vm454_vm3 = vcmp.gt.f32.partialorder %v4585_v16, 20.0 }
 0x1d1   :  { %v4612_v35 = vpop.eup %3187  ;;  %3191 = vpow2.f32 %v623_v56  ;;  %v1748_v34 = vmul.f32 1.442695, %v1663_v28  ;;  %v1022_v41 = vmul.f32 0.6931472, %v3186_v37  ;;  %vm1599_vm5 = vcmp.gt.f32.partialorder %v4593_v22, 20.0 }
 0x1d2   :  { %v358_v0 = vpop.f32.mrf.mxu0  ;;  %3193 = vlog2.f32 %v1029_v26  ;;  %v2014_v63 = vadd.f32 1.0, %v4612_v35  ;;  %v3190_v14 = vpop.eup %3189  ;;  %v1033_v1 = vadd.f32 1.0, %v1032_v50  ;;  %v2017_v27 = vmul.f32 -0.5, %v4612_v35 }
 0x1d3   :  { %3195 = vpow2.f32 %v1748_v34  ;;  %v4616_v20 = vadd.f32 %v358_v0, %v3610_v39  ;;  %v1028_v48 = vsel %vm1027_vm10, %v1025_v61, %v1022_v41  ;;  %vm4663_vm15 = vcmp.lt.f32.partialorder %v1035_v11, 0.0004427343 }
 0x1d4   :  { %v1473_v25 = vpop.f32.mrf.mxu1  ;;  %v1284_v59 = vsel %vm452_vm8, %v4515_v57, %v1028_v48  ;;  %v2585_v17 = vpop.f32.mrf.mxu2  ;;  %v2007_v57 = vmul.f32 0.6931472, %v3190_v14  ;;  %3197 = vlog2.f32 %v2014_v63  ;;  %v1034_v37 = vmul.f32 %v4598_v47, %v1033_v1 }
 0x1d5   :  { %v519_v12 = vmin.f32 %v4616_v20, 20.0  ;;  %v4632_v4 = vadd.f32 %v4307_v13, %v1473_v25  ;;  %v1328_v58 = vpack.c.bf16 %v1284_v59, %v1283_v8  ;;  %v2586_v6 = vadd.f32 %v4581_v36, %v2585_v17 }
 0x1d6   :  { %v2013_v9 = vsel %vm2012_vm13, %v2010_v2, %v2007_v57  ;;  %v2018_v61 = vadd.f32 1.0, %v2017_v27  ;;  %v2020_v48 = vand.u32 2147483647, %v4612_v35  ;;  %vm455_vm7 = vcmp.gt.f32.partialorder %v4616_v20, 20.0 }
 0x1d7   :  { %v3192_v18 = vpop.eup %3191  ;;  %v625_v44 = vmul.f32 1.442695, %v519_v12  ;;  %v1664_v60 = vmin.f32 %v4632_v4, 20.0  ;;  %1512 = vmatmul.bf16.gmra.mxu1 %v1328_v58  ;;  %2744 = vst [vmem:[%s5904_s9 + $0x8] sm:$0xff] %v2586_v6  ;;  %v2429_v10 = vsel %vm1597_vm14, %v4521_v38, %v2013_v9  ;;  %vm1600_vm12 = vcmp.gt.f32.partialorder %v4632_v4, 20.0 }
 0x1d8   :  { %v3194_v7 = vpop.eup %3193  ;;  %v1038_v30 = vadd.f32 1.0, %v3192_v18  ;;  %v1041_v33 = vmul.f32 -0.5, %v3192_v18  ;;  %v2483_v53 = vpack.c.bf16 %v2429_v10, %v2428_v5  ;;  %v1044_v40 = vand.u32 2147483647, %v3192_v18 }
 0x1d9   :  { %v4645_v29 = vpop.eup %3195  ;;  %3199 = vpow2.f32 %v625_v44  ;;  %v1750_v21 = vmul.f32 1.442695, %v1664_v60  ;;  %v4654_v31 = vpop.f32.mrf.mxu3  ;;  %v1031_v23 = vmul.f32 0.6931472, %v3194_v7  ;;  %vm4701_vm4 = vcmp.lt.f32.partialorder %v2020_v48, 0.0004427343 }
 0x1da   :  { %v360_v19 = vpop.f32.mrf.mxu0  ;;  %3201 = vlog2.f32 %v1038_v30  ;;  %2627 = vmatmul.bf16.gmra.mxu2 %v2483_v53  ;;  %v2023_v38 = vadd.f32 1.0, %v4645_v29  ;;  %v1042_v28 = vadd.f32 1.0, %v1041_v33  ;;  %v3198_v32 = vpop.eup %3197  ;;  %v2026_v43 = vmul.f32 -0.5, %v4645_v29 }
 0x1db   :  { %v4651_v46 = vadd.f32 %v360_v19, %v3610_v39  ;;  %v1037_v47 = vsel %vm4663_vm15, %v1034_v37, %v1031_v23  ;;  %vm4674_vm1 = vcmp.lt.f32.partialorder %v1044_v40, 0.0004427343  ;;  %v2016_v24 = vmul.f32 0.6931472, %v3198_v32 }
 0x1dc   :  { %v1475_v49 = vpop.f32.mrf.mxu1  ;;  %3203 = vlog2.f32 %v2023_v38  ;;  %v2588_v41 = vpop.f32.mrf.mxu2  ;;  %v1043_v8 = vmul.f32 %v3192_v18, %v1042_v28  ;;  %v2027_v63 = vadd.f32 1.0, %v2026_v43  ;;  %v2029_v58 = vand.u32 2147483647, %v4645_v29 }
 0x1dd   :  { %v520_v62 = vmin.f32 %v4651_v46, 20.0  ;;  %v4660_v56 = vadd.f32 %v4307_v13, %v1475_v49  ;;  %3205 = vpow2.f32 %v1750_v21  ;;  %v2589_v45 = vadd.f32 %v4581_v36, %v2588_v41 }
 0x1de   :  { %v1285_v2 = vsel %vm453_vm0, %v4549_v42, %v1037_v47  ;;  %v2019_v18 = vmul.f32 %v4612_v35, %v2018_v61  ;;  %vm2030_vm6 = vcmp.lt.f32.partialorder %v2029_v58, 0.0004427343  ;;  %vm456_vm10 = vcmp.gt.f32.partialorder %v4651_v46, 20.0 }
 0x1df   :  { %v4668_v55 = vpop.eup %3199  ;;  %v627_v26 = vmul.f32 1.442695, %v520_v62  ;;  %v1665_v34 = vmin.f32 %v4660_v56, 20.0  ;;  %2745 = vst [vmem:[%s5904_s9 + $0x10] sm:$0xff] %v2589_v45  ;;  %v4726_v62 = vadd.f32 %v4654_v31, %v3610_v39  ;;  %vm1601_vm13 = vcmp.gt.f32.partialorder %v4660_v56, 20.0 }
 0x1e0   :  { %v3202_v0 = vpop.eup %3201  ;;  %v1047_v14 = vadd.f32 1.0, %v4668_v55  ;;  %v2022_v42 = vsel %vm4701_vm4, %v2019_v18, %v2016_v24  ;;  %v1050_v53 = vmul.f32 -0.5, %v4668_v55  ;;  %v1053_v28 = vand.u32 2147483647, %v4668_v55 }
 0x1e1   :  { %3207 = vpow2.f32 %v627_v26  ;;  %v1752_v3 = vmul.f32 1.442695, %v1665_v34  ;;  %v1040_v25 = vmul.f32 0.6931472, %v3202_v0  ;;  %v4691_v15 = vpop.f32.mrf.mxu3  ;;  %v527_v45 = vmin.f32 %v4726_v62, 20.0 }
 0x1e2   :  { %v363_v59 = vpop.f32.mrf.mxu0  ;;  %v3204_v6 = vpop.eup %3203  ;;  %3209 = vlog2.f32 %v1047_v14  ;;  %v1051_v37 = vadd.f32 1.0, %v1050_v53  ;;  %vm4744_vm8 = vcmp.lt.f32.partialorder %v1053_v28, 0.0004427343 }
 0x1e3   :  { %v4686_v12 = vadd.f32 %v363_v59, %v3610_v39  ;;  %v1046_v17 = vsel %vm4674_vm1, %v1043_v8, %v1040_v25  ;;  %v4698_v44 = vpop.eup %3205  ;;  %3211 = vpow2.f32 %v1752_v3  ;;  %v2025_v30 = vmul.f32 0.6931472, %v3204_v6 }
 0x1e4   :  { %v1478_v57 = vpop.f32.mrf.mxu1  ;;  %v1286_v50 = vsel %vm454_vm3, %v4585_v16, %v1046_v17  ;;  %v2028_v16 = vmul.f32 %v4645_v29, %v2027_v63  ;;  %v2590_v33 = vpop.f32.mrf.mxu2  ;;  %v2032_v21 = vadd.f32 1.0, %v4698_v44  ;;  %v2430_v29 = vsel %vm1598_vm2, %v4564_v54, %v2022_v42 }
 0x1e5   :  { %v521_v60 = vmin.f32 %v4686_v12, 20.0  ;;  %v1329_v7 = vpack.c.bf16 %v1286_v50, %v1285_v2  ;;  %v4710_v10 = vadd.f32 %v4307_v13, %v1478_v57  ;;  %v2591_v19 = vadd.f32 %v4581_v36, %v2590_v33 }
 0x1e6   :  { %v2031_v1 = vsel %vm2030_vm6, %v2028_v16, %v2025_v30  ;;  %v2035_v31 = vmul.f32 -0.5, %v4698_v44  ;;  %v1052_v24 = vmul.f32 %v4668_v55, %v1051_v37  ;;  %v2038_v18 = vand.u32 2147483647, %v4698_v44 }
 0x1e7   :  { %v3208_v35 = vpop.eup %3207  ;;  %v629_v5 = vmul.f32 1.442695, %v521_v60  ;;  %1517 = vmatmul.bf16.gmra.mxu1 %v1329_v7  ;;  %v2431_v27 = vsel %vm1599_vm5, %v4593_v22, %v2031_v1  ;;  %2746 = vst [vmem:[%s5904_s9 + $0x18] sm:$0xff] %v2591_v19  ;;  %v1666_v32 = vmin.f32 %v4710_v10, 20.0  ;;  %v641_v1 = vmul.f32 1.442695, %v527_v45 }
 0x1e8   :  { %v1056_v11 = vadd.f32 1.0, %v3208_v35  ;;  %v1059_v49 = vmul.f32 -0.5, %v3208_v35  ;;  %v3210_v23 = vpop.eup %3209  ;;  %v2484_v40 = vpack.c.bf16 %v2431_v27, %v2430_v29  ;;  %v1062_v26 = vand.u32 2147483647, %v3208_v35 }
 0x1e9   :  { %3213 = vpow2.f32 %v629_v5  ;;  %v4729_v54 = vpop.eup %3211  ;;  %v4735_v52 = vpop.f32.mrf.mxu3  ;;  %v1049_v61 = vmul.f32 0.6931472, %v3210_v23  ;;  %v1754_v25 = vmul.f32 1.442695, %v1666_v32  ;;  %v2036_v58 = vadd.f32 1.0, %v2035_v31 }
 0x1ea   :  { %v365_v38 = vpop.f32.mrf.mxu0  ;;  %3215 = vlog2.f32 %v1056_v11  ;;  %2632 = vmatmul.bf16.gmra.mxu2 %v2484_v40  ;;  %v1060_v0 = vadd.f32 1.0, %v1059_v49  ;;  %v2041_v51 = vadd.f32 1.0, %v4729_v54  ;;  %v2044_v48 = vmul.f32 -0.5, %v4729_v54 }
 0x1eb   :  { %v4733_v22 = vadd.f32 %v365_v38, %v3610_v39  ;;  %3217 = vlog2.f32 %v2032_v21  ;;  %vm4755_vm9 = vcmp.lt.f32.partialorder %v1062_v26, 0.0004427343  ;;  %v1055_v6 = vsel %vm4744_vm8, %v1052_v24, %v1049_v61 }
 0x1ec   :  { %v1480_v43 = vpop.f32.mrf.mxu1  ;;  %3219 = vlog2.f32 %v2041_v51  ;;  %v1061_v2 = vmul.f32 %v3208_v35, %v1060_v0  ;;  %v2045_v60 = vadd.f32 1.0, %v2044_v48  ;;  %v1287_v5 = vsel %vm455_vm7, %v4616_v20, %v1055_v6 }
 0x1ed   :  { %v522_v34 = vmin.f32 %v4733_v22, 20.0  ;;  %v4741_v41 = vadd.f32 %v4307_v13, %v1480_v43  ;;  %v2593_v13 = vpop.f32.mrf.mxu2  ;;  %v2047_v53 = vand.u32 2147483647, %v4729_v54  ;;  %v2037_v21 = vmul.f32 %v4698_v44, %v2036_v58 }
 0x1ee   :  { %v2594_v14 = vadd.f32 %v4581_v36, %v2593_v13  ;;  %vm4781_vm11 = vcmp.lt.f32.partialorder %v2038_v18, 0.0004427343  ;;  %v2046_v20 = vmul.f32 %v4729_v54, %v2045_v60  ;;  %v4797_v54 = vld [vmem:[%s5901_s6] ss:$0 sm:$0xff]  ;;  %v4804_v43 = vadd.f32 %v4691_v15, %v3610_v39 }
 0x1ef   :  { %v4750_v3 = vpop.eup %3213  ;;  %v631_v8 = vmul.f32 1.442695, %v522_v34  ;;  %v1667_v59 = vmin.f32 %v4741_v41, 20.0  ;;  %vm2048_vm14 = vcmp.lt.f32.partialorder %v2047_v53, 0.0004427343  ;;  %vm457_vm0 = vcmp.gt.f32.partialorder %v4686_v12, 20.0 }
 0x1f0   :  { %v3216_v63 = vpop.eup %3215  ;;  %2747 = vst [vmem:[%s5904_s9 + $0x20] sm:$0xff] %v2594_v14  ;;  %v1065_v7 = vadd.f32 1.0, %v4750_v3  ;;  %v1068_v44 = vmul.f32 -0.5, %v4750_v3  ;;  %v1071_v24 = vand.u32 2147483647, %v4750_v3  ;;  %v4830_v14 = vadd.f32 %v4735_v52, %v3610_v39 }
 0x1f1   :  { %3221 = vpow2.f32 %v631_v8  ;;  %v1058_v57 = vmul.f32 0.6931472, %v3216_v63  ;;  %v3218_v50 = vpop.eup %3217  ;;  %v1756_v9 = vmul.f32 1.442695, %v1667_v59  ;;  %v4777_v19 = vpop.f32.mrf.mxu3  ;;  %vm458_vm1 = vcmp.gt.f32.partialorder %v4733_v22, 20.0 }
 0x1f2   :  { %v368_v55 = vpop.f32.mrf.mxu0  ;;  %v2034_v16 = vmul.f32 0.6931472, %v3218_v50  ;;  %3223 = vpow2.f32 %v1754_v25  ;;  %v3220_v29 = vpop.eup %3219  ;;  %v1069_v15 = vadd.f32 1.0, %v1068_v44  ;;  %vm4843_vm15 = vcmp.lt.f32.partialorder %v1071_v24, 0.0004427343 }
 0x1f3   :  { %v4768_v42 = vadd.f32 %v368_v55, %v3610_v39  ;;  %v1064_v30 = vsel %vm4755_vm9, %v1061_v2, %v1058_v57  ;;  %3225 = vlog2.f32 %v1065_v7  ;;  %v2043_v38 = vmul.f32 0.6931472, %v3220_v29 }
 0x1f4   :  { %v1483_v35 = vpop.f32.mrf.mxu1  ;;  %v1288_v33 = vsel %vm456_vm10, %v4651_v46, %v1064_v30  ;;  %3227 = vpow2.f32 %v1756_v9  ;;  %v2040_v40 = vsel %vm4781_vm11, %v2037_v21, %v2034_v16  ;;  %v1070_v50 = vmul.f32 %v4750_v3, %v1069_v15 }
 0x1f5   :  { %v1330_v11 = vpack.c.bf16 %v1288_v33, %v1287_v5  ;;  %v523_v27 = vmin.f32 %v4768_v42, 20.0  ;;  %v2595_v46 = vpop.f32.mrf.mxu2  ;;  %3229 = vpow2.f32 %v641_v1  ;;  %v4800_v32 = vadd.f32 %v4797_v54, %v1483_v35 }
 0x1f6   :  { %v2596_v28 = vadd.f32 %v4581_v36, %v2595_v46  ;;  %v2049_v37 = vsel %vm2048_vm14, %v2046_v20, %v2043_v38  ;;  %v2432_v34 = vsel %vm1600_vm12, %v4632_v4, %v2040_v40  ;;  %vm1602_vm2 = vcmp.gt.f32.partialorder %v4710_v10, 20.0 }
 0x1f7   :  { %v4786_v23 = vpop.eup %3221  ;;  %1522 = vmatmul.bf16.gmra.mxu1 %v1330_v11  ;;  %v633_v31 = vmul.f32 1.442695, %v523_v27  ;;  %v2433_v61 = vsel %vm1601_vm13, %v4660_v56, %v2049_v37  ;;  %v528_v56 = vmin.f32 %v4804_v43, 20.0  ;;  %v1668_v63 = vmin.f32 %v4800_v32, 20.0 }
 0x1f8   :  { %v4806_v26 = vpop.eup %3223  ;;  %2748 = vst [vmem:[%s5904_s9 + $0x28] sm:$0xff] %v2596_v28  ;;  %v1074_v45 = vadd.f32 1.0, %v4786_v23  ;;  %v2485_v51 = vpack.c.bf16 %v2433_v61, %v2432_v34  ;;  %v1077_v25 = vmul.f32 -0.5, %v4786_v23  ;;  %v1080_v18 = vand.u32 2147483647, %v4786_v23 }
 0x1f9   :  { %v3226_v47 = vpop.eup %3225  ;;  %v2050_v58 = vadd.f32 1.0, %v4806_v26  ;;  %v4833_v6 = vpop.f32.mrf.mxu3  ;;  %v2053_v52 = vmul.f32 -0.5, %v4806_v26  ;;  %v1758_v5 = vmul.f32 1.442695, %v1668_v63  ;;  %v2056_v29 = vand.u32 2147483647, %v4806_v26 }
 0x1fa   :  { %v370_v0 = vpop.f32.mrf.mxu0  ;;  %3231 = vlog2.f32 %v1074_v45  ;;  %v4818_v59 = vpop.eup %3227  ;;  %2637 = vmatmul.bf16.gmra.mxu2 %v2485_v51  ;;  %v1067_v17 = vmul.f32 0.6931472, %v3226_v47  ;;  %v1078_v55 = vadd.f32 1.0, %v1077_v25  ;;  %v643_v27 = vmul.f32 1.442695, %v528_v56 }
 0x1fb   :  { %v4815_v48 = vadd.f32 %v370_v0, %v3610_v39  ;;  %v4835_v57 = vpop.eup %3229  ;;  %3233 = vpow2.f32 %v633_v31  ;;  %v2059_v7 = vadd.f32 1.0, %v4818_v59  ;;  %v2062_v35 = vmul.f32 -0.5, %v4818_v59 }
 0x1fc   :  { %v1485_v8 = vpop.f32.mrf.mxu1  ;;  %3235 = vlog2.f32 %v2050_v58  ;;  %v1073_v53 = vsel %vm4843_vm15, %v1070_v50, %v1067_v17  ;;  %v1079_v21 = vmul.f32 %v4786_v23, %v1078_v55  ;;  %v529_v49 = vmin.f32 %v4830_v14, 20.0 }
 0x1fd   :  { %v524_v4 = vmin.f32 %v4815_v48, 20.0  ;;  %v4824_v13 = vadd.f32 %v4797_v54, %v1485_v8  ;;  %v2598_v2 = vpop.f32.mrf.mxu2  ;;  %3237 = vlog2.f32 %v2059_v7  ;;  %vm1081_vm3 = vcmp.lt.f32.partialorder %v1080_v18, 0.0004427343 }
 0x1fe   :  { %v2599_v60 = vadd.f32 %v4581_v36, %v2598_v2  ;;  %v2054_v46 = vadd.f32 1.0, %v2053_v52  ;;  %v2063_v28 = vadd.f32 1.0, %v2062_v35  ;;  %v1289_v23 = vsel %vm457_vm0, %v4686_v12, %v1073_v53 }
 0x1ff   :  { %v635_v9 = vmul.f32 1.442695, %v524_v4  ;;  %v1669_v30 = vmin.f32 %v4824_v13, 20.0  ;;  %v2065_v34 = vand.u32 2147483647, %v4818_v59  ;;  %vm1603_vm4 = vcmp.gt.f32.partialorder %v4741_v41, 20.0 }
 0x200   :  { %v3232_v3 = vpop.eup %3231  ;;  %2749 = vst [vmem:[%s5904_s9 + $0x30] sm:$0xff] %v2599_v60  ;;  %vm4872_vm5 = vcmp.lt.f32.partialorder %v2056_v29, 0.0004427343  ;;  %v2064_v56 = vmul.f32 %v4818_v59, %v2063_v28  ;;  %v645_v63 = vmul.f32 1.442695, %v529_v49  ;;  %v4897_v59 = vadd.f32 %v4777_v19, %v3610_v39 }
 0x201   :  { %v1076_v11 = vmul.f32 0.6931472, %v3232_v3  ;;  %v4861_v40 = vpop.eup %3233  ;;  %3239 = vpow2.f32 %v635_v9  ;;  %v1760_v38 = vmul.f32 1.442695, %v1669_v30  ;;  %v4881_v8 = vpop.f32.mrf.mxu3  ;;  %vm2066_vm6 = vcmp.lt.f32.partialorder %v2065_v34, 0.0004427343 }
 0x202   :  { %v373_v33 = vpop.f32.mrf.mxu0  ;;  %v3236_v37 = vpop.eup %3235  ;;  %3241 = vpow2.f32 %v1758_v5  ;;  %v1083_v24 = vadd.f32 1.0, %v4861_v40  ;;  %v1086_v35 = vmul.f32 -0.5, %v4861_v40  ;;  %v530_v49 = vmin.f32 %v4897_v59, 20.0 }
 0x203   :  { %v4856_v1 = vadd.f32 %v373_v33, %v3610_v39  ;;  %v1082_v44 = vsel %vm1081_vm3, %v1079_v21, %v1076_v11  ;;  %v3238_v51 = vpop.eup %3237  ;;  %v2052_v25 = vmul.f32 0.6931472, %v3236_v37  ;;  %3243 = vpow2.f32 %v1760_v38 }
 0x204   :  { %v1488_v20 = vpop.f32.mrf.mxu1  ;;  %v1290_v31 = vsel %vm458_vm1, %v4733_v22, %v1082_v44  ;;  %v2055_v22 = vmul.f32 %v4806_v26, %v2054_v46  ;;  %v2061_v4 = vmul.f32 0.6931472, %v3238_v51  ;;  %3245 = vpow2.f32 %v643_v27 }
 0x205   :  { %v525_v61 = vmin.f32 %v4856_v1, 20.0  ;;  %v2600_v0 = vpop.f32.mrf.mxu2  ;;  %v1331_v45 = vpack.c.bf16 %v1290_v31, %v1289_v23  ;;  %v4877_v15 = vadd.f32 %v4797_v54, %v1488_v20  ;;  %3247 = vlog2.f32 %v1083_v24 }
 0x206   :  { %v2601_v12 = vadd.f32 %v4581_v36, %v2600_v0  ;;  %v2058_v17 = vsel %vm4872_vm5, %v2055_v22, %v2052_v25  ;;  %v2067_v50 = vsel %vm2066_vm6, %v2064_v56, %v2061_v4  ;;  %3249 = vpow2.f32 %v645_v63 }
 0x207   :  { %1527 = vmatmul.bf16.gmra.mxu1 %v1331_v45  ;;  %v4890_v58 = vpop.eup %3239  ;;  %v637_v2 = vmul.f32 1.442695, %v525_v61  ;;  %v1670_v60 = vmin.f32 %v4877_v15, 20.0  ;;  %v2434_v52 = vsel %vm1602_vm2, %v4710_v10, %v2058_v17  ;;  %v2435_v7 = vsel %vm1603_vm4, %v4741_v41, %v2067_v50 }
 0x208   :  { %2750 = vst [vmem:[%s5904_s9 + $0x38] sm:$0xff] %v2601_v12  ;;  %v4899_v18 = vpop.eup %3241  ;;  %v2486_v30 = vpack.c.bf16 %v2435_v7, %v2434_v52  ;;  %v1092_v3 = vadd.f32 1.0, %v4890_v58  ;;  %v1095_v41 = vmul.f32 -0.5, %v4890_v58  ;;  %v1087_v20 = vadd.f32 1.0, %v1086_v35 }
 0x209   :  { %v4914_v5 = vpop.eup %3243  ;;  %3251 = vpow2.f32 %v637_v2  ;;  %v2068_v53 = vadd.f32 1.0, %v4899_v18  ;;  %v1762_v27 = vmul.f32 1.442695, %v1670_v60  ;;  %v2071_v46 = vmul.f32 -0.5, %v4899_v18  ;;  %v4933_v23 = vpop.f32.mrf.mxu3 }
 0x20a   :  { %v375_v26 = vpop.f32.mrf.mxu0  ;;  %2642 = vmatmul.bf16.gmra.mxu2 %v2486_v30  ;;  %v4918_v11 = vpop.eup %3245  ;;  %3253 = vlog2.f32 %v1092_v3  ;;  %v4929_v44 = vadd.f32 %v4833_v6, %v3610_v39  ;;  %v1089_v28 = vand.u32 2147483647, %v4861_v40  ;;  %v2077_v37 = vadd.f32 1.0, %v4914_v5 }
 0x20b   :  { %v4893_v55 = vadd.f32 %v375_v26, %v3610_v39  ;;  %v3248_v38 = vpop.eup %3247  ;;  %3255 = vlog2.f32 %v2068_v53  ;;  %v1096_v34 = vadd.f32 1.0, %v1095_v41  ;;  %v2080_v61 = vmul.f32 -0.5, %v4914_v5 }
 0x20c   :  { %v1490_v9 = vpop.f32.mrf.mxu1  ;;  %v1085_v31 = vmul.f32 0.6931472, %v3248_v38  ;;  %v4936_v0 = vpop.eup %3249  ;;  %vm459_vm7 = vcmp.gt.f32.partialorder %v4768_v42, 20.0  ;;  %v1098_v6 = vand.u32 2147483647, %v4890_v58  ;;  %vm1604_vm8 = vcmp.gt.f32.partialorder %v4800_v32, 20.0 }
 0x20d   :  { %v526_v16 = vmin.f32 %v4893_v55, 20.0  ;;  %v4910_v19 = vadd.f32 %v4797_v54, %v1490_v9  ;;  %v2603_v33 = vpop.f32.mrf.mxu2  ;;  %v647_v12 = vmul.f32 1.442695, %v530_v49  ;;  %v1088_v25 = vmul.f32 %v4861_v40, %v1087_v20 }
 0x20e   :  { %v2604_v29 = vadd.f32 %v4581_v36, %v2603_v33  ;;  %v2072_v22 = vadd.f32 1.0, %v2071_v46  ;;  %vm460_vm9 = vcmp.gt.f32.partialorder %v4815_v48, 20.0  ;;  %v531_v56 = vmin.f32 %v4929_v44, 20.0 }
 0x20f   :  { %v639_v10 = vmul.f32 1.442695, %v526_v16  ;;  %v1671_v21 = vmin.f32 %v4910_v19, 20.0  ;;  %v4940_v51 = vpop.eup %3251  ;;  %vm4946_vm10 = vcmp.lt.f32.partialorder %v1089_v28, 0.0004427343  ;;  %v1097_v50 = vmul.f32 %v4890_v58, %v1096_v34 }
 0x210   :  { %2751 = vst [vmem:[%s5904_s9 + $0x40] sm:$0xff] %v2604_v29  ;;  %v3254_v4 = vpop.eup %3253  ;;  %v2074_v63 = vand.u32 2147483647, %v4899_v18  ;;  %v1091_v26 = vsel %vm4946_vm10, %v1088_v25, %v1085_v31  ;;  %v2081_v40 = vadd.f32 1.0, %v2080_v61  ;;  %vm1099_vm11 = vcmp.lt.f32.partialorder %v1098_v6, 0.0004427343 }
 0x211   :  { %3257 = vpow2.f32 %v639_v10  ;;  %v1764_v45 = vmul.f32 1.442695, %v1671_v21  ;;  %v1094_v2 = vmul.f32 0.6931472, %v3254_v4  ;;  %v3256_v60 = vpop.eup %3255  ;;  %v2083_v7 = vand.u32 2147483647, %v4914_v5  ;;  %v4983_v46 = vpop.f32.mrf.mxu3 }
 0x212   :  { %3259 = vlog2.f32 %v2077_v37  ;;  %v2070_v16 = vmul.f32 0.6931472, %v3256_v60  ;;  %v2073_v35 = vmul.f32 %v4899_v18, %v2072_v22  ;;  %v1101_v3 = vadd.f32 1.0, %v4940_v51 }
 0x213   :  { %3261 = vpow2.f32 %v1762_v27  ;;  %v1100_v30 = vsel %vm1099_vm11, %v1097_v50, %v1094_v2  ;;  %v1291_v58 = vsel %vm459_vm7, %v4768_v42, %v1091_v26  ;;  %vm4972_vm12 = vcmp.lt.f32.partialorder %v2074_v63, 0.0004427343 }
 0x214   :  { %v1493_v47 = vpop.f32.mrf.mxu1  ;;  %3263 = vpow2.f32 %v1764_v45  ;;  %v1292_v41 = vsel %vm460_vm9, %v4815_v48, %v1100_v30  ;;  %v2076_v29 = vsel %vm4972_vm12, %v2073_v35, %v2070_v16  ;;  %v2082_v49 = vmul.f32 %v4914_v5, %v2081_v40 }
 0x215   :  { %v2605_v17 = vpop.f32.mrf.mxu2  ;;  %v4961_v33 = vadd.f32 %v4797_v54, %v1493_v47  ;;  %v1332_v21 = vpack.c.bf16 %v1292_v41, %v1291_v58  ;;  %vm1605_vm13 = vcmp.gt.f32.partialorder %v4824_v13, 20.0  ;;  %v649_v42 = vmul.f32 1.442695, %v531_v56 }
 0x216   :  { %v2606_v52 = vadd.f32 %v4581_v36, %v2605_v17  ;;  %vm2084_vm14 = vcmp.lt.f32.partialorder %v2083_v7, 0.0004427343  ;;  %v1104_v48 = vmul.f32 -0.5, %v4940_v51  ;;  %3265 = vlog2.f32 %v1101_v3 }
 0x217   :  { %v4956_v9 = vpop.eup %3257  ;;  %1532 = vmatmul.bf16.gmra.mxu1 %v1332_v21  ;;  %v2436_v5 = vsel %vm1604_vm8, %v4800_v32, %v2076_v29  ;;  %v1672_v47 = vmin.f32 %v4961_v33, 20.0  ;;  %v1107_v32 = vand.u32 2147483647, %v4940_v51  ;;  %vm461_vm0 = vcmp.gt.f32.partialorder %v4856_v1, 20.0 }
 0x218   :  { %v3260_v10 = vpop.eup %3259  ;;  %2752 = vst [vmem:[%s5904_s9 + $0x48] sm:$0xff] %v2606_v52  ;;  %v1110_v37 = vadd.f32 1.0, %v4956_v9  ;;  %v1113_v61 = vmul.f32 -0.5, %v4956_v9  ;;  %v1105_v56 = vadd.f32 1.0, %v1104_v48  ;;  %vm462_vm15 = vcmp.gt.f32.partialorder %v4893_v55, 20.0 }
 0x219   :  { %v4976_v53 = vpop.eup %3261  ;;  %v2079_v27 = vmul.f32 0.6931472, %v3260_v10  ;;  %v5011_v2 = vadd.f32 %v4881_v8, %v3610_v39  ;;  %v1116_v50 = vand.u32 2147483647, %v4956_v9  ;;  %vm1606_vm1 = vcmp.gt.f32.partialorder %v4877_v15, 20.0  ;;  %v398_v21 = vpop.f32.mrf.mxu3 }
 0x21a   :  { %v4989_v31 = vpop.eup %3263  ;;  %v2086_v45 = vadd.f32 1.0, %v4976_v53  ;;  %3267 = vlog2.f32 %v1110_v37  ;;  %v1114_v63 = vadd.f32 1.0, %v1113_v61  ;;  %v1106_v7 = vmul.f32 %v4940_v51, %v1105_v56  ;;  %v5079_v8 = vld [vmem:[%s5903_s8] ss:$0 sm:$0xff] }
 0x21b   :  { %v2085_v38 = vsel %vm2084_vm14, %v2082_v49, %v2079_v27  ;;  %v2095_v24 = vadd.f32 1.0, %v4989_v31  ;;  %v2098_v17 = vmul.f32 -0.5, %v4989_v31  ;;  %vm1607_vm2 = vcmp.gt.f32.partialorder %v4910_v19, 20.0 }
 0x21c   :  { %v1495_v20 = vpop.f32.mrf.mxu1  ;;  %v2437_v34 = vsel %vm1605_vm13, %v4824_v13, %v2085_v38  ;;  %3269 = vlog2.f32 %v2086_v45  ;;  %v2089_v13 = vmul.f32 -0.5, %v4976_v53  ;;  %v3266_v26 = vpop.eup %3265  ;;  %v5019_v16 = vadd.f32 %v4933_v23, %v3610_v39 }
 0x21d   :  { %v4986_v28 = vadd.f32 %v4797_v54, %v1495_v20  ;;  %v2487_v6 = vpack.c.bf16 %v2437_v34, %v2436_v5  ;;  %v2608_v25 = vpop.f32.mrf.mxu2  ;;  %3271 = vpow2.f32 %v647_v12  ;;  %v1766_v12 = vmul.f32 1.442695, %v1672_v47 }
 0x21e   :  { %v2609_v4 = vadd.f32 %v4581_v36, %v2608_v25  ;;  %3273 = vpow2.f32 %v649_v42  ;;  %v1103_v52 = vmul.f32 0.6931472, %v3266_v26  ;;  %vm5021_vm3 = vcmp.lt.f32.partialorder %v1107_v32, 0.0004427343 }
 0x21f   :  { %v1673_v22 = vmin.f32 %v4986_v28, 20.0  ;;  %2647 = vmatmul.bf16.gmra.mxu2 %v2487_v6  ;;  %3275 = vlog2.f32 %v2095_v24  ;;  %v2090_v35 = vadd.f32 1.0, %v2089_v13  ;;  %v2092_v3 = vand.u32 2147483647, %v4976_v53 }
 0x220   :  { %2753 = vst [vmem:[%s5904_s9 + $0x50] sm:$0xff] %v2609_v4  ;;  %v3268_v30 = vpop.eup %3267  ;;  %v1109_v51 = vsel %vm5021_vm3, %v1106_v7, %v1103_v52  ;;  %v1115_v41 = vmul.f32 %v4956_v9, %v1114_v63  ;;  %v2099_v18 = vadd.f32 1.0, %v2098_v17  ;;  %3277 = vpow2.f32 %v1766_v12 }
 0x221   :  { %v1768_v40 = vmul.f32 1.442695, %v1673_v22  ;;  %v1112_v58 = vmul.f32 0.6931472, %v3268_v30  ;;  %v532_v23 = vmin.f32 %v5011_v2, 20.0  ;;  %v533_v9 = vmin.f32 %v5019_v16, 20.0 }
 0x222   :  { %v3270_v10 = vpop.eup %3269  ;;  %vm1117_vm4 = vcmp.lt.f32.partialorder %v1116_v50, 0.0004427343  ;;  %v2101_v38 = vand.u32 2147483647, %v4989_v31  ;;  %v1293_v37 = vsel %vm461_vm0, %v4856_v1, %v1109_v51  ;;  %v2091_v34 = vmul.f32 %v4976_v53, %v2090_v35 }
 0x223   :  { %v5029_v29 = vpop.eup %3271  ;;  %v2088_v49 = vmul.f32 0.6931472, %v3270_v10  ;;  %3279 = vpow2.f32 %v1768_v40  ;;  %v1118_v48 = vsel %vm1117_vm4, %v1115_v41, %v1112_v58  ;;  %vm5050_vm5 = vcmp.lt.f32.partialorder %v2092_v3, 0.0004427343  ;;  %v400_v3 = vpop.f32.mrf.mxu3 }
 0x224   :  { %v1498_v60 = vpop.f32.mrf.mxu1  ;;  %v5032_v42 = vpop.eup %3273  ;;  %v1294_v5 = vsel %vm462_vm15, %v4893_v55, %v1118_v48  ;;  %v2100_v1 = vmul.f32 %v4989_v31, %v2099_v18  ;;  %v1119_v53 = vadd.f32 1.0, %v4835_v57  ;;  %v1122_v25 = vmul.f32 -0.5, %v4835_v57 }
 0x225   :  { %v2610_v27 = vpop.f32.mrf.mxu2  ;;  %v3276_v61 = vpop.eup %3275  ;;  %v5045_v45 = vadd.f32 %v4797_v54, %v1498_v60  ;;  %v2094_v55 = vsel %vm5050_vm5, %v2091_v34, %v2088_v49  ;;  %v651_v22 = vmul.f32 1.442695, %v532_v23  ;;  %vm2102_vm6 = vcmp.lt.f32.partialorder %v2101_v38, 0.0004427343 }
 0x226   :  { %v2611_v20 = vadd.f32 %v4581_v36, %v2610_v27  ;;  %v1333_v36 = vpack.c.bf16 %v1294_v5, %v1293_v37  ;;  %v2097_v6 = vmul.f32 0.6931472, %v3276_v61  ;;  %v1128_v56 = vadd.f32 1.0, %v4918_v11  ;;  %v5061_v13 = vpop.eup %3277 }
 0x227   :  { %v1131_v32 = vmul.f32 -0.5, %v4918_v11  ;;  %v653_v24 = vmul.f32 1.442695, %v533_v9  ;;  %3281 = vlog2.f32 %v1119_v53  ;;  %v2438_v26 = vsel %vm1606_vm1, %v4877_v15, %v2094_v55 }
 0x228   :  { %2754 = vst [vmem:[%s5904_s9 + $0x58] sm:$0xff] %v2611_v20  ;;  %1537 = vmatmul.bf16.vlgmr.msrb.gmra.mxu3 %v1333_v36  ;;  %v2103_v31 = vsel %vm2102_vm6, %v2100_v1, %v2097_v6  ;;  %v1123_v50 = vadd.f32 1.0, %v1122_v25  ;;  %3283 = vlog2.f32 %v1128_v56  ;;  %v1674_v40 = vmin.f32 %v5045_v45, 20.0 }
 0x229   :  { %v5066_v17 = vpop.eup %3279  ;;  %v2439_v12 = vsel %vm1607_vm2, %v4910_v19, %v2103_v31  ;;  %v1125_v7 = vand.u32 2147483647, %v4835_v57  ;;  %v1132_v30 = vadd.f32 1.0, %v1131_v32  ;;  %3285 = vpow2.f32 %v651_v22 }
 0x22a   :  { %v2488_v60 = vpack.c.bf16 %v2439_v12, %v2438_v26  ;;  %v1134_v35 = vand.u32 2147483647, %v4918_v11  ;;  %v2104_v19 = vadd.f32 1.0, %v5061_v13  ;;  %3287 = vpow2.f32 %v653_v24 }
 0x22b   :  { %v2107_v51 = vmul.f32 -0.5, %v5061_v13  ;;  %v2113_v58 = vadd.f32 1.0, %v5066_v17  ;;  %v5089_v41 = vadd.f32 %v4983_v46, %v3610_v39  ;;  %v5095_v18 = vadd.f32 %v398_v21, %v3610_v39 }
 0x22c   :  { %v1500_v4 = vpop.f32.mrf.mxu1  ;;  %v1124_v23 = vmul.f32 %v4835_v57, %v1123_v50  ;;  %3289 = vlog2.f32 %v2104_v19  ;;  %v1770_v49 = vmul.f32 1.442695, %v1674_v40  ;;  %vm5098_vm7 = vcmp.lt.f32.partialorder %v1125_v7, 0.0004427343 }
 0x22d   :  { %v5064_v63 = vadd.f32 %v4797_v54, %v1500_v4  ;;  %v2613_v52 = vpop.f32.mrf.mxu2  ;;  %v3282_v27 = vpop.eup %3281  ;;  %v1133_v48 = vmul.f32 %v4918_v11, %v1132_v30  ;;  %v2116_v46 = vmul.f32 -0.5, %v5066_v17  ;;  %vm1608_vm8 = vcmp.gt.f32.partialorder %v4961_v33, 20.0 }
 0x22e   :  { %v2614_v15 = vadd.f32 %v5079_v8, %v2613_v52  ;;  %v3284_v38 = vpop.eup %3283  ;;  %vm463_vm9 = vcmp.gt.f32.partialorder %v4726_v62, 20.0  ;;  %v1121_v21 = vmul.f32 0.6931472, %v3282_v27  ;;  %vm5106_vm10 = vcmp.lt.f32.partialorder %v1134_v35, 0.0004427343 }
 0x22f   :  { %2652 = vmatmul.bf16.gmra.mxu2 %v2488_v60  ;;  %v1675_v10 = vmin.f32 %v5064_v63, 20.0  ;;  %3291 = vlog2.f32 %v2113_v58  ;;  %vm464_vm11 = vcmp.gt.f32.partialorder %v4804_v43, 20.0  ;;  %v1130_v5 = vmul.f32 0.6931472, %v3284_v38  ;;  %v5111_v11 = vpop.eup %3285  ;;  %v403_v60 = vpop.f32.mrf.mxu3 }
 0x230   :  { %2755 = vst [vmem:[%s5904_s9 + $0x60] sm:$0xff] %v2614_v15  ;;  %v2108_v34 = vadd.f32 1.0, %v2107_v51  ;;  %vm1609_vm12 = vcmp.gt.f32.partialorder %v4986_v28, 20.0  ;;  %v534_v61 = vmin.f32 %v5089_v41, 20.0  ;;  %v1127_v36 = vsel %vm5098_vm7, %v1124_v23, %v1121_v21  ;;  %v5118_v1 = vpop.eup %3287 }
 0x231   :  { %v1772_v37 = vmul.f32 1.442695, %v1675_v10  ;;  %v2110_v47 = vand.u32 2147483647, %v5061_v13  ;;  %3293 = vpow2.f32 %v1770_v49  ;;  %v1136_v6 = vsel %vm5106_vm10, %v1133_v48, %v1130_v5 }
 0x232   :  { %v1295_v53 = vsel %vm463_vm9, %v4726_v62, %v1127_v36  ;;  %v2117_v25 = vadd.f32 1.0, %v2116_v46  ;;  %v3290_v22 = vpop.eup %3289  ;;  %v1296_v56 = vsel %vm464_vm11, %v4804_v43, %v1136_v6  ;;  %v2119_v32 = vand.u32 2147483647, %v5066_v17 }
 0x233   :  { %v5131_v24 = vadd.f32 %v400_v3, %v3610_v39  ;;  %3295 = vpow2.f32 %v1772_v37  ;;  %v535_v31 = vmin.f32 %v5095_v18, 20.0  ;;  %v2106_v26 = vmul.f32 0.6931472, %v3290_v22 }
 0x234   :  { %v1503_v9 = vpop.f32.mrf.mxu1  ;;  %v2109_v12 = vmul.f32 %v5061_v13, %v2108_v34  ;;  %v655_v50 = vmul.f32 1.442695, %v534_v61  ;;  %v1334_v40 = vpack.c.bf16 %v1296_v56, %v1295_v53  ;;  %vm5138_vm13 = vcmp.lt.f32.partialorder %v2110_v47, 0.0004427343 }
 0x235   :  { %v2615_v55 = vpop.f32.mrf.mxu2  ;;  %v3292_v62 = vpop.eup %3291  ;;  %v1137_v52 = vadd.f32 1.0, %v4936_v0  ;;  %v5144_v7 = vadd.f32 %v4797_v54, %v1503_v9  ;;  %v2118_v15 = vmul.f32 %v5066_v17, %v2117_v25  ;;  %vm2120_vm14 = vcmp.lt.f32.partialorder %v2119_v32, 0.0004427343 }
 0x236   :  { %v2616_v4 = vadd.f32 %v5079_v8, %v2615_v55  ;;  %v2112_v13 = vsel %vm5138_vm13, %v2109_v12, %v2106_v26  ;;  %v2115_v30 = vmul.f32 0.6931472, %v3292_v62  ;;  %v536_v35 = vmin.f32 %v5131_v24, 20.0 }
 0x237   :  { %3297 = vlog2.f32 %v1137_v52  ;;  %v1140_v3 = vmul.f32 -0.5, %v4936_v0  ;;  %v5151_v10 = vpop.eup %3293  ;;  %v2440_v58 = vsel %vm1608_vm8, %v4961_v33, %v2112_v13  ;;  %v1146_v17 = vadd.f32 1.0, %v5029_v29 }
 0x238   :  { %2756 = vst [vmem:[%s5904_s9 + $0x68] sm:$0xff] %v2616_v4  ;;  %1542 = vmatmul.bf16.gmra.mxu3 %v1334_v40  ;;  %v2121_v51 = vsel %vm2120_vm14, %v2118_v15, %v2115_v30  ;;  %v1143_v20 = vand.u32 2147483647, %v4936_v0  ;;  %v1149_v48 = vmul.f32 -0.5, %v5029_v29  ;;  %v657_v38 = vmul.f32 1.442695, %v535_v31  ;;  %v405_v31 = vpop.f32.mrf.mxu3 }
 0x239   :  { %v2441_v27 = vsel %vm1609_vm12, %v4986_v28, %v2121_v51  ;;  %v1141_v49 = vadd.f32 1.0, %v1140_v3  ;;  %v5165_v46 = vpop.eup %3295  ;;  %v1676_v9 = vmin.f32 %v5144_v7, 20.0  ;;  %3299 = vlog2.f32 %v1146_v17 }
 0x23a   :  { %v2489_v33 = vpack.c.bf16 %v2441_v27, %v2440_v58  ;;  %3301 = vpow2.f32 %v655_v50  ;;  %v1150_v37 = vadd.f32 1.0, %v1149_v48  ;;  %v1152_v34 = vand.u32 2147483647, %v5029_v29 }
 0x23b   :  { %v1142_v5 = vmul.f32 %v4936_v0, %v1141_v49  ;;  %v2122_v61 = vadd.f32 1.0, %v5151_v10  ;;  %v659_v47 = vmul.f32 1.442695, %v536_v35  ;;  %v5177_v55 = vadd.f32 %v403_v60, %v3610_v39 }
 0x23c   :  { %v1505_v19 = vpop.f32.mrf.mxu1  ;;  %vm5179_vm0 = vcmp.lt.f32.partialorder %v1143_v20, 0.0004427343  ;;  %v2131_v53 = vadd.f32 1.0, %v5165_v46  ;;  %3303 = vpow2.f32 %v657_v38  ;;  %v1774_v0 = vmul.f32 1.442695, %v1676_v9 }
 0x23d   :  { %v5157_v23 = vadd.f32 %v4797_v54, %v1505_v19  ;;  %v2618_v21 = vpop.f32.mrf.mxu2  ;;  %v3298_v36 = vpop.eup %3297  ;;  %v2125_v22 = vmul.f32 -0.5, %v5151_v10  ;;  %vm465_vm15 = vcmp.gt.f32.partialorder %v4830_v14, 20.0  ;;  %v1151_v56 = vmul.f32 %v5029_v29, %v1150_v37 }
 0x23e   :  { %v2619_v57 = vadd.f32 %v5079_v8, %v2618_v21  ;;  %v1139_v25 = vmul.f32 0.6931472, %v3298_v36  ;;  %3305 = vlog2.f32 %v2122_v61  ;;  %v2134_v32 = vmul.f32 -0.5, %v5165_v46 }
 0x23f   :  { %2657 = vmatmul.bf16.gmra.mxu2 %v2489_v33  ;;  %v1677_v28 = vmin.f32 %v5157_v23, 20.0  ;;  %v3300_v26 = vpop.eup %3299  ;;  %vm5190_vm1 = vcmp.lt.f32.partialorder %v1152_v34, 0.0004427343  ;;  %3307 = vlog2.f32 %v2131_v53  ;;  %vm1610_vm2 = vcmp.gt.f32.partialorder %v5045_v45, 20.0 }
 0x240   :  { %2757 = vst [vmem:[%s5904_s9 + $0x70] sm:$0xff] %v2619_v57  ;;  %v1145_v62 = vsel %vm5179_vm0, %v1142_v5, %v1139_v25  ;;  %v5194_v40 = vpop.eup %3301  ;;  %3309 = vpow2.f32 %v659_v47  ;;  %v537_v29 = vmin.f32 %v5177_v55, 20.0  ;;  %vm466_vm3 = vcmp.gt.f32.partialorder %v4897_v59, 20.0 }
 0x241   :  { %v1776_v12 = vmul.f32 1.442695, %v1677_v28  ;;  %v1148_v43 = vmul.f32 0.6931472, %v3300_v26  ;;  %3311 = vpow2.f32 %v1774_v0  ;;  %v1297_v52 = vsel %vm465_vm15, %v4830_v14, %v1145_v62  ;;  %v408_v0 = vpop.f32.mrf.mxu3 }
 0x242   :  { %v2126_v13 = vadd.f32 1.0, %v2125_v22  ;;  %v2128_v30 = vand.u32 2147483647, %v5151_v10  ;;  %v2135_v19 = vadd.f32 1.0, %v2134_v32  ;;  %v2137_v3 = vand.u32 2147483647, %v5165_v46  ;;  %v5207_v51 = vpop.eup %3303 }
 0x243   :  { %v1154_v35 = vsel %vm5190_vm1, %v1151_v56, %v1148_v43  ;;  %vm1611_vm4 = vcmp.gt.f32.partialorder %v5064_v63, 20.0  ;;  %3313 = vpow2.f32 %v1776_v12  ;;  %v661_v27 = vmul.f32 1.442695, %v537_v29 }
 0x244   :  { %v1508_v4 = vpop.f32.mrf.mxu1  ;;  %v1298_v14 = vsel %vm466_vm3, %v4897_v59, %v1154_v35  ;;  %v3306_v17 = vpop.eup %3305  ;;  %v5218_v20 = vadd.f32 %v405_v31, %v3610_v39  ;;  %v1155_v48 = vadd.f32 1.0, %v5032_v42  ;;  %v2127_v33 = vmul.f32 %v5151_v10, %v2126_v13 }
 0x245   :  { %v2620_v60 = vpop.f32.mrf.mxu2  ;;  %v5211_v58 = vadd.f32 %v4797_v54, %v1508_v4  ;;  %v1335_v49 = vpack.c.bf16 %v1298_v14, %v1297_v52  ;;  %v3308_v38 = vpop.eup %3307  ;;  %v2124_v9 = vmul.f32 0.6931472, %v3306_v17  ;;  %vm5222_vm5 = vcmp.lt.f32.partialorder %v2128_v30, 0.0004427343 }
 0x246   :  { %v2621_v15 = vadd.f32 %v5079_v8, %v2620_v60  ;;  %v1158_v59 = vmul.f32 -0.5, %v5032_v42  ;;  %v5227_v57 = vpop.eup %3309  ;;  %v2133_v37 = vmul.f32 0.6931472, %v3308_v38  ;;  %v2136_v28 = vmul.f32 %v5165_v46, %v2135_v19 }
 0x247   :  { %vm5230_vm6 = vcmp.lt.f32.partialorder %v2137_v3, 0.0004427343  ;;  %v1164_v61 = vadd.f32 1.0, %v5111_v11  ;;  %v5235_v10 = vpop.eup %3311  ;;  %v1678_v36 = vmin.f32 %v5211_v58, 20.0  ;;  %v2130_v47 = vsel %vm5222_vm5, %v2127_v33, %v2124_v9 }
 0x248   :  { %2758 = vst [vmem:[%s5904_s9 + $0x78] sm:$0xff] %v2621_v15  ;;  %1547 = vmatmul.bf16.gmra.mxu3 %v1335_v49  ;;  %3315 = vlog2.f32 %v1155_v48  ;;  %v2139_v46 = vsel %vm5230_vm6, %v2136_v28, %v2133_v37  ;;  %v538_v53 = vmin.f32 %v5218_v20, 20.0  ;;  %v1159_v25 = vadd.f32 1.0, %v1158_v59 }
 0x249   :  { %3317 = vpow2.f32 %v661_v27  ;;  %v5246_v22 = vpop.eup %3313  ;;  %v2442_v4 = vsel %vm1610_vm2, %v5045_v45, %v2130_v47  ;;  %v2443_v56 = vsel %vm1611_vm4, %v5064_v63, %v2139_v46  ;;  %v5255_v31 = vadd.f32 %v408_v0, %v3610_v39 }
 0x24a   :  { %v1161_v26 = vand.u32 2147483647, %v5032_v42  ;;  %v2490_v12 = vpack.c.bf16 %v2443_v56, %v2442_v4  ;;  %3319 = vlog2.f32 %v1164_v61  ;;  %v1167_v50 = vmul.f32 -0.5, %v5111_v11 }
 0x24b   :  { %v1778_v29 = vmul.f32 1.442695, %v1678_v36  ;;  %vm467_vm7 = vcmp.gt.f32.partialorder %v4929_v44, 20.0  ;;  %v2140_v45 = vadd.f32 1.0, %v5235_v10  ;;  %v1160_v63 = vmul.f32 %v5032_v42, %v1159_v25 }
 0x24c   :  { %v1510_v34 = vpop.f32.mrf.mxu1  ;;  %v1168_v60 = vadd.f32 1.0, %v1167_v50  ;;  %v1170_v52 = vand.u32 2147483647, %v5111_v11  ;;  %v2149_v13 = vadd.f32 1.0, %v5246_v22  ;;  %v663_v15 = vmul.f32 1.442695, %v538_v53 }
 0x24d   :  { %v5241_v6 = vadd.f32 %v4797_v54, %v1510_v34  ;;  %v2623_v32 = vpop.f32.mrf.mxu2  ;;  %vm468_vm8 = vcmp.gt.f32.partialorder %v5011_v2, 20.0  ;;  %vm5270_vm9 = vcmp.lt.f32.partialorder %v1161_v26, 0.0004427343  ;;  %v2143_v19 = vmul.f32 -0.5, %v5235_v10 }
 0x24e   :  { %v2624_v62 = vadd.f32 %v5079_v8, %v2623_v32  ;;  %v3316_v30 = vpop.eup %3315  ;;  %v539_v14 = vmin.f32 %v5255_v31, 20.0  ;;  %3321 = vlog2.f32 %v2140_v45  ;;  %v2152_v27 = vmul.f32 -0.5, %v5246_v22 }
 0x24f   :  { %v1679_v43 = vmin.f32 %v5241_v6, 20.0  ;;  %2662 = vmatmul.bf16.gmra.mxu2 %v2490_v12  ;;  %v5275_v3 = vpop.eup %3317  ;;  %v1157_v17 = vmul.f32 0.6931472, %v3316_v30  ;;  %v1169_v38 = vmul.f32 %v5111_v11, %v1168_v60  ;;  %3323 = vlog2.f32 %v2149_v13 }
 0x250   :  { %2759 = vst [vmem:[%s5904_s9 + $0x80] sm:$0xff] %v2624_v62  ;;  %v3320_v9 = vpop.eup %3319  ;;  %vm1612_vm10 = vcmp.gt.f32.partialorder %v5144_v7, 20.0  ;;  %3325 = vpow2.f32 %v1778_v29  ;;  %vm5286_vm11 = vcmp.lt.f32.partialorder %v1170_v52, 0.0004427343  ;;  %v2146_v59 = vand.u32 2147483647, %v5235_v10 }
 0x251   :  { %v1780_v49 = vmul.f32 1.442695, %v1679_v43  ;;  %v1163_v33 = vsel %vm5270_vm9, %v1160_v63, %v1157_v17  ;;  %3327 = vpow2.f32 %v663_v15  ;;  %v2144_v28 = vadd.f32 1.0, %v2143_v19 }
 0x252   :  { %v2155_v11 = vand.u32 2147483647, %v5246_v22  ;;  %v1299_v61 = vsel %vm467_vm7, %v4929_v44, %v1163_v33  ;;  %v2153_v36 = vadd.f32 1.0, %v2152_v27  ;;  %vm1613_vm12 = vcmp.gt.f32.partialorder %v5157_v23, 20.0 }
 0x253   :  { %3329 = vpow2.f32 %v1780_v49  ;;  %v1173_v46 = vadd.f32 1.0, %v5118_v1  ;;  %v5301_v0 = vmul.f32 1.442695, %v539_v14  ;;  %vm5309_vm13 = vcmp.lt.f32.partialorder %v2146_v59, 0.0004427343 }
 0x254   :  { %v1513_v42 = vpop.f32.mrf.mxu1  ;;  %v3322_v53 = vpop.eup %3321  ;;  %v1176_v4 = vmul.f32 -0.5, %v5118_v1  ;;  %v2145_v12 = vmul.f32 %v5235_v10, %v2144_v28  ;;  %v1182_v62 = vadd.f32 1.0, %v5194_v40  ;;  %v2154_v45 = vmul.f32 %v5246_v22, %v2153_v36  ;;  %v5330_v10 = vld [vmem:[%s5901_s6] ss:$0 sm:$0xff] }
 0x255   :  { %v5280_v48 = vadd.f32 %v4797_v54, %v1513_v42  ;;  %v2625_v37 = vpop.f32.mrf.mxu2  ;;  %v1166_v54 = vmul.f32 0.6931472, %v3320_v9  ;;  %v3324_v56 = vpop.eup %3323  ;;  %v2142_v26 = vmul.f32 0.6931472, %v3322_v53  ;;  %vm5319_vm14 = vcmp.lt.f32.partialorder %v2155_v11, 0.0004427343 }
 0x256   :  { %v2626_v34 = vadd.f32 %v5079_v8, %v2625_v37  ;;  %v5316_v50 = vpop.eup %3325  ;;  %v2151_v43 = vmul.f32 0.6931472, %v3324_v56  ;;  %3331 = vlog2.f32 %v1173_v46  ;;  %v1185_v22 = vmul.f32 -0.5, %v5194_v40  ;;  %v410_v36 = vpop.f32.mrf.mxu3 }
 0x257   :  { %v1680_v5 = vmin.f32 %v5280_v48, 20.0  ;;  %v1172_v47 = vsel %vm5286_vm11, %v1169_v38, %v1166_v54  ;;  %v5323_v60 = vpop.eup %3327  ;;  %v2148_v52 = vsel %vm5309_vm13, %v2145_v12, %v2142_v26  ;;  %v1177_v15 = vadd.f32 1.0, %v1176_v4 }
 0x258   :  { %2760 = vst [vmem:[%s5904_s9 + $0x88] sm:$0xff] %v2626_v34  ;;  %v1300_v44 = vsel %vm468_vm8, %v5011_v2, %v1172_v47  ;;  %v2157_v30 = vsel %vm5319_vm14, %v2154_v45, %v2151_v43  ;;  %v1179_v35 = vand.u32 2147483647, %v5118_v1  ;;  %3333 = vlog2.f32 %v1182_v62 }
 0x259   :  { %v1336_v32 = vpack.c.bf16 %v1300_v44, %v1299_v61  ;;  %v1782_v29 = vmul.f32 1.442695, %v1680_v5  ;;  %v3330_v19 = vpop.eup %3329  ;;  %v2444_v14 = vsel %vm1612_vm10, %v5144_v7, %v2148_v52  ;;  %v2445_v42 = vsel %vm1613_vm12, %v5157_v23, %v2157_v30 }
 0x25a   :  { %v1186_v49 = vadd.f32 1.0, %v1185_v22  ;;  %v2491_v38 = vpack.c.bf16 %v2445_v42, %v2444_v14  ;;  %v1188_v33 = vand.u32 2147483647, %v5194_v40  ;;  %v2158_v21 = vadd.f32 1.0, %v5316_v50 }
 0x25b   :  { %1552 = vmatmul.bf16.gmra.mxu3 %v1336_v32  ;;  %3335 = vpow2.f32 %v1782_v29  ;;  %vm469_vm0 = vcmp.gt.f32.partialorder %v5019_v16, 20.0  ;;  %vm470_vm15 = vcmp.gt.f32.partialorder %v5089_v41, 20.0  ;;  %v2161_v7 = vmul.f32 -0.5, %v5316_v50 }
 0x25c   :  { %v1515_v63 = vpop.f32.mrf.mxu1  ;;  %v1178_v23 = vmul.f32 %v5118_v1, %v1177_v15  ;;  %3337 = vlog2.f32 %v2158_v21  ;;  %v2167_v59 = vadd.f32 1.0, %v3330_v19  ;;  %v2170_v37 = vmul.f32 -0.5, %v3330_v19  ;;  %v3332_v54 = vpop.eup %3331 }
 0x25d   :  { %v5333_v13 = vadd.f32 %v5330_v10, %v1515_v63  ;;  %v2628_v27 = vpop.f32.mrf.mxu2  ;;  %vm5356_vm1 = vcmp.lt.f32.partialorder %v1179_v35, 0.0004427343  ;;  %v1187_v5 = vmul.f32 %v5194_v40, %v1186_v49  ;;  %v2164_v34 = vand.u32 2147483647, %v5316_v50 }
 0x25e   :  { %v2629_v9 = vadd.f32 %v5079_v8, %v2628_v27  ;;  %v3334_v61 = vpop.eup %3333  ;;  %v1175_v46 = vmul.f32 0.6931472, %v3332_v54  ;;  %vm5362_vm2 = vcmp.lt.f32.partialorder %v1188_v33, 0.0004427343  ;;  %3339 = vlog2.f32 %v2167_v59 }
 0x25f   :  { %v1681_v17 = vmin.f32 %v5333_v13, 20.0  ;;  %2667 = vmatmul.bf16.gmra.mxu2 %v2491_v38  ;;  %v1191_v1 = vadd.f32 1.0, %v5207_v51  ;;  %vm1614_vm3 = vcmp.gt.f32.partialorder %v5211_v58, 20.0  ;;  %vm1615_vm4 = vcmp.gt.f32.partialorder %v5241_v6, 20.0 }
 0x260   :  { %2761 = vst [vmem:[%s5904_s9 + $0x90] sm:$0xff] %v2629_v9  ;;  %v1184_v40 = vmul.f32 0.6931472, %v3334_v61  ;;  %v2162_v25 = vadd.f32 1.0, %v2161_v7  ;;  %v2173_v4 = vand.u32 2147483647, %v3330_v19  ;;  %v1181_v56 = vsel %vm5356_vm1, %v1178_v23, %v1175_v46 }
 0x261   :  { %v1784_v28 = vmul.f32 1.442695, %v1681_v17  ;;  %v2171_v32 = vadd.f32 1.0, %v2170_v37  ;;  %3341 = vlog2.f32 %v1191_v1  ;;  %v1194_v26 = vmul.f32 -0.5, %v5207_v51  ;;  %v5375_v12 = vpop.eup %3335 }
 0x262   :  { %v5378_v62 = vadd.f32 %v410_v36, %v3610_v39  ;;  %v1190_v45 = vsel %vm5362_vm2, %v1187_v5, %v1184_v40  ;;  %v3338_v2 = vpop.eup %3337  ;;  %v1301_v52 = vsel %vm469_vm0, %v5019_v16, %v1181_v56  ;;  %v2163_v15 = vmul.f32 %v5316_v50, %v2162_v25 }
 0x263   :  { %3343 = vpow2.f32 %v1784_v28  ;;  %v1302_v22 = vsel %vm470_vm15, %v5089_v41, %v1190_v45  ;;  %v1195_v39 = vadd.f32 1.0, %v1194_v26  ;;  %v2160_v30 = vmul.f32 0.6931472, %v3338_v2 }
 0x264   :  { %v1518_v47 = vpop.f32.mrf.mxu1  ;;  %vm5391_vm5 = vcmp.lt.f32.partialorder %v2164_v34, 0.0004427343  ;;  %v1200_v14 = vadd.f32 1.0, %v5227_v57  ;;  %v3340_v42 = vpop.eup %3339  ;;  %v2172_v16 = vmul.f32 %v3330_v19, %v2171_v32  ;;  %vm5399_vm6 = vcmp.lt.f32.partialorder %v2173_v4, 0.0004427343 }
 0x265   :  { %v5370_v44 = vadd.f32 %v5330_v10, %v1518_v47  ;;  %v2630_v43 = vpop.f32.mrf.mxu2  ;;  %v1197_v41 = vand.u32 2147483647, %v5207_v51  ;;  %v1203_v50 = vmul.f32 -0.5, %v5227_v57  ;;  %v1337_v27 = vpack.c.bf16 %v1302_v22, %v1301_v52 }
 0x266   :  { %v2631_v63 = vadd.f32 %v5079_v8, %v2630_v43  ;;  %v2166_v49 = vsel %vm5391_vm5, %v2163_v15, %v2160_v30  ;;  %v2169_v38 = vmul.f32 0.6931472, %v3340_v42  ;;  %v2176_v9 = vadd.f32 1.0, %v5375_v12 }
 0x267   :  { %v1682_v29 = vmin.f32 %v5370_v44, 20.0  ;;  %v3342_v33 = vpop.eup %3341  ;;  %v1196_v19 = vmul.f32 %v5207_v51, %v1195_v39  ;;  %3345 = vlog2.f32 %v1200_v14  ;;  %v1206_v23 = vand.u32 2147483647, %v5227_v57 }
 0x268   :  { %2762 = vst [vmem:[%s5904_s9 + $0x98] sm:$0xff] %v2631_v63  ;;  %v2175_v37 = vsel %vm5399_vm6, %v2172_v16, %v2169_v38  ;;  %v1204_v28 = vadd.f32 1.0, %v1203_v50  ;;  %3347 = vlog2.f32 %v2176_v9  ;;  %v2446_v11 = vsel %vm1614_vm3, %v5211_v58, %v2166_v49 }
 0x269   :  { %v1786_v21 = vmul.f32 1.442695, %v1682_v29  ;;  %v5410_v59 = vpop.eup %3343  ;;  %v2447_v51 = vsel %vm1615_vm4, %v5241_v6, %v2175_v37  ;;  %v1193_v5 = vmul.f32 0.6931472, %v3342_v33  ;;  %v2179_v34 = vmul.f32 -0.5, %v5375_v12 }
 0x26a   :  { %3349 = vpow2.f32 %v5301_v0  ;;  %v2492_v61 = vpack.c.bf16 %v2447_v51, %v2446_v11  ;;  %vm5426_vm7 = vcmp.lt.f32.partialorder %v1197_v41, 0.0004427343  ;;  %vm471_vm8 = vcmp.gt.f32.partialorder %v5095_v18, 20.0 }
 0x26b   :  { %1557 = vmatmul.bf16.gmra.mxu3 %v1337_v27  ;;  %3351 = vpow2.f32 %v1786_v21  ;;  %v540_v6 = vmin.f32 %v5378_v62, 20.0  ;;  %v1205_v1 = vmul.f32 %v5227_v57, %v1204_v28  ;;  %v2185_v0 = vadd.f32 1.0, %v5410_v59 }
 0x26c   :  { %v1520_v7 = vpop.f32.mrf.mxu1  ;;  %v1199_v25 = vsel %vm5426_vm7, %v1196_v19, %v1193_v5  ;;  %vm5440_vm9 = vcmp.lt.f32.partialorder %v1206_v23, 0.0004427343  ;;  %v2180_v56 = vadd.f32 1.0, %v2179_v34  ;;  %v2182_v32 = vand.u32 2147483647, %v5375_v12 }
 0x26d   :  { %v5415_v54 = vadd.f32 %v5330_v10, %v1520_v7  ;;  %v2633_v47 = vpop.f32.mrf.mxu2  ;;  %v3346_v40 = vpop.eup %3345  ;;  %v2188_v29 = vmul.f32 -0.5, %v5410_v59  ;;  %v1209_v43 = vadd.f32 1.0, %v5275_v3  ;;  %vm472_vm10 = vcmp.gt.f32.partialorder %v5131_v24, 20.0 }
 0x26e   :  { %v2634_v58 = vadd.f32 %v5079_v8, %v2633_v47  ;;  %v3348_v26 = vpop.eup %3347  ;;  %v1202_v57 = vmul.f32 0.6931472, %v3346_v40  ;;  %v667_v63 = vmul.f32 1.442695, %v540_v6  ;;  %v1303_v15 = vsel %vm471_vm8, %v5095_v18, %v1199_v25 }
 0x26f   :  { %v1683_v36 = vmin.f32 %v5415_v54, 20.0  ;;  %2672 = vmatmul.bf16.gmra.mxu2 %v2492_v61  ;;  %v2178_v39 = vmul.f32 0.6931472, %v3348_v26  ;;  %vm5460_vm11 = vcmp.lt.f32.partialorder %v2182_v32, 0.0004427343  ;;  %v1218_v42 = vadd.f32 1.0, %v5323_v60 }
 0x270   :  { %2763 = vst [vmem:[%s5904_s9 + $0xa0] sm:$0xff] %v2634_v58  ;;  %v5448_v2 = vpop.eup %3349  ;;  %v1208_v22 = vsel %vm5440_vm9, %v1205_v1, %v1202_v57  ;;  %v2191_v14 = vand.u32 2147483647, %v5410_v59  ;;  %v2181_v17 = vmul.f32 %v5375_v12, %v2180_v56  ;;  %v2189_v41 = vadd.f32 1.0, %v2188_v29 }
 0x271   :  { %v1788_v53 = vmul.f32 1.442695, %v1683_v36  ;;  %v5455_v30 = vpop.eup %3351  ;;  %v1212_v50 = vmul.f32 -0.5, %v5275_v3  ;;  %v1304_v18 = vsel %vm472_vm10, %v5131_v24, %v1208_v22  ;;  %vm1616_vm12 = vcmp.gt.f32.partialorder %v5280_v48, 20.0 }
 0x272   :  { %v2184_v12 = vsel %vm5460_vm11, %v2181_v17, %v2178_v39  ;;  %v1221_v9 = vmul.f32 -0.5, %v5323_v60  ;;  %v2194_v33 = vadd.f32 1.0, %v5455_v30  ;;  %vm1617_vm13 = vcmp.gt.f32.partialorder %v5333_v13, 20.0 }
 0x273   :  { %3353 = vpow2.f32 %v1788_v53  ;;  %v1215_v24 = vand.u32 2147483647, %v5275_v3  ;;  %v1338_v19 = vpack.c.bf16 %v1304_v18, %v1303_v15  ;;  %v2190_v37 = vmul.f32 %v5410_v59, %v2189_v41 }
 0x274   :  { %v1523_v45 = vpop.f32.mrf.mxu1  ;;  %3355 = vlog2.f32 %v2185_v0  ;;  %vm2192_vm14 = vcmp.lt.f32.partialorder %v2191_v14, 0.0004427343  ;;  %v2448_v11 = vsel %vm1616_vm12, %v5280_v48, %v2184_v12  ;;  %v1213_v5 = vadd.f32 1.0, %v1212_v50 }
 0x275   :  { %v5451_v52 = vadd.f32 %v5330_v10, %v1523_v45  ;;  %v2635_v16 = vpop.f32.mrf.mxu2  ;;  %3357 = vlog2.f32 %v1209_v43  ;;  %v1222_v47 = vadd.f32 1.0, %v1221_v9  ;;  %v1224_v58 = vand.u32 2147483647, %v5323_v60 }
 0x276   :  { %v2636_v49 = vadd.f32 %v5079_v8, %v2635_v16  ;;  %3359 = vlog2.f32 %v1218_v42  ;;  %v2197_v48 = vmul.f32 -0.5, %v5455_v30  ;;  %v1214_v4 = vmul.f32 %v5275_v3, %v1213_v5 }
 0x277   :  { %v1684_v27 = vmin.f32 %v5451_v52, 20.0  ;;  %3361 = vpow2.f32 %v667_v63  ;;  %vm5501_vm0 = vcmp.lt.f32.partialorder %v1215_v24, 0.0004427343  ;;  %v1223_v57 = vmul.f32 %v5323_v60, %v1222_v47 }
 0x278   :  { %2764 = vst [vmem:[%s5904_s9 + $0xa8] sm:$0xff] %v2636_v49  ;;  %3363 = vlog2.f32 %v2194_v33  ;;  %vm5507_vm15 = vcmp.lt.f32.partialorder %v1224_v58, 0.0004427343  ;;  %v2198_v45 = vadd.f32 1.0, %v2197_v48  ;;  %v2200_v63 = vand.u32 2147483647, %v5455_v30 }
 0x279   :  { %v5473_v38 = vpop.eup %3353  ;;  %v1790_v28 = vmul.f32 1.442695, %v1684_v27  ;;  %v1227_v60 = vadd.f32 1.0, %v5448_v2  ;;  %vm473_vm1 = vcmp.gt.f32.partialorder %v5177_v55, 20.0  ;;  %vm474_vm2 = vcmp.gt.f32.partialorder %v5218_v20, 20.0 }
 0x27a   :  { %v3356_v21 = vpop.eup %3355  ;;  %v2203_v7 = vadd.f32 1.0, %v5473_v38  ;;  %v2206_v6 = vmul.f32 -0.5, %v5473_v38  ;;  %v2209_v39 = vand.u32 2147483647, %v5473_v38  ;;  %v2199_v50 = vmul.f32 %v5455_v30, %v2198_v45 }
 0x27b   :  { %v2187_v23 = vmul.f32 0.6931472, %v3356_v21  ;;  %v3358_v34 = vpop.eup %3357  ;;  %1562 = vmatmul.bf16.gmra.mxu3 %v1338_v19  ;;  %vm5527_vm3 = vcmp.lt.f32.partialorder %v2200_v63, 0.0004427343  ;;  %v1230_v24 = vmul.f32 -0.5, %v5448_v2  ;;  %vm1619_vm5 = vcmp.gt.f32.partialorder %v5415_v54, 20.0 }
 0x27c   :  { %v1525_v51 = vpop.f32.mrf.mxu1  ;;  %3365 = vlog2.f32 %v2203_v7  ;;  %v3360_v46 = vpop.eup %3359  ;;  %v1211_v25 = vmul.f32 0.6931472, %v3358_v34  ;;  %v2207_v3 = vadd.f32 1.0, %v2206_v6  ;;  %vm5536_vm4 = vcmp.lt.f32.partialorder %v2209_v39, 0.0004427343 }
 0x27d   :  { %v2193_v61 = vsel %vm2192_vm14, %v2190_v37, %v2187_v23  ;;  %v5489_v36 = vadd.f32 %v5330_v10, %v1525_v51  ;;  %v5498_v0 = vpop.eup %3361  ;;  %3367 = vpow2.f32 %v1790_v28  ;;  %v2638_v40 = vpop.f32.mrf.mxu2  ;;  %v1220_v26 = vmul.f32 0.6931472, %v3360_v46 }
 0x27e   :  { %v2449_v59 = vsel %vm1617_vm13, %v5333_v13, %v2193_v61  ;;  %v2639_v32 = vadd.f32 %v5079_v8, %v2638_v40  ;;  %v3364_v29 = vpop.eup %3363  ;;  %v1217_v15 = vsel %vm5501_vm0, %v1214_v4, %v1211_v25  ;;  %v1236_v14 = vadd.f32 1.0, %v5498_v0 }
 0x27f   :  { %v2493_v53 = vpack.c.bf16 %v2449_v59, %v2448_v11  ;;  %v1685_v1 = vmin.f32 %v5489_v36, 20.0  ;;  %v1226_v42 = vsel %vm5507_vm15, %v1223_v57, %v1220_v26  ;;  %v2196_v41 = vmul.f32 0.6931472, %v3364_v29 }
 0x280   :  { %2765 = vst [vmem:[%s5904_s9 + $0xb0] sm:$0xff] %v2639_v32  ;;  %v2208_v49 = vmul.f32 %v5473_v38, %v2207_v3  ;;  %v1305_v12 = vsel %vm473_vm1, %v5177_v55, %v1217_v15  ;;  %v1306_v21 = vsel %vm474_vm2, %v5218_v20, %v1226_v42  ;;  %v1239_v55 = vmul.f32 -0.5, %v5498_v0 }
 0x281   :  { %v1792_v13 = vmul.f32 1.442695, %v1685_v1  ;;  %2677 = vmatmul.bf16.gmra.mxu2 %v2493_v53  ;;  %v2202_v20 = vsel %vm5527_vm3, %v2199_v50, %v2196_v41  ;;  %v1339_v28 = vpack.c.bf16 %v1306_v21, %v1305_v12  ;;  %vm1618_vm6 = vcmp.gt.f32.partialorder %v5370_v44, 20.0 }
 0x282   :  { %v3366_v22 = vpop.eup %3365  ;;  %v1231_v5 = vadd.f32 1.0, %v1230_v24  ;;  %v2450_v61 = vsel %vm1618_vm6, %v5370_v44, %v2202_v20  ;;  %v1240_v47 = vadd.f32 1.0, %v1239_v55  ;;  %v1233_v48 = vand.u32 2147483647, %v5448_v2 }
 0x283   :  { %3369 = vpow2.f32 %v1792_v13  ;;  %v2205_v35 = vmul.f32 0.6931472, %v3366_v22  ;;  %v5524_v16 = vpop.eup %3367  ;;  %v1242_v6 = vand.u32 2147483647, %v5498_v0  ;;  %vm475_vm9 = vcmp.gt.f32.partialorder %v5255_v31, 20.0 }
 0x284   :  { %v1528_v17 = vpop.f32.mrf.mxu1  ;;  %3371 = vlog2.f32 %v1227_v60  ;;  %v2212_v23 = vadd.f32 1.0, %v5524_v16  ;;  %v1232_v1 = vmul.f32 %v5448_v2, %v1231_v5  ;;  %v2215_v40 = vmul.f32 -0.5, %v5524_v16 }
 0x285   :  { %v5533_v18 = vadd.f32 %v5330_v10, %v1528_v17  ;;  %v2640_v33 = vpop.f32.mrf.mxu2  ;;  %v2211_v30 = vsel %vm5536_vm4, %v2208_v49, %v2205_v35  ;;  %3373 = vlog2.f32 %v1236_v14  ;;  %v1241_v56 = vmul.f32 %v5498_v0, %v1240_v47 }
 0x286   :  { %v2641_v19 = vadd.f32 %v5079_v8, %v2640_v33  ;;  %v2451_v11 = vsel %vm1619_vm5, %v5415_v54, %v2211_v30  ;;  %vm5566_vm7 = vcmp.lt.f32.partialorder %v1233_v48, 0.0004427343  ;;  %vm5570_vm8 = vcmp.lt.f32.partialorder %v1242_v6, 0.0004427343 }
 0x287   :  { %v1686_v7 = vmin.f32 %v5533_v18, 20.0  ;;  %v2494_v59 = vpack.c.bf16 %v2451_v11, %v2450_v61  ;;  %vm476_vm10 = vcmp.gt.f32.partialorder %v5378_v62, 20.0  ;;  %v2216_v0 = vadd.f32 1.0, %v2215_v40 }
 0x288   :  { %2766 = vst [vmem:[%s5904_s9 + $0xb8] sm:$0xff] %v2641_v19  ;;  %vm1621_vm13 = vcmp.gt.f32.partialorder %v5489_v36, 20.0  ;;  %vm1620_vm14 = vcmp.gt.f32.partialorder %v5451_v52, 20.0  ;;  %vm1622_vm2 = vcmp.gt.f32.partialorder %v5533_v18, 20.0 }
 0x289   :  { %v3370_v38 = vpop.eup %3369  ;;  %v1794_v51 = vmul.f32 1.442695, %v1686_v7  ;;  %v2217_v41 = vmul.f32 %v5524_v16, %v2216_v0 }
 0x28a   :  { %v2221_v37 = vadd.f32 1.0, %v3370_v38  ;;  %v3372_v34 = vpop.eup %3371  ;;  %v2224_v53 = vmul.f32 -0.5, %v3370_v38  ;;  %v2227_v63 = vand.u32 2147483647, %v3370_v38 }
 0x28b   :  { %1567 = vmatmul.bf16.gmra.mxu3 %v1339_v28  ;;  %v3374_v46 = vpop.eup %3373  ;;  %v1229_v25 = vmul.f32 0.6931472, %v3372_v34 }
 0x28c   :  { %3375 = vlog2.f32 %v2221_v37  ;;  %v1530_v58 = vpop.f32.mrf.mxu1  ;;  %v1238_v4 = vmul.f32 0.6931472, %v3374_v46  ;;  %v2225_v2 = vadd.f32 1.0, %v2224_v53  ;;  %vm5585_vm11 = vcmp.lt.f32.partialorder %v2227_v63, 0.0004427343 }
 0x28d   :  { %3377 = vlog2.f32 %v2212_v23  ;;  %v5560_v54 = vadd.f32 %v5330_v10, %v1530_v58  ;;  %v2643_v32 = vpop.f32.mrf.mxu2  ;;  %v1235_v22 = vsel %vm5566_vm7, %v1232_v1, %v1229_v25 }
 0x28e   :  { %3379 = vpow2.f32 %v1794_v51  ;;  %v2644_v45 = vadd.f32 %v5079_v8, %v2643_v32  ;;  %v1244_v39 = vsel %vm5570_vm8, %v1241_v56, %v1238_v4  ;;  %v2218_v8 = vand.u32 2147483647, %v5524_v16  ;;  %v5607_v16 = vld [vmem:[%s5903_s8] ss:$0 sm:$0xff] }
 0x28f   :  { %v1687_v44 = vmin.f32 %v5560_v54, 20.0  ;;  %v2226_v35 = vmul.f32 %v3370_v38, %v2225_v2  ;;  %v1307_v42 = vsel %vm475_vm9, %v5255_v31, %v1235_v22  ;;  %v1308_v17 = vsel %vm476_vm10, %v5378_v62, %v1244_v39 }
 0x290   :  { %2767 = vst [vmem:[%s5904_s9 + $0xc0] sm:$0xff] %v2644_v45  ;;  %vm5594_vm12 = vcmp.lt.f32.partialorder %v2218_v8, 0.0004427343  ;;  %v1340_v30 = vpack.c.bf16 %v1308_v17, %v1307_v42  ;;  %vm1623_vm1 = vcmp.gt.f32.partialorder %v5560_v54, 20.0 }
 0x291   :  { %2682 = vmatmul.bf16.gmra.mxu2 %v2494_v59  ;;  %v1796_v43 = vmul.f32 1.442695, %v1687_v44 }
 0x292   :  { %v3376_v13 = vpop.eup %3375 }
 0x293   :  { %v3378_v29 = vpop.eup %3377  ;;  %v2223_v3 = vmul.f32 0.6931472, %v3376_v13  ;;  %3381 = vpow2.f32 %v1796_v43 }
 0x294   :  { %v3380_v60 = vpop.eup %3379  ;;  %v2214_v15 = vmul.f32 0.6931472, %v3378_v29  ;;  %v1533_v12 = vpop.f32.mrf.mxu1 }
 0x295   :  { %v2229_v50 = vsel %vm5585_vm11, %v2226_v35, %v2223_v3  ;;  %v2230_v49 = vadd.f32 1.0, %v3380_v60  ;;  %v2645_v9 = vpop.f32.mrf.mxu2  ;;  %v5602_v62 = vadd.f32 %v5330_v10, %v1533_v12  ;;  %v2233_v37 = vmul.f32 -0.5, %v3380_v60 }
 0x296   :  { %v2220_v33 = vsel %vm5594_vm12, %v2217_v41, %v2214_v15  ;;  %v2646_v21 = vadd.f32 %v5607_v16, %v2645_v9  ;;  %v2453_v24 = vsel %vm1621_vm13, %v5489_v36, %v2229_v50  ;;  %v2236_v59 = vand.u32 2147483647, %v3380_v60 }
 0x297   :  { %v1688_v7 = vmin.f32 %v5602_v62, 20.0  ;;  %v2452_v19 = vsel %vm1620_vm14, %v5451_v52, %v2220_v33  ;;  %3383 = vlog2.f32 %v2230_v49  ;;  %v2234_v47 = vadd.f32 1.0, %v2233_v37 }
 0x298   :  { %2768 = vst [vmem:[%s5904_s9 + $0xc8] sm:$0xff] %v2646_v21  ;;  %v2495_v55 = vpack.c.bf16 %v2453_v24, %v2452_v19  ;;  %vm2237_vm15 = vcmp.lt.f32.partialorder %v2236_v59, 0.0004427343  ;;  %vm1624_vm6 = vcmp.gt.f32.partialorder %v5602_v62, 20.0 }
 0x299   :  { %v3382_v31 = vpop.eup %3381  ;;  %v1798_v20 = vmul.f32 1.442695, %v1688_v7  ;;  %v2235_v40 = vmul.f32 %v3380_v60, %v2234_v47 }
 0x29a   :  { %v2239_v38 = vadd.f32 1.0, %v3382_v31  ;;  %v2242_v23 = vmul.f32 -0.5, %v3382_v31  ;;  %v2245_v5 = vand.u32 2147483647, %v3382_v31 }
 0x29b   :  { %1572 = vmatmul.bf16.gmra.mxu3 %v1340_v30 }
 0x29c   :  { %3385 = vlog2.f32 %v2239_v38  ;;  %v1535_v36 = vpop.f32.mrf.mxu1  ;;  %v2243_v28 = vadd.f32 1.0, %v2242_v23  ;;  %vm2246_vm0 = vcmp.lt.f32.partialorder %v2245_v5, 0.0004427343 }
 0x29d   :  { %3387 = vpow2.f32 %v1798_v20  ;;  %v3384_v11 = vpop.eup %3383  ;;  %v5618_v51 = vadd.f32 %v5330_v10, %v1535_v36 }
 0x29e   :  { %v2232_v48 = vmul.f32 0.6931472, %v3384_v11  ;;  %v2244_v6 = vmul.f32 %v3382_v31, %v2243_v28 }
 0x29f   :  { %v1689_v52 = vmin.f32 %v5618_v51, 20.0  ;;  %vm1625_vm5 = vcmp.gt.f32.partialorder %v5618_v51, 20.0 }
 0x2a0   :  { %v2238_v4 = vsel %vm2237_vm15, %v2235_v40, %v2232_v48 }
 0x2a1   :  { %2687 = vmatmul.bf16.gmra.mxu2 %v2495_v55  ;;  %v1800_v1 = vmul.f32 1.442695, %v1689_v52  ;;  %v2454_v26 = vsel %vm1622_vm2, %v5533_v18, %v2238_v4 }
 0x2a2   :  { %v3386_v34 = vpop.eup %3385  ;;  %v2648_v61 = vpop.f32.mrf.mxu2 }
 0x2a3   :  { %v2649_v46 = vadd.f32 %v5607_v16, %v2648_v61  ;;  %v2241_v58 = vmul.f32 0.6931472, %v3386_v34  ;;  %v3388_v53 = vpop.eup %3387  ;;  %3389 = vpow2.f32 %v1800_v1 }
 0x2a4   :  { %v2248_v25 = vadd.f32 1.0, %v3388_v53  ;;  %v2251_v45 = vmul.f32 -0.5, %v3388_v53  ;;  %v2254_v60 = vand.u32 2147483647, %v3388_v53 }
 0x2a5   :  { %2769 = vst [vmem:[%s5904_s9 + $0xd0] sm:$0xff] %v2649_v46  ;;  %v2247_v44 = vsel %vm2246_vm0, %v2244_v6, %v2241_v58 }
 0x2a6   :  { %v2455_v56 = vsel %vm1623_vm1, %v5560_v54, %v2247_v44  ;;  %3391 = vlog2.f32 %v2248_v25  ;;  %v2252_v39 = vadd.f32 1.0, %v2251_v45  ;;  %vm5644_vm3 = vcmp.lt.f32.partialorder %v2254_v60, 0.0004427343 }
 0x2a7   :  { %v2496_v57 = vpack.c.bf16 %v2455_v56, %v2454_v26 }
 0x2a8   :  { %v2253_v50 = vmul.f32 %v3388_v53, %v2252_v39 }
 0x2a9   :  { %v3390_v2 = vpop.eup %3389 }
 0x2aa   :  { %v2650_v13 = vpop.f32.mrf.mxu2  ;;  %v2257_v54 = vadd.f32 1.0, %v3390_v2  ;;  %v2260_v63 = vmul.f32 -0.5, %v3390_v2  ;;  %v2263_v14 = vand.u32 2147483647, %v3390_v2 }
 0x2ab   :  { %v2651_v32 = vadd.f32 %v5607_v16, %v2650_v13  ;;  %v1538_v29 = vpop.f32.mrf.mxu3 }
 0x2ac   :  { %v5634_v43 = vadd.f32 %v5330_v10, %v1538_v29  ;;  %3393 = vlog2.f32 %v2257_v54  ;;  %v3392_v3 = vpop.eup %3391  ;;  %v2261_v15 = vadd.f32 1.0, %v2260_v63  ;;  %vm2264_vm4 = vcmp.lt.f32.partialorder %v2263_v14, 0.0004427343 }
 0x2ad   :  { %2770 = vst [vmem:[%s5904_s9 + $0xd8] sm:$0xff] %v2651_v32  ;;  %v2250_v35 = vmul.f32 0.6931472, %v3392_v3 }
 0x2ae   :  { %v1690_v0 = vmin.f32 %v5634_v43, 20.0  ;;  %v2262_v12 = vmul.f32 %v3390_v2, %v2261_v15  ;;  %vm1626_vm8 = vcmp.gt.f32.partialorder %v5634_v43, 20.0 }
 0x2af   :  { %v2256_v33 = vsel %vm5644_vm3, %v2253_v50, %v2250_v35 }
 0x2b0   :  { %v1802_v18 = vmul.f32 1.442695, %v1690_v0  ;;  %v2456_v55 = vsel %vm1624_vm6, %v5602_v62, %v2256_v33 }
 0x2b1   :  { %2692 = vmatmul.bf16.gmra.mxu2 %v2496_v57 }
 0x2b2   :  { %v2653_v22 = vpop.f32.mrf.mxu2  ;;  %3395 = vpow2.f32 %v1802_v18  ;;  %v3394_v17 = vpop.eup %3393 }
 0x2b3   :  { %v2654_v8 = vadd.f32 %v5607_v16, %v2653_v22  ;;  %v1540_v42 = vpop.f32.mrf.mxu3  ;;  %v2259_v49 = vmul.f32 0.6931472, %v3394_v17 }
 0x2b4   :  { %v5642_v41 = vadd.f32 %v5330_v10, %v1540_v42 }
 0x2b5   :  { %2771 = vst [vmem:[%s5904_s9 + $0xe0] sm:$0xff] %v2654_v8  ;;  %v2265_v31 = vsel %vm2264_vm4, %v2262_v12, %v2259_v49 }
 0x2b6   :  { %v1691_v9 = vmin.f32 %v5642_v41, 20.0  ;;  %v2457_v38 = vsel %vm1625_vm5, %v5618_v51, %v2265_v31  ;;  %vm1627_vm10 = vcmp.gt.f32.partialorder %v5642_v41, 20.0 }
 0x2b7   :  { %v2497_v23 = vpack.c.bf16 %v2457_v38, %v2456_v55 }
 0x2b8   :  { %v3396_v21 = vpop.eup %3395  ;;  %v1804_v30 = vmul.f32 1.442695, %v1691_v9 }
 0x2b9   :  { %v2266_v7 = vadd.f32 1.0, %v3396_v21  ;;  %v2269_v11 = vmul.f32 -0.5, %v3396_v21  ;;  %v2272_v58 = vand.u32 2147483647, %v3396_v21 }
 0x2ba   :  { %v2655_v24 = vpop.f32.mrf.mxu2  ;;  %3397 = vpow2.f32 %v1804_v30 }
 0x2bb   :  { %v2656_v19 = vadd.f32 %v5607_v16, %v2655_v24  ;;  %v1543_v20 = vpop.f32.mrf.mxu3  ;;  %3399 = vlog2.f32 %v2266_v7  ;;  %v2270_v46 = vadd.f32 1.0, %v2269_v11  ;;  %vm5671_vm7 = vcmp.lt.f32.partialorder %v2272_v58, 0.0004427343 }
 0x2bc   :  { %v5660_v37 = vadd.f32 %v5330_v10, %v1543_v20 }
 0x2bd   :  { %2772 = vst [vmem:[%s5904_s9 + $0xe8] sm:$0xff] %v2656_v19  ;;  %v2271_v44 = vmul.f32 %v3396_v21, %v2270_v46 }
 0x2be   :  { %v1692_v36 = vmin.f32 %v5660_v37, 20.0  ;;  %vm1628_vm13 = vcmp.gt.f32.partialorder %v5660_v37, 20.0 }
 0x2c0   :  { %v3398_v28 = vpop.eup %3397  ;;  %v1806_v51 = vmul.f32 1.442695, %v1692_v36 }
 0x2c1   :  { %2697 = vmatmul.bf16.gmra.mxu2 %v2497_v23  ;;  %v2275_v34 = vadd.f32 1.0, %v3398_v28  ;;  %v2278_v61 = vmul.f32 -0.5, %v3398_v28  ;;  %v3400_v47 = vpop.eup %3399  ;;  %v2281_v1 = vand.u32 2147483647, %v3398_v28 }
 0x2c2   :  { %v2658_v5 = vpop.f32.mrf.mxu2  ;;  %3401 = vpow2.f32 %v1806_v51  ;;  %v2268_v48 = vmul.f32 0.6931472, %v3400_v47 }
 0x2c3   :  { %v2659_v62 = vadd.f32 %v5607_v16, %v2658_v5  ;;  %3403 = vlog2.f32 %v2275_v34  ;;  %v1545_v52 = vpop.f32.mrf.mxu3  ;;  %v2279_v6 = vadd.f32 1.0, %v2278_v61  ;;  %vm2282_vm9 = vcmp.lt.f32.partialorder %v2281_v1, 0.0004427343 }
 0x2c4   :  { %v5668_v59 = vadd.f32 %v5330_v10, %v1545_v52  ;;  %v2274_v57 = vsel %vm5671_vm7, %v2271_v44, %v2268_v48 }
 0x2c5   :  { %2773 = vst [vmem:[%s5904_s9 + $0xf0] sm:$0xff] %v2659_v62  ;;  %v2280_v29 = vmul.f32 %v3398_v28, %v2279_v6  ;;  %v2458_v0 = vsel %vm1626_vm8, %v5634_v43, %v2274_v57 }
 0x2c6   :  { %v1693_v53 = vmin.f32 %v5668_v59, 20.0  ;;  %vm1629_vm14 = vcmp.gt.f32.partialorder %v5668_v59, 20.0 }
 0x2c8   :  { %v3402_v40 = vpop.eup %3401  ;;  %v1808_v25 = vmul.f32 1.442695, %v1693_v53 }
 0x2c9   :  { %v3404_v56 = vpop.eup %3403  ;;  %v2284_v26 = vadd.f32 1.0, %v3402_v40  ;;  %v2287_v39 = vmul.f32 -0.5, %v3402_v40 }
 0x2ca   :  { %v2660_v4 = vpop.f32.mrf.mxu2  ;;  %v2277_v2 = vmul.f32 0.6931472, %v3404_v56  ;;  %3405 = vpow2.f32 %v1808_v25 }
 0x2cb   :  { %v2661_v32 = vadd.f32 %v5607_v16, %v2660_v4  ;;  %v1548_v45 = vpop.f32.mrf.mxu3  ;;  %3407 = vlog2.f32 %v2284_v26  ;;  %v2288_v27 = vadd.f32 1.0, %v2287_v39 }
 0x2cc   :  { %v2283_v54 = vsel %vm2282_vm9, %v2280_v29, %v2277_v2  ;;  %v5684_v63 = vadd.f32 %v5330_v10, %v1548_v45 }
 0x2cd   :  { %2774 = vst [vmem:[%s5904_s9 + $0xf8] sm:$0xff] %v2661_v32  ;;  %v2459_v3 = vsel %vm1627_vm10, %v5642_v41, %v2283_v54  ;;  %v2290_v41 = vand.u32 2147483647, %v3402_v40  ;;  %v2289_v33 = vmul.f32 %v3402_v40, %v2288_v27 }
 0x2ce   :  { %v2498_v18 = vpack.c.bf16 %v2459_v3, %v2458_v0  ;;  %v1694_v22 = vmin.f32 %v5684_v63, 20.0  ;;  %vm1630_vm1 = vcmp.gt.f32.partialorder %v5684_v63, 20.0 }
 0x2cf   :  { %vm5697_vm11 = vcmp.lt.f32.partialorder %v2290_v41, 0.0004427343 }
 0x2d0   :  { %v3406_v8 = vpop.eup %3405  ;;  %v1810_v60 = vmul.f32 1.442695, %v1694_v22  ;;  %2702 = vmatmul.bf16.vlgmr.msra.gmra.mxu3 %v2498_v18 }
 0x2d1   :  { %v2293_v35 = vadd.f32 1.0, %v3406_v8  ;;  %v2296_v14 = vmul.f32 -0.5, %v3406_v8  ;;  %v3408_v42 = vpop.eup %3407  ;;  %v2299_v31 = vand.u32 2147483647, %v3406_v8 }
 0x2d2   :  { %v2663_v15 = vpop.f32.mrf.mxu2  ;;  %3409 = vpow2.f32 %v1810_v60  ;;  %v2286_v49 = vmul.f32 0.6931472, %v3408_v42 }
 0x2d3   :  { %v2664_v17 = vadd.f32 %v5607_v16, %v2663_v15  ;;  %v1550_v50 = vpop.f32.mrf.mxu3  ;;  %3411 = vlog2.f32 %v2293_v35  ;;  %v2297_v12 = vadd.f32 1.0, %v2296_v14  ;;  %vm2300_vm12 = vcmp.lt.f32.partialorder %v2299_v31, 0.0004427343 }
 0x2d4   :  { %v5694_v43 = vadd.f32 %v5330_v10, %v1550_v50  ;;  %v2292_v19 = vsel %vm5697_vm11, %v2289_v33, %v2286_v49 }
 0x2d5   :  { %2775 = vst [vmem:[%s5904_s9 + $0x100] sm:$0xff] %v2664_v17  ;;  %v2298_v55 = vmul.f32 %v3406_v8, %v2297_v12  ;;  %v2460_v5 = vsel %vm1628_vm13, %v5660_v37, %v2292_v19 }
 0x2d6   :  { %v1695_v9 = vmin.f32 %v5694_v43, 20.0  ;;  %vm1631_vm2 = vcmp.gt.f32.partialorder %v5694_v43, 20.0 }
 0x2d8   :  { %v3410_v21 = vpop.eup %3409  ;;  %v1812_v30 = vmul.f32 1.442695, %v1695_v9 }
 0x2d9   :  { %v3412_v38 = vpop.eup %3411  ;;  %v2302_v36 = vadd.f32 1.0, %v3410_v21  ;;  %v2305_v58 = vmul.f32 -0.5, %v3410_v21  ;;  %v2308_v44 = vand.u32 2147483647, %v3410_v21 }
 0x2da   :  { %v2665_v7 = vpop.f32.mrf.mxu2  ;;  %3413 = vpow2.f32 %v1812_v30  ;;  %v2295_v20 = vmul.f32 0.6931472, %v3412_v38 }
 0x2db   :  { %v2666_v23 = vadd.f32 %v5607_v16, %v2665_v7  ;;  %3415 = vlog2.f32 %v2302_v36  ;;  %v2306_v40 = vadd.f32 1.0, %v2305_v58  ;;  %vm2309_vm0 = vcmp.lt.f32.partialorder %v2308_v44, 0.0004427343 }
 0x2dc   :  { %v2301_v11 = vsel %vm2300_vm12, %v2298_v55, %v2295_v20 }
 0x2dd   :  { %2776 = vst [vmem:[%s5904_s9 + $0x108] sm:$0xff] %v2666_v23  ;;  %v2461_v34 = vsel %vm1629_vm14, %v5668_v59, %v2301_v11  ;;  %v2307_v2 = vmul.f32 %v3410_v21, %v2306_v40 }
 0x2de   :  { %v1553_v28 = vpop.f32.mrf.mxu3  ;;  %v2499_v62 = vpack.c.bf16 %v2461_v34, %v2460_v5 }
 0x2df   :  { %v5710_v51 = vadd.f32 %v5330_v10, %v1553_v28 }
 0x2e0   :  { %v3414_v47 = vpop.eup %3413  ;;  %2707 = vmatmul.bf16.gmra.mxu3 %v2499_v62 }
 0x2e1   :  { %v1696_v61 = vmin.f32 %v5710_v51, 20.0  ;;  %v2311_v48 = vadd.f32 1.0, %v3414_v47  ;;  %v2314_v53 = vmul.f32 -0.5, %v3414_v47  ;;  %v3416_v1 = vpop.eup %3415  ;;  %v2317_v13 = vand.u32 2147483647, %v3414_v47 }
 0x2e2   :  { %v2668_v46 = vpop.f32.mrf.mxu2  ;;  %v2304_v4 = vmul.f32 0.6931472, %v3416_v1  ;;  %vm1632_vm5 = vcmp.gt.f32.partialorder %v5710_v51, 20.0 }
 0x2e3   :  { %v1814_v52 = vmul.f32 1.442695, %v1696_v61  ;;  %v2669_v6 = vadd.f32 %v5607_v16, %v2668_v46  ;;  %v2315_v56 = vadd.f32 1.0, %v2314_v53  ;;  %vm2318_vm15 = vcmp.lt.f32.partialorder %v2317_v13, 0.0004427343 }
 0x2e4   :  { %v2310_v0 = vsel %vm2309_vm0, %v2307_v2, %v2304_v4 }
 0x2e5   :  { %3417 = vpow2.f32 %v1814_v52  ;;  %2777 = vst [vmem:[%s5904_s9 + $0x110] sm:$0xff] %v2669_v6  ;;  %v2316_v18 = vmul.f32 %v3414_v47, %v2315_v56  ;;  %v2462_v60 = vsel %vm1630_vm1, %v5684_v63, %v2310_v0 }
 0x2e6   :  { %v1555_v37 = vpop.f32.mrf.mxu3  ;;  %3419 = vlog2.f32 %v2311_v48 }
 0x2e7   :  { %v5720_v59 = vadd.f32 %v5330_v10, %v1555_v37 }
 0x2e9   :  { %v1697_v25 = vmin.f32 %v5720_v59, 20.0  ;;  %vm1633_vm6 = vcmp.gt.f32.partialorder %v5720_v59, 20.0 }
 0x2ea   :  { %v2670_v57 = vpop.f32.mrf.mxu2 }
 0x2eb   :  { %v3418_v32 = vpop.eup %3417  ;;  %v1816_v26 = vmul.f32 1.442695, %v1697_v25  ;;  %v2671_v45 = vadd.f32 %v5607_v16, %v2670_v57 }
 0x2ec   :  { %v3420_v29 = vpop.eup %3419  ;;  %v2320_v54 = vadd.f32 1.0, %v3418_v32  ;;  %v2323_v27 = vmul.f32 -0.5, %v3418_v32  ;;  %v2326_v31 = vand.u32 2147483647, %v3418_v32 }
 0x2ed   :  { %3421 = vpow2.f32 %v1816_v26  ;;  %v2313_v3 = vmul.f32 0.6931472, %v3420_v29  ;;  %2778 = vst [vmem:[%s5904_s9 + $0x118] sm:$0xff] %v2671_v45 }
 0x2ee   :  { %v1558_v22 = vpop.f32.mrf.mxu3  ;;  %3423 = vlog2.f32 %v2320_v54  ;;  %v2324_v33 = vadd.f32 1.0, %v2323_v27  ;;  %vm2327_vm3 = vcmp.lt.f32.partialorder %v2326_v31, 0.0004427343 }
 0x2ef   :  { %v5730_v39 = vadd.f32 %v5330_v10, %v1558_v22  ;;  %v2319_v8 = vsel %vm2318_vm15, %v2316_v18, %v2313_v3 }
 0x2f0   :  { %v2463_v15 = vsel %vm1631_vm2, %v5694_v43, %v2319_v8  ;;  %v5742_v43 = vld [vmem:[%s5901_s6] ss:$0 sm:$0xff]  ;;  %v2325_v23 = vmul.f32 %v3418_v32, %v2324_v33 }
 0x2f1   :  { %v1698_v35 = vmin.f32 %v5730_v39, 20.0  ;;  %v2500_v14 = vpack.c.bf16 %v2463_v15, %v2462_v60  ;;  %vm1634_vm9 = vcmp.gt.f32.partialorder %v5730_v39, 20.0 }
 0x2f2   :  { %v2673_v50 = vpop.f32.mrf.mxu2 }
 0x2f3   :  { %v3422_v42 = vpop.eup %3421  ;;  %v1818_v17 = vmul.f32 1.442695, %v1698_v35  ;;  %2712 = vmatmul.bf16.gmra.mxu3 %v2500_v14  ;;  %v2674_v41 = vadd.f32 %v5607_v16, %v2673_v50 }
 0x2f4   :  { %v2329_v49 = vadd.f32 1.0, %v3422_v42  ;;  %v2332_v10 = vmul.f32 -0.5, %v3422_v42  ;;  %v3424_v12 = vpop.eup %3423  ;;  %v2335_v38 = vand.u32 2147483647, %v3422_v42 }
 0x2f5   :  { %3425 = vpow2.f32 %v1818_v17  ;;  %2779 = vst [vmem:[%s5904_s9 + $0x120] sm:$0xff] %v2674_v41  ;;  %v2322_v30 = vmul.f32 0.6931472, %v3424_v12 }
 0x2f6   :  { %v1560_v63 = vpop.f32.mrf.mxu3  ;;  %3427 = vlog2.f32 %v2329_v49  ;;  %v2333_v24 = vadd.f32 1.0, %v2332_v10  ;;  %vm2336_vm4 = vcmp.lt.f32.partialorder %v2335_v38, 0.0004427343 }
 0x2f7   :  { %v5745_v9 = vadd.f32 %v5742_v43, %v1560_v63  ;;  %v2328_v11 = vsel %vm2327_vm3, %v2325_v23, %v2322_v30 }
 0x2f8   :  { %v2334_v34 = vmul.f32 %v3422_v42, %v2333_v24  ;;  %v2464_v52 = vsel %vm1632_vm5, %v5710_v51, %v2328_v11 }
 0x2f9   :  { %v1699_v21 = vmin.f32 %v5745_v9, 20.0  ;;  %vm1635_vm10 = vcmp.gt.f32.partialorder %v5745_v9, 20.0 }
 0x2fa   :  { %v2675_v55 = vpop.f32.mrf.mxu2 }
 0x2fb   :  { %v3426_v7 = vpop.eup %3425  ;;  %v1820_v19 = vmul.f32 1.442695, %v1699_v21  ;;  %v2676_v36 = vadd.f32 %v5607_v16, %v2675_v55 }
 0x2fc   :  { %v3428_v20 = vpop.eup %3427  ;;  %v2338_v28 = vadd.f32 1.0, %v3426_v7  ;;  %v2341_v37 = vmul.f32 -0.5, %v3426_v7  ;;  %v2344_v13 = vand.u32 2147483647, %v3426_v7 }
 0x2fd   :  { %3429 = vpow2.f32 %v1820_v19  ;;  %v2331_v5 = vmul.f32 0.6931472, %v3428_v20  ;;  %2780 = vst [vmem:[%s5904_s9 + $0x128] sm:$0xff] %v2676_v36 }
 0x2fe   :  { %v1563_v62 = vpop.f32.mrf.mxu3  ;;  %3431 = vlog2.f32 %v2338_v28  ;;  %v2342_v56 = vadd.f32 1.0, %v2341_v37  ;;  %vm2345_vm7 = vcmp.lt.f32.partialorder %v2344_v13, 0.0004427343 }
 0x2ff   :  { %v5755_v61 = vadd.f32 %v5742_v43, %v1563_v62  ;;  %v2337_v47 = vsel %vm2336_vm4, %v2334_v34, %v2331_v5 }
 0x300   :  { %v2465_v46 = vsel %vm1633_vm6, %v5720_v59, %v2337_v47  ;;  %v2343_v0 = vmul.f32 %v3426_v7, %v2342_v56 }
 0x301   :  { %v1700_v58 = vmin.f32 %v5755_v61, 20.0  ;;  %v2501_v48 = vpack.c.bf16 %v2465_v46, %v2464_v52  ;;  %vm1636_vm13 = vcmp.gt.f32.partialorder %v5755_v61, 20.0 }
 0x303   :  { %v3430_v6 = vpop.eup %3429  ;;  %v1822_v53 = vmul.f32 1.442695, %v1700_v58  ;;  %2717 = vmatmul.bf16.gmra.mxu3 %v2501_v48 }
 0x304   :  { %v2678_v1 = vpop.f32.mrf.mxu2  ;;  %v2347_v44 = vadd.f32 1.0, %v3430_v6  ;;  %v2350_v25 = vmul.f32 -0.5, %v3430_v6  ;;  %v3432_v4 = vpop.eup %3431  ;;  %v2353_v2 = vand.u32 2147483647, %v3430_v6 }
 0x305   :  { %v2679_v40 = vadd.f32 %v5607_v16, %v2678_v1  ;;  %3433 = vpow2.f32 %v1822_v53  ;;  %v2340_v26 = vmul.f32 0.6931472, %v3432_v4 }
 0x306   :  { %v1565_v51 = vpop.f32.mrf.mxu3  ;;  %3435 = vlog2.f32 %v2347_v44  ;;  %v2351_v57 = vadd.f32 1.0, %v2350_v25  ;;  %vm2354_vm8 = vcmp.lt.f32.partialorder %v2353_v2, 0.0004427343 }
 0x307   :  { %2781 = vst [vmem:[%s5904_s9 + $0x130] sm:$0xff] %v2679_v40  ;;  %v5765_v59 = vadd.f32 %v5742_v43, %v1565_v51  ;;  %v2346_v8 = vsel %vm2345_vm7, %v2343_v0, %v2340_v26 }
 0x308   :  { %v2352_v15 = vmul.f32 %v3430_v6, %v2351_v57  ;;  %v2466_v17 = vsel %vm1634_vm9, %v5730_v39, %v2346_v8 }
 0x309   :  { %v1701_v32 = vmin.f32 %v5765_v59, 20.0  ;;  %vm1637_vm14 = vcmp.gt.f32.partialorder %v5765_v59, 20.0 }
 0x30b   :  { %v3434_v29 = vpop.eup %3433  ;;  %v1824_v45 = vmul.f32 1.442695, %v1701_v32 }
 0x30c   :  { %v2680_v54 = vpop.f32.mrf.mxu2  ;;  %v3436_v3 = vpop.eup %3435  ;;  %v2356_v22 = vadd.f32 1.0, %v3434_v29  ;;  %v2359_v63 = vmul.f32 -0.5, %v3434_v29  ;;  %v2362_v38 = vand.u32 2147483647, %v3434_v29 }
 0x30d   :  { %v2681_v18 = vadd.f32 %v5607_v16, %v2680_v54  ;;  %3437 = vpow2.f32 %v1824_v45  ;;  %v2349_v60 = vmul.f32 0.6931472, %v3436_v3 }
 0x30e   :  { %v1568_v35 = vpop.f32.mrf.mxu3  ;;  %3439 = vlog2.f32 %v2356_v22  ;;  %v2360_v24 = vadd.f32 1.0, %v2359_v63  ;;  %vm2363_vm11 = vcmp.lt.f32.partialorder %v2362_v38, 0.0004427343 }
 0x30f   :  { %2782 = vst [vmem:[%s5904_s9 + $0x138] sm:$0xff] %v2681_v18  ;;  %v5775_v14 = vadd.f32 %v5742_v43, %v1568_v35  ;;  %v2355_v42 = vsel %vm2354_vm8, %v2352_v15, %v2349_v60 }
 0x310   :  { %v2467_v50 = vsel %vm1635_vm10, %v5745_v9, %v2355_v42  ;;  %v2361_v11 = vmul.f32 %v3434_v29, %v2360_v24 }
 0x311   :  { %v1702_v27 = vmin.f32 %v5775_v14, 20.0  ;;  %v2502_v41 = vpack.c.bf16 %v2467_v50, %v2466_v17  ;;  %vm1638_vm1 = vcmp.gt.f32.partialorder %v5775_v14, 20.0 }
 0x313   :  { %v3438_v49 = vpop.eup %3437  ;;  %v1826_v10 = vmul.f32 1.442695, %v1702_v27  ;;  %2722 = vmatmul.bf16.gmra.mxu3 %v2502_v41 }
 0x314   :  { %v2683_v12 = vpop.f32.mrf.mxu2  ;;  %v2365_v31 = vadd.f32 1.0, %v3438_v49  ;;  %v2368_v21 = vmul.f32 -0.5, %v3438_v49  ;;  %v3440_v30 = vpop.eup %3439  ;;  %v2371_v23 = vand.u32 2147483647, %v3438_v49 }
 0x315   :  { %v2684_v33 = vadd.f32 %v5607_v16, %v2683_v12  ;;  %3441 = vpow2.f32 %v1826_v10  ;;  %v2358_v19 = vmul.f32 0.6931472, %v3440_v30 }
 0x316   :  { %v1570_v39 = vpop.f32.mrf.mxu3  ;;  %3443 = vlog2.f32 %v2365_v31  ;;  %v2369_v55 = vadd.f32 1.0, %v2368_v21  ;;  %vm2372_vm12 = vcmp.lt.f32.partialorder %v2371_v23, 0.0004427343 }
 0x317   :  { %2783 = vst [vmem:[%s5904_s9 + $0x140] sm:$0xff] %v2684_v33  ;;  %v5785_v9 = vadd.f32 %v5742_v43, %v1570_v39  ;;  %v2364_v47 = vsel %vm2363_vm11, %v2361_v11, %v2358_v19 }
 0x318   :  { %v2370_v46 = vmul.f32 %v3438_v49, %v2369_v55  ;;  %v2468_v53 = vsel %vm1636_vm13, %v5755_v61, %v2364_v47 }
 0x319   :  { %v1703_v7 = vmin.f32 %v5785_v9, 20.0  ;;  %vm1639_vm2 = vcmp.gt.f32.partialorder %v5785_v9, 20.0 }
 0x31b   :  { %v3442_v20 = vpop.eup %3441  ;;  %v1828_v36 = vmul.f32 1.442695, %v1703_v7 }
 0x31c   :  { %v2685_v28 = vpop.f32.mrf.mxu2  ;;  %v3444_v5 = vpop.eup %3443  ;;  %v2374_v62 = vadd.f32 1.0, %v3442_v20  ;;  %v2377_v51 = vmul.f32 -0.5, %v3442_v20  ;;  %v2380_v2 = vand.u32 2147483647, %v3442_v20 }
 0x31d   :  { %v2686_v34 = vadd.f32 %v5607_v16, %v2685_v28  ;;  %3445 = vpow2.f32 %v1828_v36  ;;  %v2367_v52 = vmul.f32 0.6931472, %v3444_v5 }
 0x31e   :  { %v1573_v58 = vpop.f32.mrf.mxu3  ;;  %3447 = vlog2.f32 %v2374_v62  ;;  %v2378_v57 = vadd.f32 1.0, %v2377_v51  ;;  %vm2381_vm0 = vcmp.lt.f32.partialorder %v2380_v2, 0.0004427343 }
 0x31f   :  { %2784 = vst [vmem:[%s5904_s9 + $0x148] sm:$0xff] %v2686_v34  ;;  %v5795_v48 = vadd.f32 %v5742_v43, %v1573_v58  ;;  %v2373_v6 = vsel %vm2372_vm12, %v2370_v46, %v2367_v52 }
 0x320   :  { %v2469_v1 = vsel %vm1637_vm14, %v5765_v59, %v2373_v6  ;;  %v2379_v8 = vmul.f32 %v3442_v20, %v2378_v57 }
 0x321   :  { %v1704_v37 = vmin.f32 %v5795_v48, 20.0  ;;  %v2503_v40 = vpack.c.bf16 %v2469_v1, %v2468_v53  ;;  %vm1640_vm5 = vcmp.gt.f32.partialorder %v5795_v48, 20.0 }
 0x323   :  { %v3446_v44 = vpop.eup %3445  ;;  %v1830_v25 = vmul.f32 1.442695, %v1704_v37  ;;  %2727 = vmatmul.bf16.gmra.mxu3 %v2503_v40 }
 0x324   :  { %v2688_v4 = vpop.f32.mrf.mxu2  ;;  %v2383_v13 = vadd.f32 1.0, %v3446_v44  ;;  %v2386_v32 = vmul.f32 -0.5, %v3446_v44  ;;  %v3448_v26 = vpop.eup %3447  ;;  %v2389_v0 = vand.u32 2147483647, %v3446_v44 }
 0x325   :  { %v2689_v56 = vadd.f32 %v5607_v16, %v2688_v4  ;;  %3449 = vpow2.f32 %v1830_v25  ;;  %v2376_v45 = vmul.f32 0.6931472, %v3448_v26 }
 0x326   :  { %v1575_v61 = vpop.f32.mrf.mxu3  ;;  %3451 = vlog2.f32 %v2383_v13  ;;  %v2387_v54 = vadd.f32 1.0, %v2386_v32  ;;  %vm2390_vm15 = vcmp.lt.f32.partialorder %v2389_v0, 0.0004427343 }
 0x327   :  { %2785 = vst [vmem:[%s5904_s9 + $0x150] sm:$0xff] %v2689_v56  ;;  %v1576_v59 = vadd.f32 %v5742_v43, %v1575_v61  ;;  %v2382_v42 = vsel %vm2381_vm0, %v2379_v8, %v2376_v45 }
 0x328   :  { %v2388_v50 = vmul.f32 %v3446_v44, %v2387_v54  ;;  %v2470_v27 = vsel %vm1638_vm1, %v5775_v14, %v2382_v42 }
 0x329   :  { %v1705_v29 = vmin.f32 %v1576_v59, 20.0  ;;  %vm1641_vm6 = vcmp.gt.f32.partialorder %v1576_v59, 20.0 }
 0x32b   :  { %v3450_v3 = vpop.eup %3449  ;;  %v1832_v18 = vmul.f32 1.442695, %v1705_v29 }
 0x32c   :  { %v2690_v22 = vpop.f32.mrf.mxu2  ;;  %v3452_v60 = vpop.eup %3451  ;;  %v2392_v35 = vadd.f32 1.0, %v3450_v3  ;;  %v2395_v63 = vmul.f32 -0.5, %v3450_v3  ;;  %v2398_v14 = vand.u32 2147483647, %v3450_v3 }
 0x32d   :  { %v2691_v15 = vadd.f32 %v5607_v16, %v2690_v22  ;;  %3453 = vpow2.f32 %v1832_v18  ;;  %v2385_v17 = vmul.f32 0.6931472, %v3452_v60 }
 0x32e   :  { %3455 = vlog2.f32 %v2392_v35  ;;  %v2396_v39 = vadd.f32 1.0, %v2395_v63  ;;  %vm2399_vm3 = vcmp.lt.f32.partialorder %v2398_v14, 0.0004427343 }
 0x32f   :  { %2786 = vst [vmem:[%s5904_s9 + $0x158] sm:$0xff] %v2691_v15  ;;  %v2391_v43 = vsel %vm2390_vm15, %v2388_v50, %v2385_v17 }
 0x330   :  { %v2471_v41 = vsel %vm1639_vm2, %v5785_v9, %v2391_v43  ;;  %v2397_v19 = vmul.f32 %v3450_v3, %v2396_v39 }
 0x331   :  { %v2504_v49 = vpack.c.bf16 %v2471_v41, %v2470_v27 }
 0x333   :  { %v3454_v10 = vpop.eup %3453  ;;  %2732 = vmatmul.bf16.gmra.mxu3 %v2504_v49 }
 0x334   :  { %v2693_v12 = vpop.f32.mrf.mxu2  ;;  %v2401_v31 = vadd.f32 1.0, %v3454_v10  ;;  %v2404_v21 = vmul.f32 -0.5, %v3454_v10  ;;  %v3456_v30 = vpop.eup %3455  ;;  %v2407_v38 = vand.u32 2147483647, %v3454_v10 }
 0x335   :  { %v2694_v33 = vadd.f32 %v5607_v16, %v2693_v12  ;;  %v2394_v24 = vmul.f32 0.6931472, %v3456_v30 }
 0x336   :  { %3457 = vlog2.f32 %v2401_v31  ;;  %v2405_v9 = vadd.f32 1.0, %v2404_v21  ;;  %vm2408_vm4 = vcmp.lt.f32.partialorder %v2407_v38, 0.0004427343 }
 0x337   :  { %2787 = vst [vmem:[%s5904_s9 + $0x160] sm:$0xff] %v2694_v33  ;;  %v2400_v20 = vsel %vm2399_vm3, %v2397_v19, %v2394_v24 }
 0x338   :  { %v2406_v28 = vmul.f32 %v3454_v10, %v2405_v9  ;;  %v2472_v5 = vsel %vm1640_vm5, %v5795_v48, %v2400_v20 }
 0x33c   :  { %v2695_v7 = vpop.f32.mrf.mxu2  ;;  %v3458_v55 = vpop.eup %3457 }
 0x33d   :  { %v2696_v23 = vadd.f32 %v5607_v16, %v2695_v7  ;;  %v2403_v36 = vmul.f32 0.6931472, %v3458_v55 }
 0x33f   :  { %2788 = vst [vmem:[%s5904_s9 + $0x168] sm:$0xff] %v2696_v23  ;;  %v2409_v11 = vsel %vm2408_vm4, %v2406_v28, %v2403_v36 }
 0x340   :  { %v2473_v34 = vsel %vm1641_vm6, %v1576_v59, %v2409_v11 }
 0x341   :  { %v2505_v62 = vpack.c.bf16 %v2473_v34, %v2472_v5 }
 0x343   :  { %2737 = vmatmul.bf16.gmra.mxu3 %v2505_v62 }
 0x344   :  { %v2698_v47 = vpop.f32.mrf.mxu2 }
 0x345   :  { %v2699_v52 = vadd.f32 %v5607_v16, %v2698_v47 }
 0x347   :  { %2789 = vst [vmem:[%s5904_s9 + $0x170] sm:$0xff] %v2699_v52 }
 0x34c   :  { %v2700_v46 = vpop.f32.mrf.mxu2 }
 0x34d   :  { %v2701_v58 = vadd.f32 %v5607_v16, %v2700_v46 }
 0x34f   :  { %2790 = vst [vmem:[%s5904_s9 + $0x178] sm:$0xff] %v2701_v58 }
 0x353   :  { %v2703_v6 = vpop.f32.mrf.mxu3 }
 0x354   :  { %v2704_v48 = vadd.f32 %v5607_v16, %v2703_v6 }
 0x356   :  { %2791 = vst [vmem:[%s5904_s9 + $0x180] sm:$0xff] %v2704_v48 }
 0x35b   :  { %v2705_v53 = vpop.f32.mrf.mxu3 }
 0x35c   :  { %v2706_v1 = vadd.f32 %v5607_v16, %v2705_v53 }
 0x35e   :  { %2792 = vst [vmem:[%s5904_s9 + $0x188] sm:$0xff] %v2706_v1 }
 0x363   :  { %v2708_v37 = vpop.f32.mrf.mxu3 }
 0x364   :  { %v2709_v40 = vadd.f32 %v5607_v16, %v2708_v37 }
 0x366   :  { %2793 = vst [vmem:[%s5904_s9 + $0x190] sm:$0xff] %v2709_v40 }
 0x36b   :  { %v2710_v44 = vpop.f32.mrf.mxu3 }
 0x36c   :  { %v2711_v25 = vadd.f32 %v5607_v16, %v2710_v44 }
 0x36e   :  { %2794 = vst [vmem:[%s5904_s9 + $0x198] sm:$0xff] %v2711_v25 }
 0x376   :  { %v2713_v4 = vpop.f32.mrf.mxu3 }
 0x377   :  { %v2714_v51 = vadd.f32 %v5607_v16, %v2713_v4 }
 0x379   :  { %2795 = vst [vmem:[%s5904_s9 + $0x1a0] sm:$0xff] %v2714_v51 }
 0x37e   :  { %v2715_v56 = vpop.f32.mrf.mxu3 }
 0x37f   :  { %v2716_v13 = vadd.f32 %v5607_v16, %v2715_v56 }
 0x381   :  { %2796 = vst [vmem:[%s5904_s9 + $0x1a8] sm:$0xff] %v2716_v13 }
 0x386   :  { %v2718_v32 = vpop.f32.mrf.mxu3 }
 0x387   :  { %v2719_v26 = vadd.f32 %v5607_v16, %v2718_v32 }
 0x389   :  { %2797 = vst [vmem:[%s5904_s9 + $0x1b0] sm:$0xff] %v2719_v26 }
 0x38e   :  { %v2720_v61 = vpop.f32.mrf.mxu3 }
 0x38f   :  { %v2721_v59 = vadd.f32 %v5607_v16, %v2720_v61 }
 0x391   :  { %2798 = vst [vmem:[%s5904_s9 + $0x1b8] sm:$0xff] %v2721_v59 }
 0x396   :  { %v2723_v57 = vpop.f32.mrf.mxu3 }
 0x397   :  { %v2724_v2 = vadd.f32 %v5607_v16, %v2723_v57 }
 0x399   :  { %2799 = vst [vmem:[%s5904_s9 + $0x1c0] sm:$0xff] %v2724_v2 }
 0x39e   :  { %v2725_v29 = vpop.f32.mrf.mxu3 }
 0x39f   :  { %v2726_v45 = vadd.f32 %v5607_v16, %v2725_v29 }
 0x3a1   :  { %2800 = vst [vmem:[%s5904_s9 + $0x1c8] sm:$0xff] %v2726_v45 }
 0x3a6   :  { %v2728_v54 = vpop.f32.mrf.mxu3 }
 0x3a7   :  { %v2729_v0 = vadd.f32 %v5607_v16, %v2728_v54 }
 0x3a9   :  { %2801 = vst [vmem:[%s5904_s9 + $0x1d0] sm:$0xff] %v2729_v0 }
 0x3ae   :  { %v2730_v3 = vpop.f32.mrf.mxu3 }
 0x3af   :  { %v2731_v18 = vadd.f32 %v5607_v16, %v2730_v3 }
 0x3b1   :  { %2802 = vst [vmem:[%s5904_s9 + $0x1d8] sm:$0xff] %v2731_v18 }
 0x3b6   :  { %v2733_v22 = vpop.f32.mrf.mxu3 }
 0x3b7   :  { %v2734_v8 = vadd.f32 %v5607_v16, %v2733_v22 }
 0x3b9   :  { %2803 = vst [vmem:[%s5904_s9 + $0x1e0] sm:$0xff] %v2734_v8 }
 0x3be   :  { %v2735_v60 = vpop.f32.mrf.mxu3 }
 0x3bf   :  { %v2736_v15 = vadd.f32 %v5607_v16, %v2735_v60 }
 0x3c1   :  { %2804 = vst [vmem:[%s5904_s9 + $0x1e8] sm:$0xff] %v2736_v15 }
 0x3c6   :  { %v2738_v35 = vpop.f32.mrf.mxu3 }
 0x3c7   :  { %v2739_v42 = vadd.f32 %v5607_v16, %v2738_v35 }
 0x3c9   :  { %2805 = vst [vmem:[%s5904_s9 + $0x1f0] sm:$0xff] %v2739_v42 }
 0x3ce   :  { %v2740_v17 = vpop.f32.mrf.mxu3 }
 0x3cf   :  { %v2741_v50 = vadd.f32 %v5607_v16, %v2740_v17 }
 0x3d1   :  { %2806 = vst [vmem:[%s5904_s9 + $0x1f8] sm:$0xff] %v2741_v50 }

</bundles_post_ra>
